<compile_context>
chip_gen: v5e
topology: v5e:2x2
jax: 0.10.0
libtpu: 0.0.40
codegen_flags: <defaults>
</compile_context>

<pallas_src>
import functools

import jax
import jax.numpy as jnp
import numpy as np
from jax.experimental import pallas as pl
from jax.experimental.pallas import tpu as pltpu

KSIZE = 7
PAD = 3


def _outconv_kernel(x_ref, w_ref, b_ref, o_ref, *, Wp, HWp):
    """One batch sample.

    x_ref: (Cin, L)            bf16, row-flattened reflection-padded sample
                               (L >= Hp*Wp + 6, zero tail padding)
    w_ref: (49, Cout, Cin)     bf16, tap-major flattened conv weights
    b_ref: (Cout, 1)           f32 bias
    o_ref: (Cout, HWp)         f32, flattened (H, Wp) output (lane-dense)
    """
    cout, _ = o_ref.shape
    acc = jnp.zeros((cout, HWp), dtype=jnp.float32)
    # 49 static shifted slices of the flat padded input.  For tap (kh, kw) the
    # slice starting at kh*Wp + kw, viewed as (H, Wp) rows, holds exactly
    # xpad[:, h+kh, w+kw] at flat position h*Wp + w (columns w >= W are junk
    # and are dropped by the wrapper).
    for kh in range(KSIZE):
        for kw in range(KSIZE):
            start = kh * Wp + kw
            slab = x_ref[:, pl.ds(start, HWp)]          # (Cin, HWp) bf16
            w_t = w_ref[kh * KSIZE + kw]                # (Cout, Cin) bf16
            acc = acc + jnp.dot(w_t, slab, preferred_element_type=jnp.float32)
    o_ref[...] = jnp.tanh(acc + b_ref[...]).astype(o_ref.dtype)


def outconv_forward(x, weight, bias):
    """x: (N, Cin, H, W) f32, weight: (Cout, Cin, 7, 7), bias: (Cout,) -> (N, Cout, H, W)."""
    N, Cin, H, W = x.shape
    Cout = weight.shape[0]
    Hp, Wp = H + 2 * PAD, W + 2 * PAD
    HWp = H * Wp
    # Flat padded length: max slice end is Hp*Wp + 6; round up to a lane multiple.
    L = -(-(Hp * Wp + (KSIZE - 1)) // 128) * 128

    # ---- wrapper glue (single pass over the input, no 49x inflation) ----
    xp = jnp.pad(x.astype(jnp.bfloat16), ((0, 0), (0, 0), (PAD, PAD), (PAD, PAD)),
                 mode="reflect")                               # (N, Cin, Hp, Wp)
    xflat = xp.reshape(N, Cin, Hp * Wp)                        # free reshape
    xflat = jnp.pad(xflat, ((0, 0), (0, 0), (0, L - Hp * Wp)))  # tiny zero tail

    # Tap-major weights: (KH, KW, Cout, Cin) -> (49, Cout, Cin), bf16.
    w_taps = weight.astype(jnp.bfloat16).transpose(2, 3, 0, 1).reshape(
        KSIZE * KSIZE, Cout, Cin)
    b_col = bias.astype(jnp.float32).reshape(Cout, 1)

    # ---- VMEM budget (double-buffered blocks + accumulator + slab temps) ----
    est_vmem = (2 * Cin * L * 2            # input block, bf16, 2 buffers
                + 2 * Cout * HWp * 4       # output block, f32, 2 buffers
                + 2 * KSIZE * KSIZE * Cout * Cin * 2 + 2 * Cout * 4
                + Cout * HWp * 4           # accumulator
                + 2 * Cin * HWp * 2)       # shifted-slab temporaries
    vmem_limit = None
    if est_vmem > 12 * 2**20:
        # Cap below v7x's 64 MiB physical VMEM; v5e/v6e have 128 MiB.
        vmem_limit = min(int(est_vmem * 2), 56 * 2**20)

    kernel = functools.partial(_outconv_kernel, Wp=Wp, HWp=HWp)

    out_flat = pl.pallas_call(
        kernel,
        out_shape=jax.ShapeDtypeStruct((N, Cout, HWp), jnp.float32),
        grid=(N,),
        in_specs=[
            pl.BlockSpec((None, Cin, L), lambda n: (n, 0, 0)),
            pl.BlockSpec((KSIZE * KSIZE, Cout, Cin), lambda n: (0, 0, 0)),
            pl.BlockSpec((Cout, 1), lambda n: (0, 0)),
        ],
        out_specs=pl.BlockSpec((None, Cout, HWp), lambda n: (n, 0, 0)),
        compiler_params=pltpu.CompilerParams(
            dimension_semantics=("parallel",),   # batch axis shards across v7x's 2 TCs
            vmem_limit_bytes=vmem_limit),
    )(xflat, w_taps, b_col)

    # ---- back to NCHW: split flat spatial axis and drop the 6 junk pad columns ----
    out = out_flat.reshape(N, Cout, H, Wp)[:, :, :, :W]
    return out.astype(x.dtype)


if __name__ == "__main__":
    # Small deterministic example consistent with the module: batch=2, in_ch=4,
    # out_ch=3, spatial 16x16.
    N, Cin, Cout, H, W = 2, 4, 3, 16, 16
    key = jax.random.PRNGKey(0)
    kx, kw, kb = jax.random.split(key, 3)

    x = jax.random.normal(kx, (N, Cin, H, W), dtype=jnp.float32)
    weight = 0.1 * jax.random.normal(kw, (Cout, Cin, KSIZE, KSIZE), dtype=jnp.float32)
    bias = 0.1 * jax.random.normal(kb, (Cout,), dtype=jnp.float32)

    fwd = jax.jit(outconv_forward)
    out = jax.block_until_ready(fwd(x, weight, bias))

    # Reference: same bf16-rounded operands through XLA's conv (f32 accumulate),
    # matching the PyTorch module semantics ReflectionPad2d(3)+Conv2d(7)+Tanh.
    xq = x.astype(jnp.bfloat16).astype(jnp.float32)
    wq = weight.astype(jnp.bfloat16).astype(jnp.float32)
    xp_ref = jnp.pad(xq, ((0, 0), (0, 0), (PAD, PAD), (PAD, PAD)), mode="reflect")
    ref = jax.lax.conv_general_dilated(
        xp_ref, wq, window_strides=(1, 1), padding="VALID",
        dimension_numbers=("NCHW", "OIHW", "NCHW"))
    ref = jnp.tanh(ref + bias[None, :, None, None])

    assert out.shape == (N, Cout, H, W)
    assert np.allclose(np.asarray(out), np.asarray(ref), atol=2e-3, rtol=2e-3)
    print("KERNEL_OK")
</pallas_src>

<mosaic_0001>
module attributes {stable_mosaic.version = 11 : i64} {
  func.func @_outconv_kernel(%arg0: i32, %arg1: memref<1x4x512xbf16, #tpu.memory_space<vmem>>, %arg2: memref<49x3x4xbf16, #tpu.memory_space<vmem>>, %arg3: memref<3x1xf32, #tpu.memory_space<vmem>>, %arg4: memref<1x3x352xf32, #tpu.memory_space<vmem>>) attributes {dimension_semantics = [#tpu.dimension_semantics<parallel>], iteration_bounds = array<i64: 2>, scalar_prefetch = 0 : i64, scratch_operands = 0 : i64, tpu.core_type = #tpu.core_type<tc>, window_params = [{transform_indices = @transform_0, window_bounds = array<i64: 1, 4, 512>}, {pipeline_mode = #tpu.pipeline_mode<synchronous>, transform_indices = @transform_1, window_bounds = array<i64: 49, 3, 4>}, {pipeline_mode = #tpu.pipeline_mode<synchronous>, transform_indices = @transform_2, window_bounds = array<i64: 3, 1>}, {transform_indices = @transform_3, window_bounds = array<i64: 1, 3, 352>}]} {
    %cst = arith.constant 0.000000e+00 : f32
    %0 = vector.broadcast %cst : f32 to vector<3x352xf32>
    %c0 = arith.constant 0 : index
    %c0_0 = arith.constant 0 : index
    %c0_1 = arith.constant 0 : index
    %1 = vector.load %arg1[%c0, %c0_0, %c0_1] : memref<1x4x512xbf16, #tpu.memory_space<vmem>>, vector<1x4x352xbf16>
    %2 = vector.shape_cast %1 : vector<1x4x352xbf16> to vector<4x352xbf16>
    %c0_2 = arith.constant 0 : index
    %c0_3 = arith.constant 0 : index
    %c0_4 = arith.constant 0 : index
    %3 = vector.load %arg2[%c0_2, %c0_3, %c0_4] : memref<49x3x4xbf16, #tpu.memory_space<vmem>>, vector<1x3x4xbf16>
    %4 = vector.shape_cast %3 : vector<1x3x4xbf16> to vector<3x4xbf16>
    %cst_5 = arith.constant dense<0.000000e+00> : vector<3x352xf32>
    %5 = tpu.matmul %4, %2, %cst_5 {dimension_numbers = #tpu.dot_dimension_numbers<[1], [0], [0], [1], [0, 0, 1, 1], [], []>} : vector<3x4xbf16>, vector<4x352xbf16>, vector<3x352xf32> -> vector<3x352xf32>
    %6 = arith.addf %0, %5 : vector<3x352xf32>
    %c0_6 = arith.constant 0 : index
    %c0_7 = arith.constant 0 : index
    %c1 = arith.constant 1 : index
    %7 = vector.load %arg1[%c0_6, %c0_7, %c1] : memref<1x4x512xbf16, #tpu.memory_space<vmem>>, vector<1x4x352xbf16>
    %8 = vector.shape_cast %7 : vector<1x4x352xbf16> to vector<4x352xbf16>
    %c1_8 = arith.constant 1 : index
    %c0_9 = arith.constant 0 : index
    %c0_10 = arith.constant 0 : index
    %9 = vector.load %arg2[%c1_8, %c0_9, %c0_10] : memref<49x3x4xbf16, #tpu.memory_space<vmem>>, vector<1x3x4xbf16>
    %10 = vector.shape_cast %9 : vector<1x3x4xbf16> to vector<3x4xbf16>
    %cst_11 = arith.constant dense<0.000000e+00> : vector<3x352xf32>
    %11 = tpu.matmul %10, %8, %cst_11 {dimension_numbers = #tpu.dot_dimension_numbers<[1], [0], [0], [1], [0, 0, 1, 1], [], []>} : vector<3x4xbf16>, vector<4x352xbf16>, vector<3x352xf32> -> vector<3x352xf32>
    %12 = arith.addf %6, %11 : vector<3x352xf32>
    %c0_12 = arith.constant 0 : index
    %c0_13 = arith.constant 0 : index
    %c2 = arith.constant 2 : index
    %13 = vector.load %arg1[%c0_12, %c0_13, %c2] : memref<1x4x512xbf16, #tpu.memory_space<vmem>>, vector<1x4x352xbf16>
    %14 = vector.shape_cast %13 : vector<1x4x352xbf16> to vector<4x352xbf16>
    %c2_14 = arith.constant 2 : index
    %c0_15 = arith.constant 0 : index
    %c0_16 = arith.constant 0 : index
    %15 = vector.load %arg2[%c2_14, %c0_15, %c0_16] : memref<49x3x4xbf16, #tpu.memory_space<vmem>>, vector<1x3x4xbf16>
    %16 = vector.shape_cast %15 : vector<1x3x4xbf16> to vector<3x4xbf16>
    %cst_17 = arith.constant dense<0.000000e+00> : vector<3x352xf32>
    %17 = tpu.matmul %16, %14, %cst_17 {dimension_numbers = #tpu.dot_dimension_numbers<[1], [0], [0], [1], [0, 0, 1, 1], [], []>} : vector<3x4xbf16>, vector<4x352xbf16>, vector<3x352xf32> -> vector<3x352xf32>
    %18 = arith.addf %12, %17 : vector<3x352xf32>
    %c0_18 = arith.constant 0 : index
    %c0_19 = arith.constant 0 : index
    %c3 = arith.constant 3 : index
    %19 = vector.load %arg1[%c0_18, %c0_19, %c3] : memref<1x4x512xbf16, #tpu.memory_space<vmem>>, vector<1x4x352xbf16>
    %20 = vector.shape_cast %19 : vector<1x4x352xbf16> to vector<4x352xbf16>
    %c3_20 = arith.constant 3 : index
    %c0_21 = arith.constant 0 : index
    %c0_22 = arith.constant 0 : index
    %21 = vector.load %arg2[%c3_20, %c0_21, %c0_22] : memref<49x3x4xbf16, #tpu.memory_space<vmem>>, vector<1x3x4xbf16>
    %22 = vector.shape_cast %21 : vector<1x3x4xbf16> to vector<3x4xbf16>
    %cst_23 = arith.constant dense<0.000000e+00> : vector<3x352xf32>
    %23 = tpu.matmul %22, %20, %cst_23 {dimension_numbers = #tpu.dot_dimension_numbers<[1], [0], [0], [1], [0, 0, 1, 1], [], []>} : vector<3x4xbf16>, vector<4x352xbf16>, vector<3x352xf32> -> vector<3x352xf32>
    %24 = arith.addf %18, %23 : vector<3x352xf32>
    %c0_24 = arith.constant 0 : index
    %c0_25 = arith.constant 0 : index
    %c4 = arith.constant 4 : index
    %25 = vector.load %arg1[%c0_24, %c0_25, %c4] : memref<1x4x512xbf16, #tpu.memory_space<vmem>>, vector<1x4x352xbf16>
    %26 = vector.shape_cast %25 : vector<1x4x352xbf16> to vector<4x352xbf16>
    %c4_26 = arith.constant 4 : index
    %c0_27 = arith.constant 0 : index
    %c0_28 = arith.constant 0 : index
    %27 = vector.load %arg2[%c4_26, %c0_27, %c0_28] : memref<49x3x4xbf16, #tpu.memory_space<vmem>>, vector<1x3x4xbf16>
    %28 = vector.shape_cast %27 : vector<1x3x4xbf16> to vector<3x4xbf16>
    %cst_29 = arith.constant dense<0.000000e+00> : vector<3x352xf32>
    %29 = tpu.matmul %28, %26, %cst_29 {dimension_numbers = #tpu.dot_dimension_numbers<[1], [0], [0], [1], [0, 0, 1, 1], [], []>} : vector<3x4xbf16>, vector<4x352xbf16>, vector<3x352xf32> -> vector<3x352xf32>
    %30 = arith.addf %24, %29 : vector<3x352xf32>
    %c0_30 = arith.constant 0 : index
    %c0_31 = arith.constant 0 : index
    %c5 = arith.constant 5 : index
    %31 = vector.load %arg1[%c0_30, %c0_31, %c5] : memref<1x4x512xbf16, #tpu.memory_space<vmem>>, vector<1x4x352xbf16>
    %32 = vector.shape_cast %31 : vector<1x4x352xbf16> to vector<4x352xbf16>
    %c5_32 = arith.constant 5 : index
    %c0_33 = arith.constant 0 : index
    %c0_34 = arith.constant 0 : index
    %33 = vector.load %arg2[%c5_32, %c0_33, %c0_34] : memref<49x3x4xbf16, #tpu.memory_space<vmem>>, vector<1x3x4xbf16>
    %34 = vector.shape_cast %33 : vector<1x3x4xbf16> to vector<3x4xbf16>
    %cst_35 = arith.constant dense<0.000000e+00> : vector<3x352xf32>
    %35 = tpu.matmul %34, %32, %cst_35 {dimension_numbers = #tpu.dot_dimension_numbers<[1], [0], [0], [1], [0, 0, 1, 1], [], []>} : vector<3x4xbf16>, vector<4x352xbf16>, vector<3x352xf32> -> vector<3x352xf32>
    %36 = arith.addf %30, %35 : vector<3x352xf32>
    %c0_36 = arith.constant 0 : index
    %c0_37 = arith.constant 0 : index
    %c6 = arith.constant 6 : index
    %37 = vector.load %arg1[%c0_36, %c0_37, %c6] : memref<1x4x512xbf16, #tpu.memory_space<vmem>>, vector<1x4x352xbf16>
    %38 = vector.shape_cast %37 : vector<1x4x352xbf16> to vector<4x352xbf16>
    %c6_38 = arith.constant 6 : index
    %c0_39 = arith.constant 0 : index
    %c0_40 = arith.constant 0 : index
    %39 = vector.load %arg2[%c6_38, %c0_39, %c0_40] : memref<49x3x4xbf16, #tpu.memory_space<vmem>>, vector<1x3x4xbf16>
    %40 = vector.shape_cast %39 : vector<1x3x4xbf16> to vector<3x4xbf16>
    %cst_41 = arith.constant dense<0.000000e+00> : vector<3x352xf32>
    %41 = tpu.matmul %40, %38, %cst_41 {dimension_numbers = #tpu.dot_dimension_numbers<[1], [0], [0], [1], [0, 0, 1, 1], [], []>} : vector<3x4xbf16>, vector<4x352xbf16>, vector<3x352xf32> -> vector<3x352xf32>
    %42 = arith.addf %36, %41 : vector<3x352xf32>
    %c0_42 = arith.constant 0 : index
    %c0_43 = arith.constant 0 : index
    %c22 = arith.constant 22 : index
    %43 = vector.load %arg1[%c0_42, %c0_43, %c22] : memref<1x4x512xbf16, #tpu.memory_space<vmem>>, vector<1x4x352xbf16>
    %44 = vector.shape_cast %43 : vector<1x4x352xbf16> to vector<4x352xbf16>
    %c7 = arith.constant 7 : index
    %c0_44 = arith.constant 0 : index
    %c0_45 = arith.constant 0 : index
    %45 = vector.load %arg2[%c7, %c0_44, %c0_45] : memref<49x3x4xbf16, #tpu.memory_space<vmem>>, vector<1x3x4xbf16>
    %46 = vector.shape_cast %45 : vector<1x3x4xbf16> to vector<3x4xbf16>
    %cst_46 = arith.constant dense<0.000000e+00> : vector<3x352xf32>
    %47 = tpu.matmul %46, %44, %cst_46 {dimension_numbers = #tpu.dot_dimension_numbers<[1], [0], [0], [1], [0, 0, 1, 1], [], []>} : vector<3x4xbf16>, vector<4x352xbf16>, vector<3x352xf32> -> vector<3x352xf32>
    %48 = arith.addf %42, %47 : vector<3x352xf32>
    %c0_47 = arith.constant 0 : index
    %c0_48 = arith.constant 0 : index
    %c23 = arith.constant 23 : index
    %49 = vector.load %arg1[%c0_47, %c0_48, %c23] : memref<1x4x512xbf16, #tpu.memory_space<vmem>>, vector<1x4x352xbf16>
    %50 = vector.shape_cast %49 : vector<1x4x352xbf16> to vector<4x352xbf16>
    %c8 = arith.constant 8 : index
    %c0_49 = arith.constant 0 : index
    %c0_50 = arith.constant 0 : index
    %51 = vector.load %arg2[%c8, %c0_49, %c0_50] : memref<49x3x4xbf16, #tpu.memory_space<vmem>>, vector<1x3x4xbf16>
    %52 = vector.shape_cast %51 : vector<1x3x4xbf16> to vector<3x4xbf16>
    %cst_51 = arith.constant dense<0.000000e+00> : vector<3x352xf32>
    %53 = tpu.matmul %52, %50, %cst_51 {dimension_numbers = #tpu.dot_dimension_numbers<[1], [0], [0], [1], [0, 0, 1, 1], [], []>} : vector<3x4xbf16>, vector<4x352xbf16>, vector<3x352xf32> -> vector<3x352xf32>
    %54 = arith.addf %48, %53 : vector<3x352xf32>
    %c0_52 = arith.constant 0 : index
    %c0_53 = arith.constant 0 : index
    %c24 = arith.constant 24 : index
    %55 = vector.load %arg1[%c0_52, %c0_53, %c24] : memref<1x4x512xbf16, #tpu.memory_space<vmem>>, vector<1x4x352xbf16>
    %56 = vector.shape_cast %55 : vector<1x4x352xbf16> to vector<4x352xbf16>
    %c9 = arith.constant 9 : index
    %c0_54 = arith.constant 0 : index
    %c0_55 = arith.constant 0 : index
    %57 = vector.load %arg2[%c9, %c0_54, %c0_55] : memref<49x3x4xbf16, #tpu.memory_space<vmem>>, vector<1x3x4xbf16>
    %58 = vector.shape_cast %57 : vector<1x3x4xbf16> to vector<3x4xbf16>
    %cst_56 = arith.constant dense<0.000000e+00> : vector<3x352xf32>
    %59 = tpu.matmul %58, %56, %cst_56 {dimension_numbers = #tpu.dot_dimension_numbers<[1], [0], [0], [1], [0, 0, 1, 1], [], []>} : vector<3x4xbf16>, vector<4x352xbf16>, vector<3x352xf32> -> vector<3x352xf32>
    %60 = arith.addf %54, %59 : vector<3x352xf32>
    %c0_57 = arith.constant 0 : index
    %c0_58 = arith.constant 0 : index
    %c25 = arith.constant 25 : index
    %61 = vector.load %arg1[%c0_57, %c0_58, %c25] : memref<1x4x512xbf16, #tpu.memory_space<vmem>>, vector<1x4x352xbf16>
    %62 = vector.shape_cast %61 : vector<1x4x352xbf16> to vector<4x352xbf16>
    %c10 = arith.constant 10 : index
    %c0_59 = arith.constant 0 : index
    %c0_60 = arith.constant 0 : index
    %63 = vector.load %arg2[%c10, %c0_59, %c0_60] : memref<49x3x4xbf16, #tpu.memory_space<vmem>>, vector<1x3x4xbf16>
    %64 = vector.shape_cast %63 : vector<1x3x4xbf16> to vector<3x4xbf16>
    %cst_61 = arith.constant dense<0.000000e+00> : vector<3x352xf32>
    %65 = tpu.matmul %64, %62, %cst_61 {dimension_numbers = #tpu.dot_dimension_numbers<[1], [0], [0], [1], [0, 0, 1, 1], [], []>} : vector<3x4xbf16>, vector<4x352xbf16>, vector<3x352xf32> -> vector<3x352xf32>
    %66 = arith.addf %60, %65 : vector<3x352xf32>
    %c0_62 = arith.constant 0 : index
    %c0_63 = arith.constant 0 : index
    %c26 = arith.constant 26 : index
    %67 = vector.load %arg1[%c0_62, %c0_63, %c26] : memref<1x4x512xbf16, #tpu.memory_space<vmem>>, vector<1x4x352xbf16>
    %68 = vector.shape_cast %67 : vector<1x4x352xbf16> to vector<4x352xbf16>
    %c11 = arith.constant 11 : index
    %c0_64 = arith.constant 0 : index
    %c0_65 = arith.constant 0 : index
    %69 = vector.load %arg2[%c11, %c0_64, %c0_65] : memref<49x3x4xbf16, #tpu.memory_space<vmem>>, vector<1x3x4xbf16>
    %70 = vector.shape_cast %69 : vector<1x3x4xbf16> to vector<3x4xbf16>
    %cst_66 = arith.constant dense<0.000000e+00> : vector<3x352xf32>
    %71 = tpu.matmul %70, %68, %cst_66 {dimension_numbers = #tpu.dot_dimension_numbers<[1], [0], [0], [1], [0, 0, 1, 1], [], []>} : vector<3x4xbf16>, vector<4x352xbf16>, vector<3x352xf32> -> vector<3x352xf32>
    %72 = arith.addf %66, %71 : vector<3x352xf32>
    %c0_67 = arith.constant 0 : index
    %c0_68 = arith.constant 0 : index
    %c27 = arith.constant 27 : index
    %73 = vector.load %arg1[%c0_67, %c0_68, %c27] : memref<1x4x512xbf16, #tpu.memory_space<vmem>>, vector<1x4x352xbf16>
    %74 = vector.shape_cast %73 : vector<1x4x352xbf16> to vector<4x352xbf16>
    %c12 = arith.constant 12 : index
    %c0_69 = arith.constant 0 : index
    %c0_70 = arith.constant 0 : index
    %75 = vector.load %arg2[%c12, %c0_69, %c0_70] : memref<49x3x4xbf16, #tpu.memory_space<vmem>>, vector<1x3x4xbf16>
    %76 = vector.shape_cast %75 : vector<1x3x4xbf16> to vector<3x4xbf16>
    %cst_71 = arith.constant dense<0.000000e+00> : vector<3x352xf32>
    %77 = tpu.matmul %76, %74, %cst_71 {dimension_numbers = #tpu.dot_dimension_numbers<[1], [0], [0], [1], [0, 0, 1, 1], [], []>} : vector<3x4xbf16>, vector<4x352xbf16>, vector<3x352xf32> -> vector<3x352xf32>
    %78 = arith.addf %72, %77 : vector<3x352xf32>
    %c0_72 = arith.constant 0 : index
    %c0_73 = arith.constant 0 : index
    %c28 = arith.constant 28 : index
    %79 = vector.load %arg1[%c0_72, %c0_73, %c28] : memref<1x4x512xbf16, #tpu.memory_space<vmem>>, vector<1x4x352xbf16>
    %80 = vector.shape_cast %79 : vector<1x4x352xbf16> to vector<4x352xbf16>
    %c13 = arith.constant 13 : index
    %c0_74 = arith.constant 0 : index
    %c0_75 = arith.constant 0 : index
    %81 = vector.load %arg2[%c13, %c0_74, %c0_75] : memref<49x3x4xbf16, #tpu.memory_space<vmem>>, vector<1x3x4xbf16>
    %82 = vector.shape_cast %81 : vector<1x3x4xbf16> to vector<3x4xbf16>
    %cst_76 = arith.constant dense<0.000000e+00> : vector<3x352xf32>
    %83 = tpu.matmul %82, %80, %cst_76 {dimension_numbers = #tpu.dot_dimension_numbers<[1], [0], [0], [1], [0, 0, 1, 1], [], []>} : vector<3x4xbf16>, vector<4x352xbf16>, vector<3x352xf32> -> vector<3x352xf32>
    %84 = arith.addf %78, %83 : vector<3x352xf32>
    %c0_77 = arith.constant 0 : index
    %c0_78 = arith.constant 0 : index
    %c44 = arith.constant 44 : index
    %85 = vector.load %arg1[%c0_77, %c0_78, %c44] : memref<1x4x512xbf16, #tpu.memory_space<vmem>>, vector<1x4x352xbf16>
    %86 = vector.shape_cast %85 : vector<1x4x352xbf16> to vector<4x352xbf16>
    %c14 = arith.constant 14 : index
    %c0_79 = arith.constant 0 : index
    %c0_80 = arith.constant 0 : index
    %87 = vector.load %arg2[%c14, %c0_79, %c0_80] : memref<49x3x4xbf16, #tpu.memory_space<vmem>>, vector<1x3x4xbf16>
    %88 = vector.shape_cast %87 : vector<1x3x4xbf16> to vector<3x4xbf16>
    %cst_81 = arith.constant dense<0.000000e+00> : vector<3x352xf32>
    %89 = tpu.matmul %88, %86, %cst_81 {dimension_numbers = #tpu.dot_dimension_numbers<[1], [0], [0], [1], [0, 0, 1, 1], [], []>} : vector<3x4xbf16>, vector<4x352xbf16>, vector<3x352xf32> -> vector<3x352xf32>
    %90 = arith.addf %84, %89 : vector<3x352xf32>
    %c0_82 = arith.constant 0 : index
    %c0_83 = arith.constant 0 : index
    %c45 = arith.constant 45 : index
    %91 = vector.load %arg1[%c0_82, %c0_83, %c45] : memref<1x4x512xbf16, #tpu.memory_space<vmem>>, vector<1x4x352xbf16>
    %92 = vector.shape_cast %91 : vector<1x4x352xbf16> to vector<4x352xbf16>
    %c15 = arith.constant 15 : index
    %c0_84 = arith.constant 0 : index
    %c0_85 = arith.constant 0 : index
    %93 = vector.load %arg2[%c15, %c0_84, %c0_85] : memref<49x3x4xbf16, #tpu.memory_space<vmem>>, vector<1x3x4xbf16>
    %94 = vector.shape_cast %93 : vector<1x3x4xbf16> to vector<3x4xbf16>
    %cst_86 = arith.constant dense<0.000000e+00> : vector<3x352xf32>
    %95 = tpu.matmul %94, %92, %cst_86 {dimension_numbers = #tpu.dot_dimension_numbers<[1], [0], [0], [1], [0, 0, 1, 1], [], []>} : vector<3x4xbf16>, vector<4x352xbf16>, vector<3x352xf32> -> vector<3x352xf32>
    %96 = arith.addf %90, %95 : vector<3x352xf32>
    %c0_87 = arith.constant 0 : index
    %c0_88 = arith.constant 0 : index
    %c46 = arith.constant 46 : index
    %97 = vector.load %arg1[%c0_87, %c0_88, %c46] : memref<1x4x512xbf16, #tpu.memory_space<vmem>>, vector<1x4x352xbf16>
    %98 = vector.shape_cast %97 : vector<1x4x352xbf16> to vector<4x352xbf16>
    %c16 = arith.constant 16 : index
    %c0_89 = arith.constant 0 : index
    %c0_90 = arith.constant 0 : index
    %99 = vector.load %arg2[%c16, %c0_89, %c0_90] : memref<49x3x4xbf16, #tpu.memory_space<vmem>>, vector<1x3x4xbf16>
    %100 = vector.shape_cast %99 : vector<1x3x4xbf16> to vector<3x4xbf16>
    %cst_91 = arith.constant dense<0.000000e+00> : vector<3x352xf32>
    %101 = tpu.matmul %100, %98, %cst_91 {dimension_numbers = #tpu.dot_dimension_numbers<[1], [0], [0], [1], [0, 0, 1, 1], [], []>} : vector<3x4xbf16>, vector<4x352xbf16>, vector<3x352xf32> -> vector<3x352xf32>
    %102 = arith.addf %96, %101 : vector<3x352xf32>
    %c0_92 = arith.constant 0 : index
    %c0_93 = arith.constant 0 : index
    %c47 = arith.constant 47 : index
    %103 = vector.load %arg1[%c0_92, %c0_93, %c47] : memref<1x4x512xbf16, #tpu.memory_space<vmem>>, vector<1x4x352xbf16>
    %104 = vector.shape_cast %103 : vector<1x4x352xbf16> to vector<4x352xbf16>
    %c17 = arith.constant 17 : index
    %c0_94 = arith.constant 0 : index
    %c0_95 = arith.constant 0 : index
    %105 = vector.load %arg2[%c17, %c0_94, %c0_95] : memref<49x3x4xbf16, #tpu.memory_space<vmem>>, vector<1x3x4xbf16>
    %106 = vector.shape_cast %105 : vector<1x3x4xbf16> to vector<3x4xbf16>
    %cst_96 = arith.constant dense<0.000000e+00> : vector<3x352xf32>
    %107 = tpu.matmul %106, %104, %cst_96 {dimension_numbers = #tpu.dot_dimension_numbers<[1], [0], [0], [1], [0, 0, 1, 1], [], []>} : vector<3x4xbf16>, vector<4x352xbf16>, vector<3x352xf32> -> vector<3x352xf32>
    %108 = arith.addf %102, %107 : vector<3x352xf32>
    %c0_97 = arith.constant 0 : index
    %c0_98 = arith.constant 0 : index
    %c48 = arith.constant 48 : index
    %109 = vector.load %arg1[%c0_97, %c0_98, %c48] : memref<1x4x512xbf16, #tpu.memory_space<vmem>>, vector<1x4x352xbf16>
    %110 = vector.shape_cast %109 : vector<1x4x352xbf16> to vector<4x352xbf16>
    %c18 = arith.constant 18 : index
    %c0_99 = arith.constant 0 : index
    %c0_100 = arith.constant 0 : index
    %111 = vector.load %arg2[%c18, %c0_99, %c0_100] : memref<49x3x4xbf16, #tpu.memory_space<vmem>>, vector<1x3x4xbf16>
    %112 = vector.shape_cast %111 : vector<1x3x4xbf16> to vector<3x4xbf16>
    %cst_101 = arith.constant dense<0.000000e+00> : vector<3x352xf32>
    %113 = tpu.matmul %112, %110, %cst_101 {dimension_numbers = #tpu.dot_dimension_numbers<[1], [0], [0], [1], [0, 0, 1, 1], [], []>} : vector<3x4xbf16>, vector<4x352xbf16>, vector<3x352xf32> -> vector<3x352xf32>
    %114 = arith.addf %108, %113 : vector<3x352xf32>
    %c0_102 = arith.constant 0 : index
    %c0_103 = arith.constant 0 : index
    %c49 = arith.constant 49 : index
    %115 = vector.load %arg1[%c0_102, %c0_103, %c49] : memref<1x4x512xbf16, #tpu.memory_space<vmem>>, vector<1x4x352xbf16>
    %116 = vector.shape_cast %115 : vector<1x4x352xbf16> to vector<4x352xbf16>
    %c19 = arith.constant 19 : index
    %c0_104 = arith.constant 0 : index
    %c0_105 = arith.constant 0 : index
    %117 = vector.load %arg2[%c19, %c0_104, %c0_105] : memref<49x3x4xbf16, #tpu.memory_space<vmem>>, vector<1x3x4xbf16>
    %118 = vector.shape_cast %117 : vector<1x3x4xbf16> to vector<3x4xbf16>
    %cst_106 = arith.constant dense<0.000000e+00> : vector<3x352xf32>
    %119 = tpu.matmul %118, %116, %cst_106 {dimension_numbers = #tpu.dot_dimension_numbers<[1], [0], [0], [1], [0, 0, 1, 1], [], []>} : vector<3x4xbf16>, vector<4x352xbf16>, vector<3x352xf32> -> vector<3x352xf32>
    %120 = arith.addf %114, %119 : vector<3x352xf32>
    %c0_107 = arith.constant 0 : index
    %c0_108 = arith.constant 0 : index
    %c50 = arith.constant 50 : index
    %121 = vector.load %arg1[%c0_107, %c0_108, %c50] : memref<1x4x512xbf16, #tpu.memory_space<vmem>>, vector<1x4x352xbf16>
    %122 = vector.shape_cast %121 : vector<1x4x352xbf16> to vector<4x352xbf16>
    %c20 = arith.constant 20 : index
    %c0_109 = arith.constant 0 : index
    %c0_110 = arith.constant 0 : index
    %123 = vector.load %arg2[%c20, %c0_109, %c0_110] : memref<49x3x4xbf16, #tpu.memory_space<vmem>>, vector<1x3x4xbf16>
    %124 = vector.shape_cast %123 : vector<1x3x4xbf16> to vector<3x4xbf16>
    %cst_111 = arith.constant dense<0.000000e+00> : vector<3x352xf32>
    %125 = tpu.matmul %124, %122, %cst_111 {dimension_numbers = #tpu.dot_dimension_numbers<[1], [0], [0], [1], [0, 0, 1, 1], [], []>} : vector<3x4xbf16>, vector<4x352xbf16>, vector<3x352xf32> -> vector<3x352xf32>
    %126 = arith.addf %120, %125 : vector<3x352xf32>
    %c0_112 = arith.constant 0 : index
    %c0_113 = arith.constant 0 : index
    %c66 = arith.constant 66 : index
    %127 = vector.load %arg1[%c0_112, %c0_113, %c66] : memref<1x4x512xbf16, #tpu.memory_space<vmem>>, vector<1x4x352xbf16>
    %128 = vector.shape_cast %127 : vector<1x4x352xbf16> to vector<4x352xbf16>
    %c21 = arith.constant 21 : index
    %c0_114 = arith.constant 0 : index
    %c0_115 = arith.constant 0 : index
    %129 = vector.load %arg2[%c21, %c0_114, %c0_115] : memref<49x3x4xbf16, #tpu.memory_space<vmem>>, vector<1x3x4xbf16>
    %130 = vector.shape_cast %129 : vector<1x3x4xbf16> to vector<3x4xbf16>
    %cst_116 = arith.constant dense<0.000000e+00> : vector<3x352xf32>
    %131 = tpu.matmul %130, %128, %cst_116 {dimension_numbers = #tpu.dot_dimension_numbers<[1], [0], [0], [1], [0, 0, 1, 1], [], []>} : vector<3x4xbf16>, vector<4x352xbf16>, vector<3x352xf32> -> vector<3x352xf32>
    %132 = arith.addf %126, %131 : vector<3x352xf32>
    %c0_117 = arith.constant 0 : index
    %c0_118 = arith.constant 0 : index
    %c67 = arith.constant 67 : index
    %133 = vector.load %arg1[%c0_117, %c0_118, %c67] : memref<1x4x512xbf16, #tpu.memory_space<vmem>>, vector<1x4x352xbf16>
    %134 = vector.shape_cast %133 : vector<1x4x352xbf16> to vector<4x352xbf16>
    %c22_119 = arith.constant 22 : index
    %c0_120 = arith.constant 0 : index
    %c0_121 = arith.constant 0 : index
    %135 = vector.load %arg2[%c22_119, %c0_120, %c0_121] : memref<49x3x4xbf16, #tpu.memory_space<vmem>>, vector<1x3x4xbf16>
    %136 = vector.shape_cast %135 : vector<1x3x4xbf16> to vector<3x4xbf16>
    %cst_122 = arith.constant dense<0.000000e+00> : vector<3x352xf32>
    %137 = tpu.matmul %136, %134, %cst_122 {dimension_numbers = #tpu.dot_dimension_numbers<[1], [0], [0], [1], [0, 0, 1, 1], [], []>} : vector<3x4xbf16>, vector<4x352xbf16>, vector<3x352xf32> -> vector<3x352xf32>
    %138 = arith.addf %132, %137 : vector<3x352xf32>
    %c0_123 = arith.constant 0 : index
    %c0_124 = arith.constant 0 : index
    %c68 = arith.constant 68 : index
    %139 = vector.load %arg1[%c0_123, %c0_124, %c68] : memref<1x4x512xbf16, #tpu.memory_space<vmem>>, vector<1x4x352xbf16>
    %140 = vector.shape_cast %139 : vector<1x4x352xbf16> to vector<4x352xbf16>
    %c23_125 = arith.constant 23 : index
    %c0_126 = arith.constant 0 : index
    %c0_127 = arith.constant 0 : index
    %141 = vector.load %arg2[%c23_125, %c0_126, %c0_127] : memref<49x3x4xbf16, #tpu.memory_space<vmem>>, vector<1x3x4xbf16>
    %142 = vector.shape_cast %141 : vector<1x3x4xbf16> to vector<3x4xbf16>
    %cst_128 = arith.constant dense<0.000000e+00> : vector<3x352xf32>
    %143 = tpu.matmul %142, %140, %cst_128 {dimension_numbers = #tpu.dot_dimension_numbers<[1], [0], [0], [1], [0, 0, 1, 1], [], []>} : vector<3x4xbf16>, vector<4x352xbf16>, vector<3x352xf32> -> vector<3x352xf32>
    %144 = arith.addf %138, %143 : vector<3x352xf32>
    %c0_129 = arith.constant 0 : index
    %c0_130 = arith.constant 0 : index
    %c69 = arith.constant 69 : index
    %145 = vector.load %arg1[%c0_129, %c0_130, %c69] : memref<1x4x512xbf16, #tpu.memory_space<vmem>>, vector<1x4x352xbf16>
    %146 = vector.shape_cast %145 : vector<1x4x352xbf16> to vector<4x352xbf16>
    %c24_131 = arith.constant 24 : index
    %c0_132 = arith.constant 0 : index
    %c0_133 = arith.constant 0 : index
    %147 = vector.load %arg2[%c24_131, %c0_132, %c0_133] : memref<49x3x4xbf16, #tpu.memory_space<vmem>>, vector<1x3x4xbf16>
    %148 = vector.shape_cast %147 : vector<1x3x4xbf16> to vector<3x4xbf16>
    %cst_134 = arith.constant dense<0.000000e+00> : vector<3x352xf32>
    %149 = tpu.matmul %148, %146, %cst_134 {dimension_numbers = #tpu.dot_dimension_numbers<[1], [0], [0], [1], [0, 0, 1, 1], [], []>} : vector<3x4xbf16>, vector<4x352xbf16>, vector<3x352xf32> -> vector<3x352xf32>
    %150 = arith.addf %144, %149 : vector<3x352xf32>
    %c0_135 = arith.constant 0 : index
    %c0_136 = arith.constant 0 : index
    %c70 = arith.constant 70 : index
    %151 = vector.load %arg1[%c0_135, %c0_136, %c70] : memref<1x4x512xbf16, #tpu.memory_space<vmem>>, vector<1x4x352xbf16>
    %152 = vector.shape_cast %151 : vector<1x4x352xbf16> to vector<4x352xbf16>
    %c25_137 = arith.constant 25 : index
    %c0_138 = arith.constant 0 : index
    %c0_139 = arith.constant 0 : index
    %153 = vector.load %arg2[%c25_137, %c0_138, %c0_139] : memref<49x3x4xbf16, #tpu.memory_space<vmem>>, vector<1x3x4xbf16>
    %154 = vector.shape_cast %153 : vector<1x3x4xbf16> to vector<3x4xbf16>
    %cst_140 = arith.constant dense<0.000000e+00> : vector<3x352xf32>
    %155 = tpu.matmul %154, %152, %cst_140 {dimension_numbers = #tpu.dot_dimension_numbers<[1], [0], [0], [1], [0, 0, 1, 1], [], []>} : vector<3x4xbf16>, vector<4x352xbf16>, vector<3x352xf32> -> vector<3x352xf32>
    %156 = arith.addf %150, %155 : vector<3x352xf32>
    %c0_141 = arith.constant 0 : index
    %c0_142 = arith.constant 0 : index
    %c71 = arith.constant 71 : index
    %157 = vector.load %arg1[%c0_141, %c0_142, %c71] : memref<1x4x512xbf16, #tpu.memory_space<vmem>>, vector<1x4x352xbf16>
    %158 = vector.shape_cast %157 : vector<1x4x352xbf16> to vector<4x352xbf16>
    %c26_143 = arith.constant 26 : index
    %c0_144 = arith.constant 0 : index
    %c0_145 = arith.constant 0 : index
    %159 = vector.load %arg2[%c26_143, %c0_144, %c0_145] : memref<49x3x4xbf16, #tpu.memory_space<vmem>>, vector<1x3x4xbf16>
    %160 = vector.shape_cast %159 : vector<1x3x4xbf16> to vector<3x4xbf16>
    %cst_146 = arith.constant dense<0.000000e+00> : vector<3x352xf32>
    %161 = tpu.matmul %160, %158, %cst_146 {dimension_numbers = #tpu.dot_dimension_numbers<[1], [0], [0], [1], [0, 0, 1, 1], [], []>} : vector<3x4xbf16>, vector<4x352xbf16>, vector<3x352xf32> -> vector<3x352xf32>
    %162 = arith.addf %156, %161 : vector<3x352xf32>
    %c0_147 = arith.constant 0 : index
    %c0_148 = arith.constant 0 : index
    %c72 = arith.constant 72 : index
    %163 = vector.load %arg1[%c0_147, %c0_148, %c72] : memref<1x4x512xbf16, #tpu.memory_space<vmem>>, vector<1x4x352xbf16>
    %164 = vector.shape_cast %163 : vector<1x4x352xbf16> to vector<4x352xbf16>
    %c27_149 = arith.constant 27 : index
    %c0_150 = arith.constant 0 : index
    %c0_151 = arith.constant 0 : index
    %165 = vector.load %arg2[%c27_149, %c0_150, %c0_151] : memref<49x3x4xbf16, #tpu.memory_space<vmem>>, vector<1x3x4xbf16>
    %166 = vector.shape_cast %165 : vector<1x3x4xbf16> to vector<3x4xbf16>
    %cst_152 = arith.constant dense<0.000000e+00> : vector<3x352xf32>
    %167 = tpu.matmul %166, %164, %cst_152 {dimension_numbers = #tpu.dot_dimension_numbers<[1], [0], [0], [1], [0, 0, 1, 1], [], []>} : vector<3x4xbf16>, vector<4x352xbf16>, vector<3x352xf32> -> vector<3x352xf32>
    %168 = arith.addf %162, %167 : vector<3x352xf32>
    %c0_153 = arith.constant 0 : index
    %c0_154 = arith.constant 0 : index
    %c88 = arith.constant 88 : index
    %169 = vector.load %arg1[%c0_153, %c0_154, %c88] : memref<1x4x512xbf16, #tpu.memory_space<vmem>>, vector<1x4x352xbf16>
    %170 = vector.shape_cast %169 : vector<1x4x352xbf16> to vector<4x352xbf16>
    %c28_155 = arith.constant 28 : index
    %c0_156 = arith.constant 0 : index
    %c0_157 = arith.constant 0 : index
    %171 = vector.load %arg2[%c28_155, %c0_156, %c0_157] : memref<49x3x4xbf16, #tpu.memory_space<vmem>>, vector<1x3x4xbf16>
    %172 = vector.shape_cast %171 : vector<1x3x4xbf16> to vector<3x4xbf16>
    %cst_158 = arith.constant dense<0.000000e+00> : vector<3x352xf32>
    %173 = tpu.matmul %172, %170, %cst_158 {dimension_numbers = #tpu.dot_dimension_numbers<[1], [0], [0], [1], [0, 0, 1, 1], [], []>} : vector<3x4xbf16>, vector<4x352xbf16>, vector<3x352xf32> -> vector<3x352xf32>
    %174 = arith.addf %168, %173 : vector<3x352xf32>
    %c0_159 = arith.constant 0 : index
    %c0_160 = arith.constant 0 : index
    %c89 = arith.constant 89 : index
    %175 = vector.load %arg1[%c0_159, %c0_160, %c89] : memref<1x4x512xbf16, #tpu.memory_space<vmem>>, vector<1x4x352xbf16>
    %176 = vector.shape_cast %175 : vector<1x4x352xbf16> to vector<4x352xbf16>
    %c29 = arith.constant 29 : index
    %c0_161 = arith.constant 0 : index
    %c0_162 = arith.constant 0 : index
    %177 = vector.load %arg2[%c29, %c0_161, %c0_162] : memref<49x3x4xbf16, #tpu.memory_space<vmem>>, vector<1x3x4xbf16>
    %178 = vector.shape_cast %177 : vector<1x3x4xbf16> to vector<3x4xbf16>
    %cst_163 = arith.constant dense<0.000000e+00> : vector<3x352xf32>
    %179 = tpu.matmul %178, %176, %cst_163 {dimension_numbers = #tpu.dot_dimension_numbers<[1], [0], [0], [1], [0, 0, 1, 1], [], []>} : vector<3x4xbf16>, vector<4x352xbf16>, vector<3x352xf32> -> vector<3x352xf32>
    %180 = arith.addf %174, %179 : vector<3x352xf32>
    %c0_164 = arith.constant 0 : index
    %c0_165 = arith.constant 0 : index
    %c90 = arith.constant 90 : index
    %181 = vector.load %arg1[%c0_164, %c0_165, %c90] : memref<1x4x512xbf16, #tpu.memory_space<vmem>>, vector<1x4x352xbf16>
    %182 = vector.shape_cast %181 : vector<1x4x352xbf16> to vector<4x352xbf16>
    %c30 = arith.constant 30 : index
    %c0_166 = arith.constant 0 : index
    %c0_167 = arith.constant 0 : index
    %183 = vector.load %arg2[%c30, %c0_166, %c0_167] : memref<49x3x4xbf16, #tpu.memory_space<vmem>>, vector<1x3x4xbf16>
    %184 = vector.shape_cast %183 : vector<1x3x4xbf16> to vector<3x4xbf16>
    %cst_168 = arith.constant dense<0.000000e+00> : vector<3x352xf32>
    %185 = tpu.matmul %184, %182, %cst_168 {dimension_numbers = #tpu.dot_dimension_numbers<[1], [0], [0], [1], [0, 0, 1, 1], [], []>} : vector<3x4xbf16>, vector<4x352xbf16>, vector<3x352xf32> -> vector<3x352xf32>
    %186 = arith.addf %180, %185 : vector<3x352xf32>
    %c0_169 = arith.constant 0 : index
    %c0_170 = arith.constant 0 : index
    %c91 = arith.constant 91 : index
    %187 = vector.load %arg1[%c0_169, %c0_170, %c91] : memref<1x4x512xbf16, #tpu.memory_space<vmem>>, vector<1x4x352xbf16>
    %188 = vector.shape_cast %187 : vector<1x4x352xbf16> to vector<4x352xbf16>
    %c31 = arith.constant 31 : index
    %c0_171 = arith.constant 0 : index
    %c0_172 = arith.constant 0 : index
    %189 = vector.load %arg2[%c31, %c0_171, %c0_172] : memref<49x3x4xbf16, #tpu.memory_space<vmem>>, vector<1x3x4xbf16>
    %190 = vector.shape_cast %189 : vector<1x3x4xbf16> to vector<3x4xbf16>
    %cst_173 = arith.constant dense<0.000000e+00> : vector<3x352xf32>
    %191 = tpu.matmul %190, %188, %cst_173 {dimension_numbers = #tpu.dot_dimension_numbers<[1], [0], [0], [1], [0, 0, 1, 1], [], []>} : vector<3x4xbf16>, vector<4x352xbf16>, vector<3x352xf32> -> vector<3x352xf32>
    %192 = arith.addf %186, %191 : vector<3x352xf32>
    %c0_174 = arith.constant 0 : index
    %c0_175 = arith.constant 0 : index
    %c92 = arith.constant 92 : index
    %193 = vector.load %arg1[%c0_174, %c0_175, %c92] : memref<1x4x512xbf16, #tpu.memory_space<vmem>>, vector<1x4x352xbf16>
    %194 = vector.shape_cast %193 : vector<1x4x352xbf16> to vector<4x352xbf16>
    %c32 = arith.constant 32 : index
    %c0_176 = arith.constant 0 : index
    %c0_177 = arith.constant 0 : index
    %195 = vector.load %arg2[%c32, %c0_176, %c0_177] : memref<49x3x4xbf16, #tpu.memory_space<vmem>>, vector<1x3x4xbf16>
    %196 = vector.shape_cast %195 : vector<1x3x4xbf16> to vector<3x4xbf16>
    %cst_178 = arith.constant dense<0.000000e+00> : vector<3x352xf32>
    %197 = tpu.matmul %196, %194, %cst_178 {dimension_numbers = #tpu.dot_dimension_numbers<[1], [0], [0], [1], [0, 0, 1, 1], [], []>} : vector<3x4xbf16>, vector<4x352xbf16>, vector<3x352xf32> -> vector<3x352xf32>
    %198 = arith.addf %192, %197 : vector<3x352xf32>
    %c0_179 = arith.constant 0 : index
    %c0_180 = arith.constant 0 : index
    %c93 = arith.constant 93 : index
    %199 = vector.load %arg1[%c0_179, %c0_180, %c93] : memref<1x4x512xbf16, #tpu.memory_space<vmem>>, vector<1x4x352xbf16>
    %200 = vector.shape_cast %199 : vector<1x4x352xbf16> to vector<4x352xbf16>
    %c33 = arith.constant 33 : index
    %c0_181 = arith.constant 0 : index
    %c0_182 = arith.constant 0 : index
    %201 = vector.load %arg2[%c33, %c0_181, %c0_182] : memref<49x3x4xbf16, #tpu.memory_space<vmem>>, vector<1x3x4xbf16>
    %202 = vector.shape_cast %201 : vector<1x3x4xbf16> to vector<3x4xbf16>
    %cst_183 = arith.constant dense<0.000000e+00> : vector<3x352xf32>
    %203 = tpu.matmul %202, %200, %cst_183 {dimension_numbers = #tpu.dot_dimension_numbers<[1], [0], [0], [1], [0, 0, 1, 1], [], []>} : vector<3x4xbf16>, vector<4x352xbf16>, vector<3x352xf32> -> vector<3x352xf32>
    %204 = arith.addf %198, %203 : vector<3x352xf32>
    %c0_184 = arith.constant 0 : index
    %c0_185 = arith.constant 0 : index
    %c94 = arith.constant 94 : index
    %205 = vector.load %arg1[%c0_184, %c0_185, %c94] : memref<1x4x512xbf16, #tpu.memory_space<vmem>>, vector<1x4x352xbf16>
    %206 = vector.shape_cast %205 : vector<1x4x352xbf16> to vector<4x352xbf16>
    %c34 = arith.constant 34 : index
    %c0_186 = arith.constant 0 : index
    %c0_187 = arith.constant 0 : index
    %207 = vector.load %arg2[%c34, %c0_186, %c0_187] : memref<49x3x4xbf16, #tpu.memory_space<vmem>>, vector<1x3x4xbf16>
    %208 = vector.shape_cast %207 : vector<1x3x4xbf16> to vector<3x4xbf16>
    %cst_188 = arith.constant dense<0.000000e+00> : vector<3x352xf32>
    %209 = tpu.matmul %208, %206, %cst_188 {dimension_numbers = #tpu.dot_dimension_numbers<[1], [0], [0], [1], [0, 0, 1, 1], [], []>} : vector<3x4xbf16>, vector<4x352xbf16>, vector<3x352xf32> -> vector<3x352xf32>
    %210 = arith.addf %204, %209 : vector<3x352xf32>
    %c0_189 = arith.constant 0 : index
    %c0_190 = arith.constant 0 : index
    %c110 = arith.constant 110 : index
    %211 = vector.load %arg1[%c0_189, %c0_190, %c110] : memref<1x4x512xbf16, #tpu.memory_space<vmem>>, vector<1x4x352xbf16>
    %212 = vector.shape_cast %211 : vector<1x4x352xbf16> to vector<4x352xbf16>
    %c35 = arith.constant 35 : index
    %c0_191 = arith.constant 0 : index
    %c0_192 = arith.constant 0 : index
    %213 = vector.load %arg2[%c35, %c0_191, %c0_192] : memref<49x3x4xbf16, #tpu.memory_space<vmem>>, vector<1x3x4xbf16>
    %214 = vector.shape_cast %213 : vector<1x3x4xbf16> to vector<3x4xbf16>
    %cst_193 = arith.constant dense<0.000000e+00> : vector<3x352xf32>
    %215 = tpu.matmul %214, %212, %cst_193 {dimension_numbers = #tpu.dot_dimension_numbers<[1], [0], [0], [1], [0, 0, 1, 1], [], []>} : vector<3x4xbf16>, vector<4x352xbf16>, vector<3x352xf32> -> vector<3x352xf32>
    %216 = arith.addf %210, %215 : vector<3x352xf32>
    %c0_194 = arith.constant 0 : index
    %c0_195 = arith.constant 0 : index
    %c111 = arith.constant 111 : index
    %217 = vector.load %arg1[%c0_194, %c0_195, %c111] : memref<1x4x512xbf16, #tpu.memory_space<vmem>>, vector<1x4x352xbf16>
    %218 = vector.shape_cast %217 : vector<1x4x352xbf16> to vector<4x352xbf16>
    %c36 = arith.constant 36 : index
    %c0_196 = arith.constant 0 : index
    %c0_197 = arith.constant 0 : index
    %219 = vector.load %arg2[%c36, %c0_196, %c0_197] : memref<49x3x4xbf16, #tpu.memory_space<vmem>>, vector<1x3x4xbf16>
    %220 = vector.shape_cast %219 : vector<1x3x4xbf16> to vector<3x4xbf16>
    %cst_198 = arith.constant dense<0.000000e+00> : vector<3x352xf32>
    %221 = tpu.matmul %220, %218, %cst_198 {dimension_numbers = #tpu.dot_dimension_numbers<[1], [0], [0], [1], [0, 0, 1, 1], [], []>} : vector<3x4xbf16>, vector<4x352xbf16>, vector<3x352xf32> -> vector<3x352xf32>
    %222 = arith.addf %216, %221 : vector<3x352xf32>
    %c0_199 = arith.constant 0 : index
    %c0_200 = arith.constant 0 : index
    %c112 = arith.constant 112 : index
    %223 = vector.load %arg1[%c0_199, %c0_200, %c112] : memref<1x4x512xbf16, #tpu.memory_space<vmem>>, vector<1x4x352xbf16>
    %224 = vector.shape_cast %223 : vector<1x4x352xbf16> to vector<4x352xbf16>
    %c37 = arith.constant 37 : index
    %c0_201 = arith.constant 0 : index
    %c0_202 = arith.constant 0 : index
    %225 = vector.load %arg2[%c37, %c0_201, %c0_202] : memref<49x3x4xbf16, #tpu.memory_space<vmem>>, vector<1x3x4xbf16>
    %226 = vector.shape_cast %225 : vector<1x3x4xbf16> to vector<3x4xbf16>
    %cst_203 = arith.constant dense<0.000000e+00> : vector<3x352xf32>
    %227 = tpu.matmul %226, %224, %cst_203 {dimension_numbers = #tpu.dot_dimension_numbers<[1], [0], [0], [1], [0, 0, 1, 1], [], []>} : vector<3x4xbf16>, vector<4x352xbf16>, vector<3x352xf32> -> vector<3x352xf32>
    %228 = arith.addf %222, %227 : vector<3x352xf32>
    %c0_204 = arith.constant 0 : index
    %c0_205 = arith.constant 0 : index
    %c113 = arith.constant 113 : index
    %229 = vector.load %arg1[%c0_204, %c0_205, %c113] : memref<1x4x512xbf16, #tpu.memory_space<vmem>>, vector<1x4x352xbf16>
    %230 = vector.shape_cast %229 : vector<1x4x352xbf16> to vector<4x352xbf16>
    %c38 = arith.constant 38 : index
    %c0_206 = arith.constant 0 : index
    %c0_207 = arith.constant 0 : index
    %231 = vector.load %arg2[%c38, %c0_206, %c0_207] : memref<49x3x4xbf16, #tpu.memory_space<vmem>>, vector<1x3x4xbf16>
    %232 = vector.shape_cast %231 : vector<1x3x4xbf16> to vector<3x4xbf16>
    %cst_208 = arith.constant dense<0.000000e+00> : vector<3x352xf32>
    %233 = tpu.matmul %232, %230, %cst_208 {dimension_numbers = #tpu.dot_dimension_numbers<[1], [0], [0], [1], [0, 0, 1, 1], [], []>} : vector<3x4xbf16>, vector<4x352xbf16>, vector<3x352xf32> -> vector<3x352xf32>
    %234 = arith.addf %228, %233 : vector<3x352xf32>
    %c0_209 = arith.constant 0 : index
    %c0_210 = arith.constant 0 : index
    %c114 = arith.constant 114 : index
    %235 = vector.load %arg1[%c0_209, %c0_210, %c114] : memref<1x4x512xbf16, #tpu.memory_space<vmem>>, vector<1x4x352xbf16>
    %236 = vector.shape_cast %235 : vector<1x4x352xbf16> to vector<4x352xbf16>
    %c39 = arith.constant 39 : index
    %c0_211 = arith.constant 0 : index
    %c0_212 = arith.constant 0 : index
    %237 = vector.load %arg2[%c39, %c0_211, %c0_212] : memref<49x3x4xbf16, #tpu.memory_space<vmem>>, vector<1x3x4xbf16>
    %238 = vector.shape_cast %237 : vector<1x3x4xbf16> to vector<3x4xbf16>
    %cst_213 = arith.constant dense<0.000000e+00> : vector<3x352xf32>
    %239 = tpu.matmul %238, %236, %cst_213 {dimension_numbers = #tpu.dot_dimension_numbers<[1], [0], [0], [1], [0, 0, 1, 1], [], []>} : vector<3x4xbf16>, vector<4x352xbf16>, vector<3x352xf32> -> vector<3x352xf32>
    %240 = arith.addf %234, %239 : vector<3x352xf32>
    %c0_214 = arith.constant 0 : index
    %c0_215 = arith.constant 0 : index
    %c115 = arith.constant 115 : index
    %241 = vector.load %arg1[%c0_214, %c0_215, %c115] : memref<1x4x512xbf16, #tpu.memory_space<vmem>>, vector<1x4x352xbf16>
    %242 = vector.shape_cast %241 : vector<1x4x352xbf16> to vector<4x352xbf16>
    %c40 = arith.constant 40 : index
    %c0_216 = arith.constant 0 : index
    %c0_217 = arith.constant 0 : index
    %243 = vector.load %arg2[%c40, %c0_216, %c0_217] : memref<49x3x4xbf16, #tpu.memory_space<vmem>>, vector<1x3x4xbf16>
    %244 = vector.shape_cast %243 : vector<1x3x4xbf16> to vector<3x4xbf16>
    %cst_218 = arith.constant dense<0.000000e+00> : vector<3x352xf32>
    %245 = tpu.matmul %244, %242, %cst_218 {dimension_numbers = #tpu.dot_dimension_numbers<[1], [0], [0], [1], [0, 0, 1, 1], [], []>} : vector<3x4xbf16>, vector<4x352xbf16>, vector<3x352xf32> -> vector<3x352xf32>
    %246 = arith.addf %240, %245 : vector<3x352xf32>
    %c0_219 = arith.constant 0 : index
    %c0_220 = arith.constant 0 : index
    %c116 = arith.constant 116 : index
    %247 = vector.load %arg1[%c0_219, %c0_220, %c116] : memref<1x4x512xbf16, #tpu.memory_space<vmem>>, vector<1x4x352xbf16>
    %248 = vector.shape_cast %247 : vector<1x4x352xbf16> to vector<4x352xbf16>
    %c41 = arith.constant 41 : index
    %c0_221 = arith.constant 0 : index
    %c0_222 = arith.constant 0 : index
    %249 = vector.load %arg2[%c41, %c0_221, %c0_222] : memref<49x3x4xbf16, #tpu.memory_space<vmem>>, vector<1x3x4xbf16>
    %250 = vector.shape_cast %249 : vector<1x3x4xbf16> to vector<3x4xbf16>
    %cst_223 = arith.constant dense<0.000000e+00> : vector<3x352xf32>
    %251 = tpu.matmul %250, %248, %cst_223 {dimension_numbers = #tpu.dot_dimension_numbers<[1], [0], [0], [1], [0, 0, 1, 1], [], []>} : vector<3x4xbf16>, vector<4x352xbf16>, vector<3x352xf32> -> vector<3x352xf32>
    %252 = arith.addf %246, %251 : vector<3x352xf32>
    %c0_224 = arith.constant 0 : index
    %c0_225 = arith.constant 0 : index
    %c132 = arith.constant 132 : index
    %253 = vector.load %arg1[%c0_224, %c0_225, %c132] : memref<1x4x512xbf16, #tpu.memory_space<vmem>>, vector<1x4x352xbf16>
    %254 = vector.shape_cast %253 : vector<1x4x352xbf16> to vector<4x352xbf16>
    %c42 = arith.constant 42 : index
    %c0_226 = arith.constant 0 : index
    %c0_227 = arith.constant 0 : index
    %255 = vector.load %arg2[%c42, %c0_226, %c0_227] : memref<49x3x4xbf16, #tpu.memory_space<vmem>>, vector<1x3x4xbf16>
    %256 = vector.shape_cast %255 : vector<1x3x4xbf16> to vector<3x4xbf16>
    %cst_228 = arith.constant dense<0.000000e+00> : vector<3x352xf32>
    %257 = tpu.matmul %256, %254, %cst_228 {dimension_numbers = #tpu.dot_dimension_numbers<[1], [0], [0], [1], [0, 0, 1, 1], [], []>} : vector<3x4xbf16>, vector<4x352xbf16>, vector<3x352xf32> -> vector<3x352xf32>
    %258 = arith.addf %252, %257 : vector<3x352xf32>
    %c0_229 = arith.constant 0 : index
    %c0_230 = arith.constant 0 : index
    %c133 = arith.constant 133 : index
    %259 = vector.load %arg1[%c0_229, %c0_230, %c133] : memref<1x4x512xbf16, #tpu.memory_space<vmem>>, vector<1x4x352xbf16>
    %260 = vector.shape_cast %259 : vector<1x4x352xbf16> to vector<4x352xbf16>
    %c43 = arith.constant 43 : index
    %c0_231 = arith.constant 0 : index
    %c0_232 = arith.constant 0 : index
    %261 = vector.load %arg2[%c43, %c0_231, %c0_232] : memref<49x3x4xbf16, #tpu.memory_space<vmem>>, vector<1x3x4xbf16>
    %262 = vector.shape_cast %261 : vector<1x3x4xbf16> to vector<3x4xbf16>
    %cst_233 = arith.constant dense<0.000000e+00> : vector<3x352xf32>
    %263 = tpu.matmul %262, %260, %cst_233 {dimension_numbers = #tpu.dot_dimension_numbers<[1], [0], [0], [1], [0, 0, 1, 1], [], []>} : vector<3x4xbf16>, vector<4x352xbf16>, vector<3x352xf32> -> vector<3x352xf32>
    %264 = arith.addf %258, %263 : vector<3x352xf32>
    %c0_234 = arith.constant 0 : index
    %c0_235 = arith.constant 0 : index
    %c134 = arith.constant 134 : index
    %265 = vector.load %arg1[%c0_234, %c0_235, %c134] : memref<1x4x512xbf16, #tpu.memory_space<vmem>>, vector<1x4x352xbf16>
    %266 = vector.shape_cast %265 : vector<1x4x352xbf16> to vector<4x352xbf16>
    %c44_236 = arith.constant 44 : index
    %c0_237 = arith.constant 0 : index
    %c0_238 = arith.constant 0 : index
    %267 = vector.load %arg2[%c44_236, %c0_237, %c0_238] : memref<49x3x4xbf16, #tpu.memory_space<vmem>>, vector<1x3x4xbf16>
    %268 = vector.shape_cast %267 : vector<1x3x4xbf16> to vector<3x4xbf16>
    %cst_239 = arith.constant dense<0.000000e+00> : vector<3x352xf32>
    %269 = tpu.matmul %268, %266, %cst_239 {dimension_numbers = #tpu.dot_dimension_numbers<[1], [0], [0], [1], [0, 0, 1, 1], [], []>} : vector<3x4xbf16>, vector<4x352xbf16>, vector<3x352xf32> -> vector<3x352xf32>
    %270 = arith.addf %264, %269 : vector<3x352xf32>
    %c0_240 = arith.constant 0 : index
    %c0_241 = arith.constant 0 : index
    %c135 = arith.constant 135 : index
    %271 = vector.load %arg1[%c0_240, %c0_241, %c135] : memref<1x4x512xbf16, #tpu.memory_space<vmem>>, vector<1x4x352xbf16>
    %272 = vector.shape_cast %271 : vector<1x4x352xbf16> to vector<4x352xbf16>
    %c45_242 = arith.constant 45 : index
    %c0_243 = arith.constant 0 : index
    %c0_244 = arith.constant 0 : index
    %273 = vector.load %arg2[%c45_242, %c0_243, %c0_244] : memref<49x3x4xbf16, #tpu.memory_space<vmem>>, vector<1x3x4xbf16>
    %274 = vector.shape_cast %273 : vector<1x3x4xbf16> to vector<3x4xbf16>
    %cst_245 = arith.constant dense<0.000000e+00> : vector<3x352xf32>
    %275 = tpu.matmul %274, %272, %cst_245 {dimension_numbers = #tpu.dot_dimension_numbers<[1], [0], [0], [1], [0, 0, 1, 1], [], []>} : vector<3x4xbf16>, vector<4x352xbf16>, vector<3x352xf32> -> vector<3x352xf32>
    %276 = arith.addf %270, %275 : vector<3x352xf32>
    %c0_246 = arith.constant 0 : index
    %c0_247 = arith.constant 0 : index
    %c136 = arith.constant 136 : index
    %277 = vector.load %arg1[%c0_246, %c0_247, %c136] : memref<1x4x512xbf16, #tpu.memory_space<vmem>>, vector<1x4x352xbf16>
    %278 = vector.shape_cast %277 : vector<1x4x352xbf16> to vector<4x352xbf16>
    %c46_248 = arith.constant 46 : index
    %c0_249 = arith.constant 0 : index
    %c0_250 = arith.constant 0 : index
    %279 = vector.load %arg2[%c46_248, %c0_249, %c0_250] : memref<49x3x4xbf16, #tpu.memory_space<vmem>>, vector<1x3x4xbf16>
    %280 = vector.shape_cast %279 : vector<1x3x4xbf16> to vector<3x4xbf16>
    %cst_251 = arith.constant dense<0.000000e+00> : vector<3x352xf32>
    %281 = tpu.matmul %280, %278, %cst_251 {dimension_numbers = #tpu.dot_dimension_numbers<[1], [0], [0], [1], [0, 0, 1, 1], [], []>} : vector<3x4xbf16>, vector<4x352xbf16>, vector<3x352xf32> -> vector<3x352xf32>
    %282 = arith.addf %276, %281 : vector<3x352xf32>
    %c0_252 = arith.constant 0 : index
    %c0_253 = arith.constant 0 : index
    %c137 = arith.constant 137 : index
    %283 = vector.load %arg1[%c0_252, %c0_253, %c137] : memref<1x4x512xbf16, #tpu.memory_space<vmem>>, vector<1x4x352xbf16>
    %284 = vector.shape_cast %283 : vector<1x4x352xbf16> to vector<4x352xbf16>
    %c47_254 = arith.constant 47 : index
    %c0_255 = arith.constant 0 : index
    %c0_256 = arith.constant 0 : index
    %285 = vector.load %arg2[%c47_254, %c0_255, %c0_256] : memref<49x3x4xbf16, #tpu.memory_space<vmem>>, vector<1x3x4xbf16>
    %286 = vector.shape_cast %285 : vector<1x3x4xbf16> to vector<3x4xbf16>
    %cst_257 = arith.constant dense<0.000000e+00> : vector<3x352xf32>
    %287 = tpu.matmul %286, %284, %cst_257 {dimension_numbers = #tpu.dot_dimension_numbers<[1], [0], [0], [1], [0, 0, 1, 1], [], []>} : vector<3x4xbf16>, vector<4x352xbf16>, vector<3x352xf32> -> vector<3x352xf32>
    %288 = arith.addf %282, %287 : vector<3x352xf32>
    %c0_258 = arith.constant 0 : index
    %c0_259 = arith.constant 0 : index
    %c138 = arith.constant 138 : index
    %289 = vector.load %arg1[%c0_258, %c0_259, %c138] : memref<1x4x512xbf16, #tpu.memory_space<vmem>>, vector<1x4x352xbf16>
    %290 = vector.shape_cast %289 : vector<1x4x352xbf16> to vector<4x352xbf16>
    %c48_260 = arith.constant 48 : index
    %c0_261 = arith.constant 0 : index
    %c0_262 = arith.constant 0 : index
    %291 = vector.load %arg2[%c48_260, %c0_261, %c0_262] : memref<49x3x4xbf16, #tpu.memory_space<vmem>>, vector<1x3x4xbf16>
    %292 = vector.shape_cast %291 : vector<1x3x4xbf16> to vector<3x4xbf16>
    %cst_263 = arith.constant dense<0.000000e+00> : vector<3x352xf32>
    %293 = tpu.matmul %292, %290, %cst_263 {dimension_numbers = #tpu.dot_dimension_numbers<[1], [0], [0], [1], [0, 0, 1, 1], [], []>} : vector<3x4xbf16>, vector<4x352xbf16>, vector<3x352xf32> -> vector<3x352xf32>
    %294 = arith.addf %288, %293 : vector<3x352xf32>
    %c0_264 = arith.constant 0 : index
    %c0_265 = arith.constant 0 : index
    %295 = vector.load %arg3[%c0_264, %c0_265] : memref<3x1xf32, #tpu.memory_space<vmem>>, vector<3x1xf32>
    %296 = vector.broadcast %295 : vector<3x1xf32> to vector<3x352xf32>
    %297 = arith.addf %294, %296 : vector<3x352xf32>
    %298 = math.tanh %297 : vector<3x352xf32>
    %c0_266 = arith.constant 0 : index
    %c0_267 = arith.constant 0 : index
    %c0_268 = arith.constant 0 : index
    %299 = vector.load %arg4[%c0_266, %c0_267, %c0_268] : memref<1x3x352xf32, #tpu.memory_space<vmem>>, vector<1x3x352xf32>
    %300 = vector.shape_cast %299 : vector<1x3x352xf32> to vector<3x352xf32>
    %301 = vector.shape_cast %298 : vector<3x352xf32> to vector<1x3x352xf32>
    tpu.vector_store %arg4[%c0_266, %c0_267, %c0_268], %301 {strides = array<i32>} : memref<1x3x352xf32, #tpu.memory_space<vmem>>, vector<1x3x352xf32>,
    return
  }
  func.func @transform_0(%arg0: i32) -> (i32, i32, i32) {
    %c0_i32 = arith.constant 0 : i32
    %c0_i32_0 = arith.constant 0 : i32
    %c0_i32_1 = arith.constant 0 : i32
    return %arg0, %c0_i32, %c0_i32_0 : i32, i32, i32
  }
  func.func @transform_1(%arg0: i32) -> (i32, i32, i32) {
    %c0_i32 = arith.constant 0 : i32
    %c0_i32_0 = arith.constant 0 : i32
    %c0_i32_1 = arith.constant 0 : i32
    %c0_i32_2 = arith.constant 0 : i32
    return %c0_i32, %c0_i32_0, %c0_i32_1 : i32, i32, i32
  }
  func.func @transform_2(%arg0: i32) -> (i32, i32) {
    %c0_i32 = arith.constant 0 : i32
    %c0_i32_0 = arith.constant 0 : i32
    %c0_i32_1 = arith.constant 0 : i32
    return %c0_i32, %c0_i32_0 : i32, i32
  }
  func.func @transform_3(%arg0: i32) -> (i32, i32, i32) {
    %c0_i32 = arith.constant 0 : i32
    %c0_i32_0 = arith.constant 0 : i32
    %c0_i32_1 = arith.constant 0 : i32
    return %arg0, %c0_i32, %c0_i32_0 : i32, i32, i32
  }
}

</mosaic_0001>

<bundles_post_ra>
// kernel: outconv_forward.1
= control target key start
LH: loop header
LB: loop body
LE: loop exit
PB: predicated region body
PF: predicated region fallthrough
CT: control target
= control target key end

     0   :  { %s4332_s12 = smov 0   ;;  %s5193_s0 = inlined_call_operand.vmem [shape: bf16[2,4,512], index: 0, kind: input, shape index: {}]   ;;  %s5194_s1 = inlined_call_operand.vmem [shape: bf16[49,3,4], index: 1, kind: input, shape index: {}]   ;;  %s5195_s2 = inlined_call_operand.vmem [shape: f32[3,1], index: 2, kind: input, shape index: {}]   ;;  %s5196_s3 = inlined_call_operand.vmem [shape: f32[2,3,352], index: 3, kind: output, shape index: {}]  }
   0x1 LB: > { %s3989_s13 = sadd.s32 4294967295, %s4264_s12   ;;  %p3993_p0 = scmp.ge.s32.totalorder %s4264_s12, 1  ;;  %s4264_s12 = sphi %s4332_s12, %s13_s12  }
   0x2   : > { %p137_p1 = scmp.lt.s32.totalorder %s4264_s12, 3 }
   0x4   : > { %p138_p2 = pnand %p3993_p0, %p137_p1 }
   0x5   : > { %p161_p3 = scmp.lt.s32.totalorder (!%p138_p2), %s3989_s13, 1  ;;  %s4266_s18 = smov (!%p138_p2), 127  }
   0x6   : > { %141 = sbr.rel (%p138_p2) target bundleno = 869 (0x365), region = 32  ;;  %s4267_s19 = smov (!%p138_p2), 126  }
   0x7   : > { %s4268_s20 = smov (!%p138_p2), 125   ;;  %s4269_s21 = smov (!%p138_p2), 124  }
   0x8   : > { %s4270_s22 = smov (!%p138_p2), 123   ;;  %s4271_s23 = smov (!%p138_p2), 122  }
   0x9   : > { %s4272_s24 = smov (!%p138_p2), 106   ;;  %s4273_s25 = smov (!%p138_p2), 105  }
   0xa   : > { %s4274_s26 = smov (!%p138_p2), 104   ;;  %s4275_s27 = smov (!%p138_p2), 103  }
   0xb   : > { %s5198_s13 = smov (!%p161_p3, %s3989_s13), 1  ;;  %vm197_vm0 = vcmask 1041408   ;;  %vm193_vm1 = vcmask 31744   ;;  %v4378_v43 = vld [vmem:[%s5194_s1] sm:$0x3]  ;;  %s4276_s30 = smov 102  }
   0xc   : > { %s4194_s14 = sshll.u32 %s5198_s13, 3  ;;  %s4277_s4 = smov 101   ;;  %v3997_v57 = vld [vmem:[%s5194_s1 + $0x2] sm:$0x3]  ;;  %vm315_vm2 = vcmask 1031168   ;;  %vm190_vm3 = vcmask 1039360  }
   0xd   : > { %s4346_s17 = scalar_lea.vmem %s5193_s0, %s4194_s14  ;;  %s4278_s7 = smov 100   ;;  %vm389_vm4 = vcmask 1022976   ;;  %vm463_vm5 = vcmask 1014784   ;;  %vm537_vm6 = vcmask 1006592   ;;  %vm611_vm7 = vcmask 998400  }
   0xe   : > { %v172_v0 = vld [vmem:[%s4346_s17] sm:$0x3f]  ;;  %s4279_s10 = smov 84   ;;  %s4280_s11 = smov 83   ;;  %vm685_vm8 = vcmask 867328   ;;  %vm759_vm9 = vcmask 859136  }
   0xf   : > { %177 = vst [vmem:[#allocation1] ss:$4 sm:$0xff] %v172_v0  ;;  %v298_v4 = vld [vmem:[%s4346_s17] sm:$0x3f]  ;;  %s4281_s16 = smov 82   ;;  %s4284_s29 = smov 79  }
  0x10   : > { %v372_v8 = vld [vmem:[%s4346_s17] sm:$0x3f]  ;;  %vm833_vm10 = vcmask 850944   ;;  %vm907_vm11 = vcmask 842752   ;;  %s4285_s5 = smov 78   ;;  %vm981_vm12 = vcmask 834560  }
  0x11   : > { %v446_v12 = vld [vmem:[%s4346_s17] sm:$0x3f]  ;;  %s4286_s8 = smov 62   ;;  %vm1055_vm13 = vcmask 826368   ;;  %vm1129_vm14 = vcmask 818176   ;;  %vm1207_vm15 = vcmask 687104  }
  0x12   : > { %v520_v16 = vld [vmem:[%s4346_s17] sm:$0x3f]  ;;  %s4290_s28 = smov 58   ;;  %s4307_s15 = smov 121  }
  0x13   : > { %v594_v20 = vld [vmem:[%s4346_s17] sm:$0x3f] }
  0x14   : > { %v668_v24 = vld [vmem:[%s4346_s17] sm:$0x3f] }
  0x15   : > { %v742_v28 = vld [vmem:[%s4346_s17] sm:$0x3f] }
  0x16   : > { %v182_v1 = vld.sshfl [vmem:[#allocation1 + $0x10] sm:$0xff pattern:$0x73625140]  ;;  %v180_v2 = vld.sshfl [vmem:[#allocation1 + $0x8] sm:$0xff pattern:$0x73625140] }
  0x17   : > { %188 = vrot.lane.b32.xlu0 %v182_v1, %s4266_s18  ;;  %v178_v3 = vld.sshfl [vmem:[#allocation1] sm:$0xff pattern:$0x73625140] }
  0x18   : > { %184 = vrot.lane.b32.xlu1 %v178_v3, %s4266_s18  ;;  %246 = vst [vmem:[#allocation1] ss:$4 sm:$0xff] %v172_v0  ;;  %v816_v32 = vld [vmem:[%s4346_s17] sm:$0x3f] }
  0x19   : > { %v890_v36 = vld [vmem:[%s4346_s17] sm:$0x3f] }
  0x1a   : > { %v964_v45 = vld [vmem:[%s4346_s17] sm:$0x3f] }
  0x1b   : > { %v1038_v49 = vld [vmem:[%s4346_s17] sm:$0x3f] }
  0x1c   : > { %v1112_v54 = vld [vmem:[%s4346_s17] sm:$0x3f] }
  0x1d   : > { %v4393_v1 = vld [vmem:[%s4346_s17] sm:$0xff] }
  0x1e   : > { %v4398_v3 = vld [vmem:[%s5194_s1 + $0x4] sm:$0x3] }
  0x1f   : > { %186 = vrot.lane.b32.xlu0 %v180_v2, %s4266_s18  ;;  %v4350_v5 = vld.sshfl [vmem:[#allocation1] sm:$0xff pattern:$0x73625140]  ;;  %v4352_v6 = vld.sshfl [vmem:[#allocation1 + $0x8] sm:$0xff pattern:$0x73625140] }
  0x20   : > { %v4354_v7 = vld.sshfl [vmem:[#allocation1 + $0x10] sm:$0xff pattern:$0x73625140]  ;;  %v253_v40 = vsel %vm197_vm0, %v4350_v5, 0 }
  0x21   : > { %302 = vst [vmem:[#allocation1] ss:$4 sm:$0xff] %v298_v4  ;;  %266 = vmatpush.bf16.msra.mxu3 %v253_v40 }
  0x24   : > { %4001 = vmatmul.msk.bf16.vlgmr.msra.gmra.mxu3 %vm193_vm1, %v4378_v43 }
  0x28   : > { %v303_v9 = vld.sshfl [vmem:[#allocation1] sm:$0xff pattern:$0x73625140]  ;;  %v307_v10 = vld.sshfl [vmem:[#allocation1 + $0x10] sm:$0xff pattern:$0x73625140] }
  0x29   : > { %309 = vrot.lane.b32.xlu1 %v303_v9, %s4267_s19  ;;  %v305_v11 = vld.sshfl [vmem:[#allocation1 + $0x8] sm:$0xff pattern:$0x73625140]  ;;  %v255_v9 = vsel %vm197_vm0, %v4352_v6, 0 }
  0x2a   : > { %311 = vrot.lane.b32.xlu2 %v305_v11, %s4267_s19  ;;  %376 = vst [vmem:[#allocation1] ss:$4 sm:$0xff] %v372_v8  ;;  %v257_v8 = vsel %vm197_vm0, %v4354_v7, 0 }
  0x31   : > { %v381_v13 = vld.sshfl [vmem:[#allocation1 + $0x10] sm:$0xff pattern:$0x73625140]  ;;  %v377_v14 = vld.sshfl [vmem:[#allocation1] sm:$0xff pattern:$0x73625140] }
  0x32   : > { %387 = vrot.lane.b32.xlu1 %v381_v13, %s4268_s20  ;;  %v379_v15 = vld.sshfl [vmem:[#allocation1 + $0x8] sm:$0xff pattern:$0x73625140]  ;;  %313 = vrot.lane.b32.xlu2 %v307_v10, %s4267_s19  ;;  %s4302_s19 = smov 16  }
  0x33   : > { %385 = vrot.lane.b32.xlu0 %v379_v15, %s4268_s20  ;;  %450 = vst [vmem:[#allocation1] ss:$4 sm:$0xff] %v446_v12 }
  0x3a   : > { %v455_v17 = vld.sshfl [vmem:[#allocation1 + $0x10] sm:$0xff pattern:$0x73625140]  ;;  %v451_v18 = vld.sshfl [vmem:[#allocation1] sm:$0xff pattern:$0x73625140]  ;;  %383 = vrot.lane.b32.xlu2 %v377_v14, %s4268_s20 }
  0x3b   : > { %461 = vrot.lane.b32.xlu0 %v455_v17, %s4269_s21  ;;  %v453_v19 = vld.sshfl [vmem:[#allocation1 + $0x8] sm:$0xff pattern:$0x73625140]  ;;  %s4282_s20 = smov 81  }
  0x3c   : > { %459 = vrot.lane.b32.xlu1 %v453_v19, %s4269_s21  ;;  %524 = vst [vmem:[#allocation1] ss:$4 sm:$0xff] %v520_v16 }
  0x42   : > { %457 = vrot.lane.b32.xlu2 %v451_v18, %s4269_s21 }
  0x43   : > { %v527_v21 = vld.sshfl [vmem:[#allocation1 + $0x8] sm:$0xff pattern:$0x73625140]  ;;  %v525_v22 = vld.sshfl [vmem:[#allocation1] sm:$0xff pattern:$0x73625140] }
  0x44   : > { %533 = vrot.lane.b32.xlu1 %v527_v21, %s4270_s22  ;;  %531 = vrot.lane.b32.xlu0 %v525_v22, %s4270_s22  ;;  %v529_v23 = vld.sshfl [vmem:[#allocation1 + $0x10] sm:$0xff pattern:$0x73625140] }
  0x45   : > { %598 = vst [vmem:[#allocation1] ss:$4 sm:$0xff] %v594_v20 }
  0x4c   : > { %535 = vrot.lane.b32.xlu1 %v529_v23, %s4270_s22  ;;  %v601_v25 = vld.sshfl [vmem:[#allocation1 + $0x8] sm:$0xff pattern:$0x73625140]  ;;  %v603_v26 = vld.sshfl [vmem:[#allocation1 + $0x10] sm:$0xff pattern:$0x73625140] }
  0x4d   : > { %607 = vrot.lane.b32.xlu0 %v601_v25, %s4271_s23  ;;  %v599_v27 = vld.sshfl [vmem:[#allocation1] sm:$0xff pattern:$0x73625140] }
  0x4e   : > { %605 = vrot.lane.b32.xlu2 %v599_v27, %s4271_s23  ;;  %672 = vst [vmem:[#allocation1] ss:$4 sm:$0xff] %v668_v24 }
  0x55   : > { %v677_v29 = vld.sshfl [vmem:[#allocation1 + $0x10] sm:$0xff pattern:$0x73625140]  ;;  %v673_v30 = vld.sshfl [vmem:[#allocation1] sm:$0xff pattern:$0x73625140] }
  0x56   : > { %683 = vrot.lane.b32.xlu1 %v677_v29, %s4272_s24  ;;  %v675_v31 = vld.sshfl [vmem:[#allocation1 + $0x8] sm:$0xff pattern:$0x73625140]  ;;  %609 = vrot.lane.b32.xlu2 %v603_v26, %s4271_s23 }
  0x57   : > { %681 = vrot.lane.b32.xlu0 %v675_v31, %s4272_s24  ;;  %746 = vst [vmem:[#allocation1] ss:$4 sm:$0xff] %v742_v28 }
  0x5e   : > { %v751_v33 = vld.sshfl [vmem:[#allocation1 + $0x10] sm:$0xff pattern:$0x73625140]  ;;  %v747_v34 = vld.sshfl [vmem:[#allocation1] sm:$0xff pattern:$0x73625140]  ;;  %679 = vrot.lane.b32.xlu2 %v673_v30, %s4272_s24 }
  0x5f   : > { %757 = vrot.lane.b32.xlu0 %v751_v33, %s4273_s25  ;;  %v749_v35 = vld.sshfl [vmem:[#allocation1 + $0x8] sm:$0xff pattern:$0x73625140]  ;;  %v4008_v30 = vld [vmem:[%s5194_s1 + $0x6] sm:$0x3] }
  0x60   : > { %755 = vrot.lane.b32.xlu1 %v749_v35, %s4273_s25  ;;  %820 = vst [vmem:[#allocation1] ss:$4 sm:$0xff] %v816_v32 }
  0x66   : > { %753 = vrot.lane.b32.xlu2 %v747_v34, %s4273_s25 }
  0x67   : > { %v823_v37 = vld.sshfl [vmem:[#allocation1 + $0x8] sm:$0xff pattern:$0x73625140]  ;;  %v821_v38 = vld.sshfl [vmem:[#allocation1] sm:$0xff pattern:$0x73625140] }
  0x68   : > { %829 = vrot.lane.b32.xlu1 %v823_v37, %s4274_s26  ;;  %827 = vrot.lane.b32.xlu0 %v821_v38, %s4274_s26  ;;  %v825_v39 = vld.sshfl [vmem:[#allocation1 + $0x10] sm:$0xff pattern:$0x73625140] }
  0x69   : > { %894 = vst [vmem:[#allocation1] ss:$4 sm:$0xff] %v890_v36 }
  0x70   : > { %831 = vrot.lane.b32.xlu1 %v825_v39, %s4274_s26  ;;  %v897_v41 = vld.sshfl [vmem:[#allocation1 + $0x8] sm:$0xff pattern:$0x73625140]  ;;  %v899_v42 = vld.sshfl [vmem:[#allocation1 + $0x10] sm:$0xff pattern:$0x73625140] }
  0x71   : > { %903 = vrot.lane.b32.xlu0 %v897_v41, %s4275_s27  ;;  %v895_v44 = vld.sshfl [vmem:[#allocation1] sm:$0xff pattern:$0x73625140]  ;;  %s4283_s26 = smov 80  }
  0x72   : > { %901 = vrot.lane.b32.xlu2 %v895_v44, %s4275_s27  ;;  %968 = vst [vmem:[#allocation1] ss:$4 sm:$0xff] %v964_v45 }
  0x79   : > { %v973_v46 = vld.sshfl [vmem:[#allocation1 + $0x10] sm:$0xff pattern:$0x73625140]  ;;  %v969_v47 = vld.sshfl [vmem:[#allocation1] sm:$0xff pattern:$0x73625140] }
  0x7a   : > { %905 = vrot.lane.b32.xlu2 %v899_v42, %s4275_s27  ;;  %979 = vrot.lane.b32.xlu1 %v973_v46, %s4276_s30  ;;  %v971_v48 = vld.sshfl [vmem:[#allocation1 + $0x8] sm:$0xff pattern:$0x73625140]  ;;  %s4310_s27 = smov 118  }
  0x7b   : > { %977 = vrot.lane.b32.xlu0 %v971_v48, %s4276_s30  ;;  %1042 = vst [vmem:[#allocation1] ss:$4 sm:$0xff] %v1038_v49  ;;  %v4448_v48 = vld [vmem:[%s5194_s1 + $0xa] sm:$0x3] }
  0x82   : > { %975 = vrot.lane.b32.xlu2 %v969_v47, %s4276_s30  ;;  %v1047_v51 = vld.sshfl [vmem:[#allocation1 + $0x10] sm:$0xff pattern:$0x73625140]  ;;  %v1043_v52 = vld.sshfl [vmem:[#allocation1] sm:$0xff pattern:$0x73625140] }
  0x83   : > { %1053 = vrot.lane.b32.xlu0 %v1047_v51, %s4277_s4  ;;  %v1045_v53 = vld.sshfl [vmem:[#allocation1 + $0x8] sm:$0xff pattern:$0x73625140] }
  0x84   : > { %v312_v50 = vpop.permute.xlu2 %311  ;;  %1051 = vrot.lane.b32.xlu1 %v1045_v53, %s4277_s4  ;;  %1116 = vst [vmem:[#allocation1] ss:$4 sm:$0xff] %v1112_v54  ;;  %v4012_v54 = vld [vmem:[%s5194_s1 + $0x8] sm:$0x3] }
  0x89   : > { %v189_v55 = vpop.permute.xlu0 %188 }
  0x8a   : > { %v205_v56 = vsel %vm197_vm0, %v189_v55, 0  ;;  %1049 = vrot.lane.b32.xlu2 %v1043_v52, %s4277_s4  ;;  %v185_v63 = vpop.permute.xlu1 %184 }
  0x8b   : > { %240 = vmatpush.bf16.msra.mxu2 %v205_v56  ;;  %v1117_v60 = vld.sshfl [vmem:[#allocation1] sm:$0xff pattern:$0x73625140]  ;;  %v1121_v62 = vld.sshfl [vmem:[#allocation1 + $0x10] sm:$0xff pattern:$0x73625140] }
  0x8c   : > { %v314_v58 = vpop.permute.xlu2 %313  ;;  %1123 = vrot.lane.b32.xlu0 %v1117_v60, %s4278_s7  ;;  %v1119_v0 = vld.sshfl [vmem:[#allocation1 + $0x8] sm:$0xff pattern:$0x73625140] }
  0x8d   : > { %v317_v59 = vsel %vm315_vm2, %v312_v50, %v314_v58  ;;  %1125 = vrot.lane.b32.xlu1 %v1119_v0, %s4278_s7  ;;  %1190 = vst [vmem:[#allocation1] ss:$4 sm:$0xff] %v4393_v1  ;;  %v328_v12 = vsel %vm197_vm0, %v314_v58, 0 }
  0x8e   : > { %4000 = vmatmul.msk.bf16.vlgmr.msra.gmra.mxu2 %vm193_vm1, %v3997_v57  ;;  %v325_v61 = vsel %vm197_vm0, %v317_v59, 0 }
  0x8f   : > { %350 = vmatpush.bf16.msrb.mxu3 %v325_v61 }
  0x91   : > { %v187_v2 = vpop.permute.xlu0 %186 }
  0x92   : > { %v191_v4 = vsel %vm190_vm3, %v185_v63, %v187_v2  ;;  %v192_v5 = vsel %vm190_vm3, %v187_v2, %v189_v55  ;;  %4006 = vmatmul.msk.bf16.vlgmr.msrb.gmra.mxu3 %vm193_vm1, %v4398_v3  ;;  %vm1365_vm3 = vcmask 670720  }
  0x93   : > { %v199_v10 = vsel %vm197_vm0, %v191_v4, 0  ;;  %v202_v11 = vsel %vm197_vm0, %v192_v5, 0 }
  0x94   : > { %214 = vmatpush.bf16.msra.mxu0 %v199_v10  ;;  %227 = vmatpush.bf16.msra.mxu1 %v202_v11  ;;  %v1193_v7 = vld.sshfl [vmem:[#allocation1 + $0x8] sm:$0xff pattern:$0x73625140]  ;;  %v1195_v6 = vld.sshfl [vmem:[#allocation1 + $0x10] sm:$0xff pattern:$0x73625140]  ;;  %v384_v18 = vpop.permute.xlu2 %383 }
  0x95   : > { %1127 = vrot.lane.b32.xlu1 %v1121_v62, %s4278_s7  ;;  %v1197_v13 = vld.sshfl [vmem:[#allocation1 + $0x18] sm:$0xff pattern:$0x73625140]  ;;  %1201 = vrot.lane.b32.xlu0 %v1193_v7, %s4279_s10  ;;  %v1191_v14 = vld.sshfl [vmem:[#allocation1] sm:$0xff pattern:$0x73625140] }
  0x96   : > { %1269 = vst [vmem:[#allocation1] ss:$4 sm:$0xff] %v4393_v1  ;;  %1199 = vrot.lane.b32.xlu2 %v1191_v14, %s4279_s10  ;;  %s4306_s7 = smov 12  }
  0x97   : > { %3998 = vmatmul.msk.bf16.vlgmr.msra.gmra.mxu0 %vm193_vm1, %v3997_v57  ;;  %3999 = vmatmul.msk.bf16.vlgmr.msra.gmra.mxu1 %vm193_vm1, %v3997_v57 }
  0x98   : > { %292 = vmatpush.bf16.msrb.mxu1 %v257_v8  ;;  %279 = vmatpush.bf16.msrb.mxu0 %v255_v9 }
  0x9b   : > { %v310_v15 = vpop.permute.xlu1 %309 }
  0x9c   : > { %363 = vmatpush.bf16.msra.mxu0 %v328_v12  ;;  %v316_v16 = vsel %vm315_vm2, %v310_v15, %v312_v50  ;;  %v458_v31 = vpop.permute.xlu2 %457  ;;  %vm1286_vm2 = vcmask 678912  }
  0x9d   : > { %v322_v17 = vsel %vm197_vm0, %v316_v16, 0  ;;  %v1272_v19 = vld.sshfl [vmem:[#allocation1 + $0x8] sm:$0xff pattern:$0x73625140] }
  0x9e   : > { %337 = vmatpush.bf16.msrb.mxu2 %v322_v17  ;;  %1280 = vrot.lane.b32.xlu0 %v1272_v19, %s4280_s11  ;;  %v1274_v20 = vld.sshfl [vmem:[#allocation1 + $0x10] sm:$0xff pattern:$0x73625140]  ;;  %v1270_v24 = vld.sshfl [vmem:[#allocation1] sm:$0xff pattern:$0x73625140] }
  0x9f   : > { %1203 = vrot.lane.b32.xlu2 %v1195_v6, %s4279_s10  ;;  %1282 = vrot.lane.b32.xlu1 %v1274_v20, %s4280_s11  ;;  %v1276_v29 = vld.sshfl [vmem:[#allocation1 + $0x18] sm:$0xff pattern:$0x73625140]  ;;  %v4477_v6 = vld [vmem:[%s5194_s1 + $0xc] sm:$0x3] }
  0xa0   : > { %1348 = vst [vmem:[#allocation1] ss:$4 sm:$0xff] %v4393_v1 }
  0xa1   : > { %4005 = vmatmul.msk.bf16.vlgmr.msrb.gmra.mxu2 %vm193_vm1, %v4398_v3 }
  0xa4   : > { %v388_v21 = vpop.permute.xlu1 %387 }
  0xa5   : > { %v386_v22 = vpop.permute.xlu0 %385  ;;  %v402_v23 = vsel %vm197_vm0, %v388_v21, 0 }
  0xa6   : > { %v391_v25 = vsel %vm389_vm4, %v386_v22, %v388_v21  ;;  %v390_v26 = vsel %vm389_vm4, %v384_v18, %v386_v22  ;;  %437 = vmatpush.bf16.msra.mxu3 %v402_v23  ;;  %1205 = vrot.lane.b32.xlu0 %v1197_v13, %s4279_s10  ;;  %vm1444_vm4 = vcmask 662528  }
  0xa7   : > { %4002 = vmatmul.msk.bf16.vlgmr.msrb.gmra.mxu0 %vm193_vm1, %v4378_v43  ;;  %4003 = vmatmul.msk.bf16.vlgmr.msrb.gmra.mxu1 %vm193_vm1, %v4378_v43  ;;  %v396_v27 = vsel %vm197_vm0, %v390_v26, 0  ;;  %v399_v28 = vsel %vm197_vm0, %v391_v25, 0  ;;  %v1355_v39 = vld.sshfl [vmem:[#allocation1 + $0x18] sm:$0xff pattern:$0x73625140] }
  0xa8   : > { %411 = vmatpush.bf16.msra.mxu1 %v396_v27  ;;  %424 = vmatpush.bf16.msra.mxu2 %v399_v28  ;;  %v1349_v40 = vld.sshfl [vmem:[#allocation1] sm:$0xff pattern:$0x73625140]  ;;  %v1353_v41 = vld.sshfl [vmem:[#allocation1 + $0x10] sm:$0xff pattern:$0x73625140]  ;;  %v606_v43 = vpop.permute.xlu2 %605 }
  0xa9   : > { %4011 = vmatmul.msk.bf16.vlgmr.msra.gmra.mxu3 %vm193_vm1, %v4008_v30  ;;  %1278 = vrot.lane.b32.xlu2 %v1270_v24, %s4280_s11  ;;  %v1351_v42 = vld.sshfl [vmem:[#allocation1 + $0x8] sm:$0xff pattern:$0x73625140] }
  0xaa   : > { %1284 = vrot.lane.b32.xlu1 %v1276_v29, %s4280_s11  ;;  %1427 = vst [vmem:[#allocation1] ss:$4 sm:$0xff] %v4393_v1  ;;  %s4287_s11 = smov 61  }
  0xad   : > { %v462_v32 = vpop.permute.xlu0 %461 }
  0xae   : > { %v460_v33 = vpop.permute.xlu1 %459  ;;  %v476_v34 = vsel %vm197_vm0, %v462_v32, 0  ;;  %1363 = vrot.lane.b32.xlu0 %v1355_v39, %s4281_s16 }
  0xaf   : > { %v465_v35 = vsel %vm463_vm5, %v460_v33, %v462_v32  ;;  %v464_v36 = vsel %vm463_vm5, %v458_v31, %v460_v33  ;;  %511 = vmatpush.bf16.msrb.mxu2 %v476_v34 }
  0xb0   : > { %v470_v37 = vsel %vm197_vm0, %v464_v36, 0  ;;  %v473_v38 = vsel %vm197_vm0, %v465_v35, 0  ;;  %v610_v53 = vpop.permute.xlu2 %609 }
  0xb1   : > { %4010 = vmatmul.msk.bf16.vlgmr.msra.gmra.mxu2 %vm193_vm1, %v4008_v30  ;;  %498 = vmatpush.bf16.msrb.mxu1 %v473_v38  ;;  %v1428_v49 = vld.sshfl [vmem:[#allocation1] sm:$0xff pattern:$0x73625140]  ;;  %v1432_v50 = vld.sshfl [vmem:[#allocation1 + $0x10] sm:$0xff pattern:$0x73625140] }
  0xb2   : > { %485 = vmatpush.bf16.msrb.mxu0 %v470_v37  ;;  %1359 = vrot.lane.b32.xlu1 %v1351_v42, %s4281_s16  ;;  %v1434_v51 = vld.sshfl [vmem:[#allocation1 + $0x18] sm:$0xff pattern:$0x73625140]  ;;  %v1430_v52 = vld.sshfl [vmem:[#allocation1 + $0x8] sm:$0xff pattern:$0x73625140] }
  0xb3   : > { %1361 = vrot.lane.b32.xlu2 %v1353_v41, %s4281_s16  ;;  %1506 = vst [vmem:[#allocation1] ss:$4 sm:$0xff] %v4393_v1 }
  0xb6   : > { %v534_v44 = vpop.permute.xlu1 %533  ;;  %v532_v45 = vpop.permute.xlu0 %531  ;;  %1436 = vrot.lane.b32.xlu0 %v1428_v49, %s4282_s20 }
  0xb7   : > { %4007 = vmatmul.msk.bf16.vlgmr.msra.gmra.mxu0 %vm193_vm1, %v4398_v3  ;;  %4009 = vmatmul.msk.bf16.vlgmr.msra.gmra.mxu1 %vm193_vm1, %v4008_v30  ;;  %v538_v46 = vsel %vm537_vm6, %v532_v45, %v534_v44  ;;  %v624_v3 = vsel %vm197_vm0, %v610_v53, 0  ;;  %v4024_v30 = vld [vmem:[%s5194_s1 + $0xe] sm:$0x3] }
  0xb8   : > { %v544_v47 = vsel %vm197_vm0, %v538_v46, 0  ;;  %v680_v4 = vpop.permute.xlu2 %679 }
  0xb9   : > { %559 = vmatpush.bf16.msrb.mxu3 %v544_v47  ;;  %v4515_v47 = vld [vmem:[%s5194_s1 + $0x12] sm:$0x3] }
  0xba   : > { %1438 = vrot.lane.b32.xlu1 %v1430_v52, %s4282_s20  ;;  %v1509_v0 = vld.sshfl [vmem:[#allocation1 + $0x8] sm:$0xff pattern:$0x73625140]  ;;  %v1507_v2 = vld.sshfl [vmem:[#allocation1] sm:$0xff pattern:$0x73625140] }
  0xbb   : > { %1357 = vrot.lane.b32.xlu2 %v1349_v40, %s4281_s16  ;;  %v1513_v5 = vld.sshfl [vmem:[#allocation1 + $0x18] sm:$0xff pattern:$0x73625140]  ;;  %v1511_v8 = vld.sshfl [vmem:[#allocation1 + $0x10] sm:$0xff pattern:$0x73625140] }
  0xbc   : > { %4017 = vmatmul.msk.bf16.vlgmr.msrb.gmra.mxu3 %vm193_vm1, %v4448_v48  ;;  %1585 = vst [vmem:[#allocation1] ss:$4 sm:$0xff] %v4393_v1  ;;  %s4288_s16 = smov 60  }
  0xbe   : > { %v536_v55 = vpop.permute.xlu1 %535  ;;  %1517 = vrot.lane.b32.xlu0 %v1509_v0, %s4283_s26  ;;  %v4532_v0 = vpop.f32.mrf.mxu3 }
  0xbf   : > { %v539_v56 = vsel %vm537_vm6, %v534_v44, %v536_v55  ;;  %v608_v57 = vpop.permute.xlu0 %607  ;;  %v550_v58 = vsel %vm197_vm0, %v536_v55, 0 }
  0xc0   : > { %v547_v59 = vsel %vm197_vm0, %v539_v56, 0  ;;  %v612_v60 = vsel %vm611_vm7, %v606_v43, %v608_v57  ;;  %v613_v61 = vsel %vm611_vm7, %v608_v57, %v610_v53  ;;  %585 = vmatpush.bf16.msra.mxu1 %v550_v58  ;;  %v754_v15 = vpop.permute.xlu2 %753  ;;  %v4028_v53 = vld [vmem:[%s5194_s1 + $0x10] sm:$0x3] }
  0xc1   : > { %4015 = vmatmul.msk.bf16.vlgmr.msrb.gmra.mxu2 %vm193_vm1, %v4012_v54  ;;  %572 = vmatpush.bf16.msra.mxu0 %v547_v59  ;;  %v618_v62 = vsel %vm197_vm0, %v612_v60, 0  ;;  %v621_v63 = vsel %vm197_vm0, %v613_v61, 0 }
  0xc2   : > { %633 = vmatpush.bf16.msra.mxu2 %v618_v62  ;;  %646 = vmatpush.bf16.msra.mxu3 %v621_v63 }
  0xc3   : > { %1440 = vrot.lane.b32.xlu1 %v1432_v50, %s4282_s20  ;;  %1515 = vrot.lane.b32.xlu2 %v1507_v2, %s4283_s26  ;;  %v1588_v16 = vld.sshfl [vmem:[#allocation1 + $0x8] sm:$0xff pattern:$0x73625140]  ;;  %v1590_v17 = vld.sshfl [vmem:[#allocation1 + $0x10] sm:$0xff pattern:$0x73625140] }
  0xc4   : > { %v1592_v18 = vld.sshfl [vmem:[#allocation1 + $0x18] sm:$0xff pattern:$0x73625140]  ;;  %v1586_v20 = vld.sshfl [vmem:[#allocation1] sm:$0xff pattern:$0x73625140] }
  0xc5   : > { %1664 = vst [vmem:[#allocation1] ss:$4 sm:$0xff] %v4393_v1 }
  0xc6   : > { %1519 = vrot.lane.b32.xlu0 %v1511_v8, %s4283_s26 }
  0xc7   : > { %4013 = vmatmul.msk.bf16.vlgmr.msrb.gmra.mxu0 %vm193_vm1, %v4012_v54  ;;  %4014 = vmatmul.msk.bf16.vlgmr.msrb.gmra.mxu1 %vm193_vm1, %v4012_v54 }
  0xc8   : > { %659 = vmatpush.bf16.msrb.mxu0 %v624_v3  ;;  %v684_v9 = vpop.permute.xlu1 %683 }
  0xc9   : > { %v682_v10 = vpop.permute.xlu0 %681  ;;  %v698_v11 = vsel %vm197_vm0, %v684_v9, 0 }
  0xca   : > { %v687_v12 = vsel %vm685_vm8, %v682_v10, %v684_v9  ;;  %v686_v7 = vsel %vm685_vm8, %v680_v4, %v682_v10  ;;  %733 = vmatpush.bf16.msrb.mxu3 %v698_v11  ;;  %v4543_v9 = vld [vmem:[%s5194_s1 + $0x14] sm:$0x3]  ;;  %v270_v10 = vpop.f32.mrf.mxu3  ;;  %vm1523_vm8 = vcmask 654336  }
  0xcb   : > { %v692_v13 = vsel %vm197_vm0, %v686_v7, 0  ;;  %v695_v14 = vsel %vm197_vm0, %v687_v12, 0  ;;  %1442 = vrot.lane.b32.xlu2 %v1434_v51, %s4282_s20  ;;  %1596 = vrot.lane.b32.xlu1 %v1588_v16, %s4284_s29  ;;  %s4289_s20 = smov 59  }
  0xcc   : > { %4022 = vmatmul.msk.bf16.vlgmr.msra.gmra.mxu3 %vm193_vm1, %v4477_v6  ;;  %707 = vmatpush.bf16.msrb.mxu1 %v692_v13  ;;  %v902_v27 = vpop.permute.xlu2 %901  ;;  %v1671_v34 = vld.sshfl [vmem:[#allocation1 + $0x18] sm:$0xff pattern:$0x73625140]  ;;  %v1667_v36 = vld.sshfl [vmem:[#allocation1 + $0x8] sm:$0xff pattern:$0x73625140] }
  0xcd   : > { %720 = vmatpush.bf16.msrb.mxu2 %v695_v14  ;;  %v1669_v37 = vld.sshfl [vmem:[#allocation1 + $0x10] sm:$0xff pattern:$0x73625140]  ;;  %v1665_v42 = vld.sshfl [vmem:[#allocation1] sm:$0xff pattern:$0x73625140] }
  0xce   : > { %1594 = vrot.lane.b32.xlu0 %v1586_v20, %s4284_s29  ;;  %1743 = vst [vmem:[#allocation1] ss:$4 sm:$0xff] %v4393_v1 }
  0xd1   : > { %4021 = vmatmul.msk.bf16.vlgmr.msra.gmra.mxu2 %vm193_vm1, %v4477_v6  ;;  %v758_v19 = vpop.permute.xlu0 %757 }
  0xd2   : > { %v756_v21 = vpop.permute.xlu1 %755  ;;  %v772_v22 = vsel %vm197_vm0, %v758_v19, 0 }
  0xd3   : > { %v761_v23 = vsel %vm759_vm9, %v756_v21, %v758_v19  ;;  %v760_v24 = vsel %vm759_vm9, %v754_v15, %v756_v21  ;;  %807 = vmatpush.bf16.msra.mxu2 %v772_v22  ;;  %1598 = vrot.lane.b32.xlu2 %v1590_v17, %s4284_s29  ;;  %vm1602_vm9 = vcmask 646144  }
  0xd4   : > { %v766_v25 = vsel %vm197_vm0, %v760_v24, 0  ;;  %v769_v26 = vsel %vm197_vm0, %v761_v23, 0  ;;  %1521 = vrot.lane.b32.xlu1 %v1513_v5, %s4283_s26  ;;  %v906_v33 = vpop.permute.xlu2 %905  ;;  %v4040_v24 = vld [vmem:[%s5194_s1 + $0x16] sm:$0x3]  ;;  %s4297_s26 = smov 36  }
  0xd5   : > { %v1746_v49 = vld.sshfl [vmem:[#allocation1 + $0x8] sm:$0xff pattern:$0x73625140]  ;;  %v1748_v50 = vld.sshfl [vmem:[#allocation1 + $0x10] sm:$0xff pattern:$0x73625140] }
  0xd6   : > { %1677 = vrot.lane.b32.xlu0 %v1669_v37, %s4285_s5  ;;  %v1750_v51 = vld.sshfl [vmem:[#allocation1 + $0x18] sm:$0xff pattern:$0x73625140]  ;;  %v920_v60 = vsel %vm197_vm0, %v906_v33, 0 }
  0xd7   : > { %4018 = vmatmul.msk.bf16.vlgmr.msra.gmra.mxu0 %vm193_vm1, %v4448_v48  ;;  %4019 = vmatmul.msk.bf16.vlgmr.msra.gmra.mxu1 %vm193_vm1, %v4448_v48  ;;  %v1744_v48 = vld.sshfl [vmem:[#allocation1] sm:$0xff pattern:$0x73625140] }
  0xd8   : > { %794 = vmatpush.bf16.msra.mxu1 %v769_v26  ;;  %781 = vmatpush.bf16.msra.mxu0 %v766_v25  ;;  %1822 = vst [vmem:[#allocation1] ss:$4 sm:$0xff] %v4393_v1 }
  0xda   : > { %v830_v28 = vpop.permute.xlu1 %829  ;;  %v828_v29 = vpop.permute.xlu0 %827 }
  0xdb   : > { %v834_v31 = vsel %vm833_vm10, %v828_v29, %v830_v28  ;;  %1600 = vrot.lane.b32.xlu2 %v1592_v18, %s4284_s29  ;;  %s4291_s29 = smov 57  }
  0xdc   : > { %4027 = vmatmul.msk.bf16.vlgmr.msrb.gmra.mxu3 %vm193_vm1, %v4024_v30  ;;  %v840_v32 = vsel %vm197_vm0, %v834_v31, 0  ;;  %1679 = vrot.lane.b32.xlu1 %v1671_v34, %s4285_s5  ;;  %v976_v56 = vpop.permute.xlu2 %975 }
  0xdd   : > { %855 = vmatpush.bf16.msra.mxu3 %v840_v32 }
  0xde   : > { %1673 = vrot.lane.b32.xlu0 %v1665_v42, %s4285_s5 }
  0xdf   : > { %v1825_v62 = vld.sshfl [vmem:[#allocation1 + $0x8] sm:$0xff pattern:$0x73625140]  ;;  %v1829_v63 = vld.sshfl [vmem:[#allocation1 + $0x18] sm:$0xff pattern:$0x73625140] }
  0xe0   : > { %v1823_v2 = vld.sshfl [vmem:[#allocation1] sm:$0xff pattern:$0x73625140]  ;;  %v1827_v4 = vld.sshfl [vmem:[#allocation1 + $0x10] sm:$0xff pattern:$0x73625140] }
  0xe1   : > { %4026 = vmatmul.msk.bf16.vlgmr.msrb.gmra.mxu2 %vm193_vm1, %v4024_v30  ;;  %1901 = vst [vmem:[#allocation1] ss:$4 sm:$0xff] %v4393_v1 }
  0xe2   : > { %v832_v35 = vpop.permute.xlu1 %831 }
  0xe3   : > { %v835_v38 = vsel %vm833_vm10, %v830_v28, %v832_v35  ;;  %v904_v39 = vpop.permute.xlu0 %903  ;;  %v846_v44 = vsel %vm197_vm0, %v832_v35, 0  ;;  %1675 = vrot.lane.b32.xlu2 %v1667_v36, %s4285_s5  ;;  %s4292_s5 = smov 56   ;;  %vm1681_vm10 = vcmask 637952  }
  0xe4   : > { %v908_v40 = vsel %vm907_vm11, %v902_v27, %v904_v39  ;;  %v909_v41 = vsel %vm907_vm11, %v904_v39, %v906_v33  ;;  %v843_v43 = vsel %vm197_vm0, %v835_v38, 0  ;;  %1752 = vrot.lane.b32.xlu1 %v1744_v48, %s4286_s8  ;;  %v1050_v5 = vpop.permute.xlu2 %1049  ;;  %vm1760_vm11 = vcmask 506880  }
  0xe5   : > { %v914_v45 = vsel %vm197_vm0, %v908_v40, 0  ;;  %v917_v46 = vsel %vm197_vm0, %v909_v41, 0 }
  0xe6   : > { %929 = vmatpush.bf16.msrb.mxu2 %v914_v45  ;;  %942 = vmatpush.bf16.msrb.mxu3 %v917_v46  ;;  %v4588_v46 = vld [vmem:[%s5194_s1 + $0x1a] sm:$0x3] }
  0xe7   : > { %4023 = vmatmul.msk.bf16.vlgmr.msrb.gmra.mxu0 %vm193_vm1, %v4477_v6  ;;  %4025 = vmatmul.msk.bf16.vlgmr.msrb.gmra.mxu1 %vm193_vm1, %v4024_v30 }
  0xe8   : > { %868 = vmatpush.bf16.msrb.mxu0 %v843_v43  ;;  %881 = vmatpush.bf16.msrb.mxu1 %v846_v44  ;;  %v1904_v7 = vld.sshfl [vmem:[#allocation1 + $0x8] sm:$0xff pattern:$0x73625140]  ;;  %v1906_v20 = vld.sshfl [vmem:[#allocation1 + $0x10] sm:$0xff pattern:$0x73625140] }
  0xe9   : > { %1831 = vrot.lane.b32.xlu0 %v1823_v2, %s4287_s11  ;;  %v1902_v21 = vld.sshfl [vmem:[#allocation1] sm:$0xff pattern:$0x73625140]  ;;  %v1908_v22 = vld.sshfl [vmem:[#allocation1 + $0x18] sm:$0xff pattern:$0x73625140] }
  0xea   : > { %1980 = vst [vmem:[#allocation1] ss:$4 sm:$0xff] %v4393_v1 }
  0xeb   : > { %1754 = vrot.lane.b32.xlu2 %v1746_v49, %s4286_s8 }
  0xec   : > { %4033 = vmatmul.msk.bf16.vlgmr.msra.gmra.mxu3 %vm193_vm1, %v4515_v47  ;;  %v980_v52 = vpop.permute.xlu1 %979  ;;  %1833 = vrot.lane.b32.xlu1 %v1825_v62, %s4287_s11 }
  0xed   : > { %v994_v54 = vsel %vm197_vm0, %v980_v52, 0  ;;  %v978_v55 = vpop.permute.xlu0 %977 }
  0xee   : > { %v983_v57 = vsel %vm981_vm12, %v978_v55, %v980_v52  ;;  %1029 = vmatpush.bf16.msra.mxu3 %v994_v54  ;;  %v982_v59 = vsel %vm981_vm12, %v976_v56, %v978_v55  ;;  %vm1839_vm12 = vcmask 498688  }
  0xef   : > { %v991_v58 = vsel %vm197_vm0, %v983_v57, 0  ;;  %v988_v61 = vsel %vm197_vm0, %v982_v59, 0  ;;  %v4044_v57 = vld [vmem:[%s5194_s1 + $0x18] sm:$0x3] }
  0xf0   : > { %v1200_v6 = vpop.permute.xlu2 %1199 }
  0xf1   : > { %4031 = vmatmul.msk.bf16.vlgmr.msra.gmra.mxu2 %vm193_vm1, %v4028_v53  ;;  %1758 = vrot.lane.b32.xlu0 %v1750_v51, %s4286_s8  ;;  %v1985_v32 = vld.sshfl [vmem:[#allocation1 + $0x10] sm:$0xff pattern:$0x73625140]  ;;  %v1987_v34 = vld.sshfl [vmem:[#allocation1 + $0x18] sm:$0xff pattern:$0x73625140] }
  0xf2   : > { %1016 = vmatpush.bf16.msra.mxu2 %v991_v58  ;;  %v1983_v37 = vld.sshfl [vmem:[#allocation1 + $0x8] sm:$0xff pattern:$0x73625140]  ;;  %v1981_v38 = vld.sshfl [vmem:[#allocation1] sm:$0xff pattern:$0x73625140] }
  0xf3   : > { %1756 = vrot.lane.b32.xlu2 %v1748_v50, %s4286_s8  ;;  %2059 = vst [vmem:[#allocation1] ss:$4 sm:$0xff] %v4393_v1  ;;  %s4293_s8 = smov 40  }
  0xf4   : > { %1835 = vrot.lane.b32.xlu1 %v1827_v4, %s4287_s11 }
  0xf5   : > { %v1054_v3 = vpop.permute.xlu0 %1053 }
  0xf6   : > { %v1052_v8 = vpop.permute.xlu1 %1051  ;;  %v1068_v11 = vsel %vm197_vm0, %v1054_v3, 0 }
  0xf7   : > { %4029 = vmatmul.msk.bf16.vlgmr.msra.gmra.mxu0 %vm193_vm1, %v4028_v53  ;;  %4030 = vmatmul.msk.bf16.vlgmr.msra.gmra.mxu1 %vm193_vm1, %v4028_v53  ;;  %v1057_v13 = vsel %vm1055_vm13, %v1052_v8, %v1054_v3  ;;  %v1056_v14 = vsel %vm1055_vm13, %v1050_v5, %v1052_v8  ;;  %vm1918_vm13 = vcmask 490496  }
  0xf8   : > { %955 = vmatpush.bf16.msra.mxu0 %v920_v60  ;;  %1003 = vmatpush.bf16.msra.mxu1 %v988_v61  ;;  %v1065_v18 = vsel %vm197_vm0, %v1057_v13, 0  ;;  %v1062_v19 = vsel %vm197_vm0, %v1056_v14, 0 }
  0xf9   : > { %1914 = vrot.lane.b32.xlu0 %v1906_v20, %s4288_s16  ;;  %v1204_v23 = vpop.permute.xlu2 %1203 }
  0xfa   : > { %v2062_v51 = vld.sshfl [vmem:[#allocation1 + $0x8] sm:$0xff pattern:$0x73625140]  ;;  %v2064_v52 = vld.sshfl [vmem:[#allocation1 + $0x10] sm:$0xff pattern:$0x73625140] }
  0xfb   : > { %1912 = vrot.lane.b32.xlu2 %v1904_v7, %s4288_s16  ;;  %v2066_v55 = vld.sshfl [vmem:[#allocation1 + $0x18] sm:$0xff pattern:$0x73625140]  ;;  %v2060_v56 = vld.sshfl [vmem:[#allocation1] sm:$0xff pattern:$0x73625140] }
  0xfc   : > { %4038 = vmatmul.msk.bf16.vlgmr.msrb.gmra.mxu3 %vm193_vm1, %v4543_v9  ;;  %1910 = vrot.lane.b32.xlu1 %v1902_v21, %s4288_s16  ;;  %2138 = vst [vmem:[#allocation1] ss:$4 sm:$0xff] %v4393_v1 }
  0xfe   : > { %v1124_v12 = vpop.permute.xlu0 %1123 }
  0xff   : > { %v1126_v15 = vpop.permute.xlu1 %1125 }
 0x100   : > { %v1130_v16 = vsel %vm1129_vm14, %v1124_v12, %v1126_v15 }
 0x101   : > { %4037 = vmatmul.msk.bf16.vlgmr.msrb.gmra.mxu2 %vm193_vm1, %v4543_v9  ;;  %v1136_v17 = vsel %vm197_vm0, %v1130_v16, 0  ;;  %1916 = vrot.lane.b32.xlu0 %v1908_v22, %s4288_s16  ;;  %s4295_s16 = smov 38  }
 0x102   : > { %1103 = vmatpush.bf16.msrb.mxu2 %v1068_v11  ;;  %1151 = vmatpush.bf16.msrb.mxu3 %v1136_v17 }
 0x103   : > { %1837 = vrot.lane.b32.xlu2 %v1829_v63, %s4287_s11  ;;  %v2139_v11 = vld.sshfl [vmem:[#allocation1] sm:$0xff pattern:$0x73625140]  ;;  %v2141_v12 = vld.sshfl [vmem:[#allocation1 + $0x8] sm:$0xff pattern:$0x73625140] }
 0x104   : > { %1993 = vrot.lane.b32.xlu1 %v1985_v32, %s4289_s20  ;;  %v2143_v13 = vld.sshfl [vmem:[#allocation1 + $0x10] sm:$0xff pattern:$0x73625140]  ;;  %v2145_v14 = vld.sshfl [vmem:[#allocation1 + $0x18] sm:$0xff pattern:$0x73625140] }
 0x105   : > { %2217 = vst [vmem:[#allocation1] ss:$4 sm:$0xff] %v4393_v1  ;;  %s4294_s11 = smov 39  }
 0x107   : > { %4034 = vmatmul.msk.bf16.vlgmr.msrb.gmra.mxu0 %vm193_vm1, %v4515_v47  ;;  %4035 = vmatmul.msk.bf16.vlgmr.msrb.gmra.mxu1 %vm193_vm1, %v4515_v47  ;;  %v1202_v25 = vpop.permute.xlu0 %1201  ;;  %v1128_v29 = vpop.permute.xlu1 %1127 }
 0x108   : > { %1090 = vmatpush.bf16.msrb.mxu1 %v1065_v18  ;;  %1077 = vmatpush.bf16.msrb.mxu0 %v1062_v19  ;;  %v1208_v26 = vsel %vm1207_vm15, %v1200_v6, %v1202_v25  ;;  %v1209_v27 = vsel %vm1207_vm15, %v1202_v25, %v1204_v23  ;;  %v1131_v33 = vsel %vm1129_vm14, %v1126_v15, %v1128_v29  ;;  %v1142_v41 = vsel %vm197_vm0, %v1128_v29, 0  ;;  %v1279_v47 = vpop.permute.xlu2 %1278  ;;  %v4617_v18 = vld [vmem:[%s5194_s1 + $0x1c] sm:$0x3] }
 0x109   : > { %v1218_v28 = vsel %vm197_vm0, %v1209_v27, 0  ;;  %v1215_v30 = vsel %vm197_vm0, %v1208_v26, 0  ;;  %v1139_v40 = vsel %vm197_vm0, %v1131_v33, 0  ;;  %1991 = vrot.lane.b32.xlu0 %v1983_v37, %s4289_s20  ;;  %vm1997_vm14 = vcmask 482304  }
 0x10b   : > { %1995 = vrot.lane.b32.xlu2 %v1987_v34, %s4289_s20 }
 0x10c   : > { %4043 = vmatmul.msk.bf16.vlgmr.msra.gmra.mxu3 %vm193_vm1, %v4040_v24  ;;  %1989 = vrot.lane.b32.xlu1 %v1981_v38, %s4289_s20  ;;  %v2220_v25 = vld.sshfl [vmem:[#allocation1 + $0x8] sm:$0xff pattern:$0x73625140]  ;;  %v2222_v33 = vld.sshfl [vmem:[#allocation1 + $0x10] sm:$0xff pattern:$0x73625140] }
 0x10d   : > { %1243 = vmatpush.bf16.msra.mxu3 %v1218_v28  ;;  %s4296_s20 = smov 37  }
 0x110   : > { %v1281_v43 = vpop.permute.xlu0 %1280 }
 0x111   : > { %4042 = vmatmul.msk.bf16.vlgmr.msra.gmra.mxu2 %vm193_vm1, %v4040_v24  ;;  %v4574_v31 = vpop.f32.mrf.mxu2  ;;  %v1283_v44 = vpop.permute.xlu1 %1282  ;;  %v1287_v63 = vsel %vm1286_vm2, %v1279_v47, %v1281_v43  ;;  %2070 = vrot.lane.b32.xlu0 %v2062_v51, %s4290_s28  ;;  %v2224_v47 = vld.sshfl [vmem:[#allocation1 + $0x18] sm:$0xff pattern:$0x73625140] }
 0x112   : > { %1230 = vmatpush.bf16.msra.mxu2 %v1215_v30  ;;  %v1288_v50 = vsel %vm1286_vm2, %v1281_v43, %v1283_v44  ;;  %v1294_v5 = vsel %vm197_vm0, %v1287_v63, 0 }
 0x113   : > { %2068 = vrot.lane.b32.xlu2 %v2060_v56, %s4290_s28  ;;  %v1297_v59 = vsel %vm197_vm0, %v1288_v50, 0  ;;  %v4056_v50 = vld [vmem:[%s5194_s1 + $0x1e] sm:$0x3] }
 0x114   : > { %v216_v35 = vpop.f32.mrf.mxu0  ;;  %v229_v36 = vpop.f32.mrf.mxu1  ;;  %2147 = vrot.lane.b32.xlu1 %v2139_v11, %s4291_s29 }
 0x115   : > { %v269_v39 = vadd.f32 %v4532_v0, %v216_v35  ;;  %v352_v42 = vpop.f32.mrf.mxu3  ;;  %v1362_v0 = vpop.permute.xlu2 %1361 }
 0x117   : > { %4039 = vmatmul.msk.bf16.vlgmr.msra.gmra.mxu0 %vm193_vm1, %v4543_v9  ;;  %4041 = vmatmul.msk.bf16.vlgmr.msra.gmra.mxu1 %vm193_vm1, %v4040_v24 }
 0x118   : > { %1164 = vmatpush.bf16.msra.mxu0 %v1139_v40  ;;  %1177 = vmatpush.bf16.msra.mxu1 %v1142_v41  ;;  %v1206_v54 = vpop.permute.xlu0 %1205 }
 0x119   : > { %v244_v45 = vpop.f32.mrf.mxu2  ;;  %v1210_v62 = vsel %vm1207_vm15, %v1204_v23, %v1206_v54  ;;  %2072 = vrot.lane.b32.xlu0 %v2064_v52, %s4290_s28  ;;  %vm2076_vm15 = vcmask 474112  }
 0x11a   : > { %v1221_v4 = vsel %vm197_vm0, %v1210_v62, 0 }
 0x11b   : > { %2149 = vrot.lane.b32.xlu2 %v2141_v12, %s4291_s29 }
 0x11c   : > { %v218_v48 = vpop.f32.mrf.mxu0  ;;  %v231_v49 = vpop.f32.mrf.mxu1  ;;  %4049 = vmatmul.msk.bf16.vlgmr.msrb.gmra.mxu3 %vm193_vm1, %v4588_v46  ;;  %2074 = vrot.lane.b32.xlu1 %v2066_v55, %s4290_s28 }
 0x11d   : > { %v354_v53 = vpop.f32.mrf.mxu3  ;;  %v1285_v58 = vpop.permute.xlu1 %1284 }
 0x11e   : > { %v1289_v60 = vsel %vm1286_vm2, %v1283_v44, %v1285_v58  ;;  %v1358_v17 = vpop.permute.xlu2 %1357  ;;  %vm2155_vm2 = vcmask 465920  }
 0x11f   : > { %v1300_v61 = vsel %vm197_vm0, %v1289_v60, 0 }
 0x120   : > { %1335 = vmatpush.bf16.msrb.mxu3 %v1300_v61  ;;  %v1364_v7 = vpop.permute.xlu0 %1363 }
 0x121   : > { %4047 = vmatmul.msk.bf16.vlgmr.msrb.gmra.mxu2 %vm193_vm1, %v4044_v57  ;;  %v1368_v21 = vsel %vm1365_vm3, %v1362_v0, %v1364_v7  ;;  %2228 = vrot.lane.b32.xlu0 %v2220_v25, %s4292_s5 }
 0x122   : > { %1322 = vmatpush.bf16.msrb.mxu2 %v1297_v59  ;;  %v1379_v27 = vsel %vm197_vm0, %v1368_v21, 0 }
 0x123   : > { %2151 = vrot.lane.b32.xlu2 %v2143_v13, %s4291_s29 }
 0x124   : > { %v339_v2 = vpop.f32.mrf.mxu2  ;;  %v281_v3 = vpop.f32.mrf.mxu0  ;;  %2230 = vrot.lane.b32.xlu1 %v2222_v33, %s4292_s5 }
 0x125   : > { %v369_v8 = vadd.f32 %v339_v2, %v269_v39  ;;  %v282_v9 = vadd.f32 %v281_v3, %v229_v36  ;;  %v294_v10 = vpop.f32.mrf.mxu1  ;;  %v1360_v15 = vpop.permute.xlu1 %1359 }
 0x126   : > { %v295_v6 = vadd.f32 %v294_v10, %v4574_v31  ;;  %v1516_v30 = vpop.permute.xlu2 %1515  ;;  %v1367_v31 = vsel %vm1365_vm3, %v1360_v15, %v1362_v0  ;;  %v1366_v32 = vsel %vm1365_vm3, %v1358_v17, %v1360_v15  ;;  %vm2234_vm3 = vcmask 457728  }
 0x127   : > { %v370_v16 = vadd.f32 %v352_v42, %v282_v9  ;;  %4045 = vmatmul.msk.bf16.vlgmr.msrb.gmra.mxu0 %vm193_vm1, %v4044_v57  ;;  %4046 = vmatmul.msk.bf16.vlgmr.msrb.gmra.mxu1 %vm193_vm1, %v4044_v57  ;;  %v1376_v40 = vsel %vm197_vm0, %v1367_v31, 0  ;;  %v1373_v41 = vsel %vm197_vm0, %v1366_v32, 0  ;;  %v2218_v42 = vld.sshfl [vmem:[#allocation1] sm:$0xff pattern:$0x73625140] }
 0x128   : > { %1256 = vmatpush.bf16.msrb.mxu0 %v1221_v4  ;;  %1309 = vmatpush.bf16.msrb.mxu1 %v1294_v5  ;;  %v1437_v24 = vpop.permute.xlu0 %1436  ;;  %2296 = vst [vmem:[#allocation1] ss:$4 sm:$0xff] %v4393_v1 }
 0x129   : > { %2153 = vrot.lane.b32.xlu0 %v2145_v14, %s4291_s29  ;;  %v4663_v14 = vld [vmem:[%s5194_s1 + $0x22] sm:$0x3]  ;;  %s4298_s29 = smov 35  }
 0x12b   : > { %2226 = vrot.lane.b32.xlu2 %v2218_v42, %s4292_s5 }
 0x12c   : > { %v341_v19 = vpop.f32.mrf.mxu2  ;;  %v283_v20 = vpop.f32.mrf.mxu0  ;;  %4054 = vmatmul.msk.bf16.vlgmr.msra.gmra.mxu3 %vm193_vm1, %v4617_v18  ;;  %2232 = vrot.lane.b32.xlu1 %v2224_v47, %s4292_s5  ;;  %s4299_s5 = smov 34  }
 0x12d   : > { %v296_v22 = vpop.f32.mrf.mxu1  ;;  %v439_v23 = vpop.f32.mrf.mxu3 }
 0x12e   : > { %v1439_v26 = vpop.permute.xlu1 %1438  ;;  %v1443_v49 = vpop.permute.xlu2 %1442 }
 0x12f   : > { %v1445_v28 = vsel %vm1444_vm4, %v1437_v24, %v1439_v26  ;;  %v2303_v59 = vld.sshfl [vmem:[#allocation1 + $0x18] sm:$0xff pattern:$0x73625140]  ;;  %v2297_v63 = vld.sshfl [vmem:[#allocation1] sm:$0xff pattern:$0x73625140] }
 0x130   : > { %v1452_v29 = vsel %vm197_vm0, %v1445_v28, 0  ;;  %v1518_v44 = vpop.permute.xlu0 %1517  ;;  %v2301_v0 = vld.sshfl [vmem:[#allocation1 + $0x10] sm:$0xff pattern:$0x73625140] }
 0x131   : > { %4053 = vmatmul.msk.bf16.vlgmr.msra.gmra.mxu2 %vm193_vm1, %v4617_v18  ;;  %1467 = vmatpush.bf16.msra.mxu3 %v1452_v29  ;;  %v2299_v5 = vld.sshfl [vmem:[#allocation1 + $0x8] sm:$0xff pattern:$0x73625140] }
 0x132   : > { %1414 = vmatpush.bf16.msra.mxu2 %v1379_v27  ;;  %2311 = vrot.lane.b32.xlu0 %v2303_v59, %s4293_s8  ;;  %2375 = vst [vmem:[#allocation1] ss:$4 sm:$0xff] %v4393_v1 }
 0x133   : > { %2309 = vrot.lane.b32.xlu2 %v2301_v0, %s4293_s8 }
 0x134   : > { %v426_v34 = vpop.f32.mrf.mxu2  ;;  %v365_v35 = vpop.f32.mrf.mxu0  ;;  %2307 = vrot.lane.b32.xlu1 %v2299_v5, %s4293_s8 }
 0x135   : > { %v444_v36 = vadd.f32 %v426_v34, %v370_v16  ;;  %v371_v37 = vadd.f32 %v365_v35, %v295_v6  ;;  %v413_v38 = vpop.f32.mrf.mxu1  ;;  %v441_v39 = vpop.f32.mrf.mxu3 }
 0x136   : > { %v443_v43 = vadd.f32 %v413_v38, %v369_v8  ;;  %v1441_v48 = vpop.permute.xlu1 %1440  ;;  %v1599_v60 = vpop.permute.xlu2 %1598 }
 0x137   : > { %v445_v45 = vadd.f32 %v439_v23, %v371_v37  ;;  %4050 = vmatmul.msk.bf16.vlgmr.msra.gmra.mxu0 %vm193_vm1, %v4588_v46  ;;  %4051 = vmatmul.msk.bf16.vlgmr.msra.gmra.mxu1 %vm193_vm1, %v4588_v46  ;;  %v1524_v46 = vsel %vm1523_vm8, %v1516_v30, %v1518_v44  ;;  %v1446_v61 = vsel %vm1444_vm4, %v1439_v26, %v1441_v48  ;;  %v4060_v26 = vld [vmem:[%s5194_s1 + $0x20] sm:$0x3] }
 0x138   : > { %1401 = vmatpush.bf16.msra.mxu1 %v1376_v40  ;;  %1388 = vmatpush.bf16.msra.mxu0 %v1373_v41  ;;  %v1531_v55 = vsel %vm197_vm0, %v1524_v46, 0  ;;  %v1520_v56 = vpop.permute.xlu0 %1519  ;;  %v1447_v62 = vsel %vm1444_vm4, %v1441_v48, %v1443_v49  ;;  %v1455_v11 = vsel %vm197_vm0, %v1446_v61, 0  ;;  %vm2313_vm4 = vcmask 326656  }
 0x139   : > { %v1525_v57 = vsel %vm1523_vm8, %v1518_v44, %v1520_v56  ;;  %v1458_v12 = vsel %vm197_vm0, %v1447_v62, 0  ;;  %v2376_v21 = vld.sshfl [vmem:[#allocation1] sm:$0xff pattern:$0x73625140] }
 0x13a   : > { %v1534_v58 = vsel %vm197_vm0, %v1525_v57, 0  ;;  %v2380_v22 = vld.sshfl [vmem:[#allocation1 + $0x10] sm:$0xff pattern:$0x73625140]  ;;  %2384 = vrot.lane.b32.xlu0 %v2376_v21, %s4294_s11 }
 0x13b   : > { %2305 = vrot.lane.b32.xlu2 %v2297_v63, %s4293_s8  ;;  %v4670_v25 = vld.sshfl [vmem:[#allocation1 + $0x18] sm:$0xff pattern:$0x73625140]  ;;  %v2378_v27 = vld.sshfl [vmem:[#allocation1 + $0x8] sm:$0xff pattern:$0x73625140] }
 0x13c   : > { %v428_v51 = vpop.f32.mrf.mxu2  ;;  %v367_v52 = vpop.f32.mrf.mxu0  ;;  %4059 = vmatmul.msk.bf16.vlgmr.msrb.gmra.mxu3 %vm193_vm1, %v4056_v50  ;;  %2386 = vrot.lane.b32.xlu1 %v2378_v27, %s4294_s11  ;;  %2454 = vst [vmem:[#allocation1] ss:$4 sm:$0xff] %v4393_v1  ;;  %s4300_s8 = smov 18  }
 0x13d   : > { %v415_v53 = vpop.f32.mrf.mxu1  ;;  %1559 = vmatpush.bf16.msrb.mxu3 %v1534_v58  ;;  %v4698_v51 = vld [vmem:[%s5194_s1 + $0x24] sm:$0x3] }
 0x13e   : > { %v1597_v2 = vpop.permute.xlu1 %1596  ;;  %v1601_v15 = vpop.permute.xlu2 %1600 }
 0x13f   : > { %v561_v54 = vpop.f32.mrf.mxu3  ;;  %v1605_v16 = vsel %vm1602_vm9, %v1599_v60, %v1601_v15 }
 0x140   : > { %v1616_v17 = vsel %vm197_vm0, %v1605_v16, 0  ;;  %v1595_v30 = vpop.permute.xlu0 %1594 }
 0x141   : > { %4058 = vmatmul.msk.bf16.vlgmr.msrb.gmra.mxu2 %vm193_vm1, %v4056_v50  ;;  %v1603_v32 = vsel %vm1602_vm9, %v1595_v30, %v1597_v2 }
 0x142   : > { %1546 = vmatpush.bf16.msrb.mxu2 %v1531_v55  ;;  %v1610_v39 = vsel %vm197_vm0, %v1603_v32, 0 }
 0x143   : > { %v2457_v1 = vld.sshfl [vmem:[#allocation1 + $0x8] sm:$0xff pattern:$0x73625140]  ;;  %v4684_v42 = vld.sshfl [vmem:[#allocation1 + $0x18] sm:$0xff pattern:$0x73625140] }
 0x144   : > { %v513_v3 = vpop.f32.mrf.mxu2  ;;  %v487_v4 = vpop.f32.mrf.mxu0  ;;  %v2455_v47 = vld.sshfl [vmem:[#allocation1] sm:$0xff pattern:$0x73625140]  ;;  %v2459_v49 = vld.sshfl [vmem:[#allocation1 + $0x10] sm:$0xff pattern:$0x73625140]  ;;  %2465 = vrot.lane.b32.xlu0 %v2457_v1, %s4295_s16  ;;  %2388 = vrot.lane.b32.xlu1 %v2380_v22, %s4294_s11 }
 0x145   : > { %v519_v8 = vadd.f32 %v513_v3, %v445_v45  ;;  %v517_v9 = vadd.f32 %v487_v4, %v443_v43  ;;  %v500_v10 = vpop.f32.mrf.mxu1  ;;  %2463 = vrot.lane.b32.xlu2 %v2455_v47, %s4295_s16 }
 0x146   : > { %v518_v7 = vadd.f32 %v500_v10, %v444_v36  ;;  %v1522_v24 = vpop.permute.xlu1 %1521  ;;  %v1676_v43 = vpop.permute.xlu2 %1675 }
 0x147   : > { %v591_v6 = vadd.f32 %v561_v54, %v517_v9  ;;  %4055 = vmatmul.msk.bf16.vlgmr.msrb.gmra.mxu0 %vm193_vm1, %v4617_v18  ;;  %4057 = vmatmul.msk.bf16.vlgmr.msrb.gmra.mxu1 %vm193_vm1, %v4056_v50  ;;  %v563_v13 = vpop.f32.mrf.mxu3  ;;  %v1604_v18 = vsel %vm1602_vm9, %v1597_v2, %v1599_v60  ;;  %v1526_v31 = vsel %vm1523_vm8, %v1520_v56, %v1522_v24  ;;  %v4689_v50 = vld [vmem:[%s4346_s17] sm:$0xff]  ;;  %vm2392_vm8 = vcmask 318464  }
 0x148   : > { %1480 = vmatpush.bf16.msrb.mxu0 %v1455_v11  ;;  %1493 = vmatpush.bf16.msrb.mxu1 %v1458_v12  ;;  %v1613_v29 = vsel %vm197_vm0, %v1604_v18, 0  ;;  %v1537_v38 = vsel %vm197_vm0, %v1526_v31, 0  ;;  %v1678_v48 = vpop.permute.xlu0 %1677  ;;  %2533 = vst [vmem:[#allocation1] ss:$4 sm:$0xff] %v4689_v50  ;;  %vm2471_vm9 = vcmask 310272  }
 0x149   : > { %v1683_v62 = vsel %vm1681_vm10, %v1676_v43, %v1678_v48 }
 0x14a   : > { %v1692_v11 = vsel %vm197_vm0, %v1683_v62, 0 }
 0x14c   : > { %v515_v19 = vpop.f32.mrf.mxu2  ;;  %v489_v20 = vpop.f32.mrf.mxu0  ;;  %4065 = vmatmul.msk.bf16.vlgmr.msra.gmra.mxu3 %vm193_vm1, %v4663_v14  ;;  %2467 = vrot.lane.b32.xlu0 %v2459_v49, %s4295_s16 }
 0x14d   : > { %v502_v23 = vpop.f32.mrf.mxu1  ;;  %1651 = vmatpush.bf16.msra.mxu3 %v1616_v17  ;;  %2390 = vrot.lane.b32.xlu2 %v4670_v25, %s4294_s11  ;;  %v4072_v19 = vld [vmem:[%s5194_s1 + $0x26] sm:$0x3]  ;;  %s4301_s11 = smov 17  }
 0x14e   : > { %v1680_v40 = vpop.permute.xlu1 %1679  ;;  %v1755_v55 = vpop.permute.xlu2 %1754 }
 0x14f   : > { %v648_v28 = vpop.f32.mrf.mxu3  ;;  %v1684_v53 = vsel %vm1681_vm10, %v1678_v48, %v1680_v40  ;;  %v2536_v59 = vld.sshfl [vmem:[#allocation1 + $0x8] sm:$0xff pattern:$0x73625140]  ;;  %v2538_v4 = vld.sshfl [vmem:[#allocation1 + $0x10] sm:$0xff pattern:$0x73625140] }
 0x150   : > { %v1695_v57 = vsel %vm197_vm0, %v1684_v53, 0  ;;  %v1674_v61 = vpop.permute.xlu0 %1673  ;;  %2544 = vrot.lane.b32.xlu1 %v2536_v59, %s4296_s20  ;;  %v2540_v5 = vld.sshfl [vmem:[#allocation1 + $0x18] sm:$0xff pattern:$0x73625140] }
 0x151   : > { %4063 = vmatmul.msk.bf16.vlgmr.msra.gmra.mxu2 %vm193_vm1, %v4060_v26  ;;  %v1682_v63 = vsel %vm1681_vm10, %v1674_v61, %v1676_v43  ;;  %v2534_v13 = vld.sshfl [vmem:[#allocation1] sm:$0xff pattern:$0x73625140]  ;;  %vm2550_vm10 = vcmask 302080  }
 0x152   : > { %1638 = vmatpush.bf16.msra.mxu2 %v1613_v29  ;;  %v1689_v12 = vsel %vm197_vm0, %v1682_v63, 0  ;;  %2612 = vst [vmem:[#allocation1] ss:$4 sm:$0xff] %v4689_v50 }
 0x154   : > { %v635_v33 = vpop.f32.mrf.mxu2  ;;  %v574_v34 = vpop.f32.mrf.mxu0  ;;  %2542 = vrot.lane.b32.xlu0 %v2534_v13, %s4296_s20 }
 0x155   : > { %v665_v35 = vadd.f32 %v635_v33, %v591_v6  ;;  %v592_v36 = vadd.f32 %v574_v34, %v518_v7  ;;  %v587_v37 = vpop.f32.mrf.mxu1  ;;  %2546 = vrot.lane.b32.xlu2 %v2538_v4, %s4296_s20 }
 0x156   : > { %v593_v41 = vadd.f32 %v587_v37, %v519_v8  ;;  %v1753_v58 = vpop.permute.xlu1 %1752  ;;  %v1757_v6 = vpop.permute.xlu2 %1756 }
 0x157   : > { %v666_v44 = vadd.f32 %v648_v28, %v592_v36  ;;  %4061 = vmatmul.msk.bf16.vlgmr.msra.gmra.mxu0 %vm193_vm1, %v4060_v26  ;;  %4062 = vmatmul.msk.bf16.vlgmr.msra.gmra.mxu1 %vm193_vm1, %v4060_v26  ;;  %v650_v45 = vpop.f32.mrf.mxu3  ;;  %v1761_v60 = vsel %vm1760_vm11, %v1753_v58, %v1755_v55  ;;  %v1762_v30 = vsel %vm1760_vm11, %v1755_v55, %v1757_v6 }
 0x158   : > { %1572 = vmatpush.bf16.msra.mxu0 %v1537_v38  ;;  %1625 = vmatpush.bf16.msra.mxu1 %v1610_v39  ;;  %v1768_v0 = vsel %vm197_vm0, %v1761_v60, 0  ;;  %v4748_v45 = vld [vmem:[%s5194_s1 + $0x2a] sm:$0x3] }
 0x159   : > { %2469 = vrot.lane.b32.xlu1 %v4684_v42, %s4295_s16  ;;  %v2619_v28 = vld.sshfl [vmem:[#allocation1 + $0x18] sm:$0xff pattern:$0x73625140]  ;;  %v2615_v29 = vld.sshfl [vmem:[#allocation1 + $0x8] sm:$0xff pattern:$0x73625140] }
 0x15a   : > { %v2617_v32 = vld.sshfl [vmem:[#allocation1 + $0x10] sm:$0xff pattern:$0x73625140]  ;;  %v2613_v37 = vld.sshfl [vmem:[#allocation1] sm:$0xff pattern:$0x73625140] }
 0x15b   : > { %v1832_v20 = vpop.permute.xlu0 %1831  ;;  %2691 = vst [vmem:[#allocation1] ss:$4 sm:$0xff] %v4689_v50  ;;  %s4308_s16 = smov 120  }
 0x15c   : > { %v637_v52 = vpop.f32.mrf.mxu2  ;;  %v576_v46 = vpop.f32.mrf.mxu0  ;;  %4070 = vmatmul.msk.bf16.vlgmr.msrb.gmra.mxu3 %vm193_vm1, %v4698_v51  ;;  %2625 = vrot.lane.b32.xlu0 %v2617_v32, %s4297_s26 }
 0x15d   : > { %v589_v54 = vpop.f32.mrf.mxu1  ;;  %1783 = vmatpush.bf16.msrb.mxu3 %v1768_v0  ;;  %2548 = vrot.lane.b32.xlu2 %v2540_v5, %s4296_s20  ;;  %s4303_s20 = smov 15  }
 0x15e   : > { %v1834_v17 = vpop.permute.xlu1 %1833  ;;  %v1913_v25 = vpop.permute.xlu2 %1912 }
 0x15f   : > { %v735_v56 = vpop.f32.mrf.mxu3  ;;  %v1840_v21 = vsel %vm1839_vm12, %v1832_v20, %v1834_v17 }
 0x160   : > { %v1847_v24 = vsel %vm197_vm0, %v1840_v21, 0 }
 0x161   : > { %4069 = vmatmul.msk.bf16.vlgmr.msrb.gmra.mxu2 %vm193_vm1, %v4698_v51  ;;  %2627 = vrot.lane.b32.xlu1 %v2619_v28, %s4297_s26 }
 0x162   : > { %1730 = vmatpush.bf16.msrb.mxu2 %v1695_v57  ;;  %v2692_v46 = vld.sshfl [vmem:[#allocation1] sm:$0xff pattern:$0x73625140]  ;;  %v2694_v53 = vld.sshfl [vmem:[#allocation1 + $0x8] sm:$0xff pattern:$0x73625140] }
 0x163   : > { %v1759_v33 = vpop.permute.xlu0 %1758  ;;  %v4076_v57 = vld [vmem:[%s5194_s1 + $0x28] sm:$0x3]  ;;  %v2698_v58 = vld.sshfl [vmem:[#allocation1 + $0x18] sm:$0xff pattern:$0x73625140] }
 0x164   : > { %v722_v2 = vpop.f32.mrf.mxu2  ;;  %v661_v3 = vpop.f32.mrf.mxu0  ;;  %v1763_v36 = vsel %vm1760_vm11, %v1757_v6, %v1759_v33  ;;  %2621 = vrot.lane.b32.xlu0 %v2613_v37, %s4297_s26  ;;  %vm2629_vm11 = vcmask 293888  }
 0x165   : > { %v740_v8 = vadd.f32 %v722_v2, %v666_v44  ;;  %v667_v9 = vadd.f32 %v661_v3, %v593_v41  ;;  %v709_v10 = vpop.f32.mrf.mxu1  ;;  %v1771_v41 = vsel %vm197_vm0, %v1762_v30, 0  ;;  %v1774_v1 = vsel %vm197_vm0, %v1763_v36, 0  ;;  %2623 = vrot.lane.b32.xlu2 %v2615_v29, %s4297_s26  ;;  %s4304_s26 = smov 14  }
 0x166   : > { %v739_v7 = vadd.f32 %v709_v10, %v665_v35  ;;  %v1836_v26 = vpop.permute.xlu1 %1835  ;;  %v1838_v47 = vpop.permute.xlu2 %1837 }
 0x167   : > { %v741_v15 = vadd.f32 %v735_v56, %v667_v9  ;;  %4066 = vmatmul.msk.bf16.vlgmr.msrb.gmra.mxu0 %vm193_vm1, %v4663_v14  ;;  %4067 = vmatmul.msk.bf16.vlgmr.msrb.gmra.mxu1 %vm193_vm1, %v4663_v14  ;;  %v737_v16 = vpop.f32.mrf.mxu3  ;;  %v1841_v27 = vsel %vm1839_vm12, %v1834_v17, %v1836_v26  ;;  %v2696_v56 = vld.sshfl [vmem:[#allocation1 + $0x10] sm:$0xff pattern:$0x73625140]  ;;  %v1842_v61 = vsel %vm1839_vm12, %v1836_v26, %v1838_v47  ;;  %vm2708_vm12 = vcmask 285696  }
 0x168   : > { %1717 = vmatpush.bf16.msrb.mxu1 %v1692_v11  ;;  %1704 = vmatpush.bf16.msrb.mxu0 %v1689_v12  ;;  %v1850_v31 = vsel %vm197_vm0, %v1841_v27, 0  ;;  %2770 = vst [vmem:[#allocation1] ss:$4 sm:$0xff] %v4689_v50  ;;  %v1853_v4 = vsel %vm197_vm0, %v1842_v61, 0 }
 0x169   : > { %2700 = vrot.lane.b32.xlu1 %v2692_v46, %s4298_s29 }
 0x16b   : > { %v1915_v48 = vpop.permute.xlu0 %1914 }
 0x16c   : > { %v724_v14 = vpop.f32.mrf.mxu2  ;;  %v663_v18 = vpop.f32.mrf.mxu0  ;;  %4075 = vmatmul.msk.bf16.vlgmr.msra.gmra.mxu3 %vm193_vm1, %v4072_v19 }
 0x16d   : > { %v711_v22 = vpop.f32.mrf.mxu1  ;;  %1875 = vmatpush.bf16.msra.mxu3 %v1850_v31  ;;  %2702 = vrot.lane.b32.xlu2 %v2694_v53, %s4298_s29  ;;  %v4779_v18 = vld [vmem:[%s5194_s1 + $0x2c] sm:$0x3] }
 0x16e   : > { %v1911_v55 = vpop.permute.xlu1 %1910  ;;  %v1996_v62 = vpop.permute.xlu2 %1995 }
 0x16f   : > { %v857_v23 = vpop.f32.mrf.mxu3  ;;  %v1919_v63 = vsel %vm1918_vm13, %v1911_v55, %v1913_v25  ;;  %v2773_v13 = vld.sshfl [vmem:[#allocation1 + $0x8] sm:$0xff pattern:$0x73625140]  ;;  %v2775_v20 = vld.sshfl [vmem:[#allocation1 + $0x10] sm:$0xff pattern:$0x73625140] }
 0x170   : > { %v1926_v11 = vsel %vm197_vm0, %v1919_v63, 0 }
 0x171   : > { %4074 = vmatmul.msk.bf16.vlgmr.msra.gmra.mxu2 %vm193_vm1, %v4072_v19  ;;  %2781 = vrot.lane.b32.xlu1 %v2773_v13, %s4299_s5 }
 0x172   : > { %1862 = vmatpush.bf16.msra.mxu2 %v1847_v24 }
 0x173   : > { %v1917_v0 = vpop.permute.xlu0 %1916 }
 0x174   : > { %v809_v34 = vpop.f32.mrf.mxu2  ;;  %v783_v35 = vpop.f32.mrf.mxu0  ;;  %v1921_v5 = vsel %vm1918_vm13, %v1915_v48, %v1917_v0 }
 0x175   : > { %v815_v38 = vadd.f32 %v809_v34, %v741_v15  ;;  %v813_v39 = vadd.f32 %v783_v35, %v739_v7  ;;  %v796_v40 = vpop.f32.mrf.mxu1  ;;  %v1932_v12 = vsel %vm197_vm0, %v1921_v5, 0  ;;  %v4769_v15 = vld.sshfl [vmem:[#allocation1 + $0x18] sm:$0xff pattern:$0x73625140]  ;;  %2704 = vrot.lane.b32.xlu2 %v2696_v56, %s4298_s29 }
 0x176   : > { %v814_v42 = vadd.f32 %v796_v40, %v740_v8  ;;  %v1994_v7 = vpop.permute.xlu1 %1993  ;;  %v2069_v14 = vpop.permute.xlu2 %2068 }
 0x177   : > { %v887_v43 = vadd.f32 %v857_v23, %v813_v39  ;;  %4071 = vmatmul.msk.bf16.vlgmr.msra.gmra.mxu0 %vm193_vm1, %v4698_v51  ;;  %4073 = vmatmul.msk.bf16.vlgmr.msra.gmra.mxu1 %vm193_vm1, %v4072_v19  ;;  %v859_v44 = vpop.f32.mrf.mxu3  ;;  %v1920_v51 = vsel %vm1918_vm13, %v1913_v25, %v1915_v48  ;;  %v2771_v19 = vld.sshfl [vmem:[#allocation1] sm:$0xff pattern:$0x73625140]  ;;  %v2000_v24 = vsel %vm1997_vm14, %v1994_v7, %v1996_v62  ;;  %vm2787_vm13 = vcmask 277504  }
 0x178   : > { %1796 = vmatpush.bf16.msra.mxu0 %v1771_v41  ;;  %1809 = vmatpush.bf16.msra.mxu1 %v1774_v1  ;;  %v1929_v60 = vsel %vm197_vm0, %v1920_v51, 0  ;;  %2849 = vst [vmem:[#allocation1] ss:$4 sm:$0xff] %v4689_v50  ;;  %v2011_v28 = vsel %vm197_vm0, %v2000_v24, 0 }
 0x179   : > { %2779 = vrot.lane.b32.xlu0 %v2771_v19, %s4299_s5  ;;  %2783 = vrot.lane.b32.xlu1 %v2775_v20, %s4299_s5  ;;  %v4830_v19 = vld [vmem:[%s5194_s1 + $0x32] sm:$0x3] }
 0x17b   : > { %v1992_v21 = vpop.permute.xlu0 %1991 }
 0x17c   : > { %v811_v49 = vpop.f32.mrf.mxu2  ;;  %v785_v52 = vpop.f32.mrf.mxu0  ;;  %4081 = vmatmul.msk.bf16.vlgmr.msrb.gmra.mxu3 %vm193_vm1, %v4748_v45  ;;  %v1999_v29 = vsel %vm1997_vm14, %v1992_v21, %v1994_v7 }
 0x17d   : > { %v798_v54 = vpop.f32.mrf.mxu1  ;;  %1967 = vmatpush.bf16.msrb.mxu3 %v1932_v12  ;;  %v2008_v36 = vsel %vm197_vm0, %v1999_v29, 0 }
 0x17e   : > { %v1990_v26 = vpop.permute.xlu1 %1989  ;;  %v2150_v30 = vpop.permute.xlu2 %2149 }
 0x17f   : > { %v944_v59 = vpop.f32.mrf.mxu3  ;;  %v1998_v31 = vsel %vm1997_vm14, %v1990_v26, %v1992_v21  ;;  %v2852_v33 = vld.sshfl [vmem:[#allocation1 + $0x8] sm:$0xff pattern:$0x73625140]  ;;  %v2854_v48 = vld.sshfl [vmem:[#allocation1 + $0x10] sm:$0xff pattern:$0x73625140] }
 0x180   : > { %2860 = vrot.lane.b32.xlu2 %v2852_v33, %s4300_s8  ;;  %v2005_v41 = vsel %vm197_vm0, %v1998_v31, 0  ;;  %v2856_v49 = vld.sshfl [vmem:[#allocation1 + $0x18] sm:$0xff pattern:$0x73625140]  ;;  %vm2866_vm14 = vcmask 146432  }
 0x181   : > { %4079 = vmatmul.msk.bf16.vlgmr.msrb.gmra.mxu2 %vm193_vm1, %v4076_v57  ;;  %2706 = vrot.lane.b32.xlu0 %v2698_v58, %s4298_s29  ;;  %s4305_s29 = smov 13  }
 0x182   : > { %1954 = vmatpush.bf16.msrb.mxu2 %v1929_v60 }
 0x183   : > { %v2071_v32 = vpop.permute.xlu0 %2070 }
 0x184   : > { %v931_v2 = vpop.f32.mrf.mxu2  ;;  %v870_v3 = vpop.f32.mrf.mxu0  ;;  %v2077_v37 = vsel %vm2076_vm15, %v2069_v14, %v2071_v32 }
 0x185   : > { %v961_v8 = vadd.f32 %v931_v2, %v887_v43  ;;  %v888_v9 = vadd.f32 %v870_v3, %v814_v42  ;;  %v883_v10 = vpop.f32.mrf.mxu1  ;;  %v2084_v1 = vsel %vm197_vm0, %v2077_v37, 0  ;;  %v2850_v43 = vld.sshfl [vmem:[#allocation1] sm:$0xff pattern:$0x73625140] }
 0x186   : > { %v889_v6 = vadd.f32 %v883_v10, %v815_v38  ;;  %v2148_v52 = vpop.permute.xlu1 %2147  ;;  %2928 = vst [vmem:[#allocation1] ss:$4 sm:$0xff] %v4689_v50  ;;  %2858 = vrot.lane.b32.xlu1 %v2850_v43, %s4300_s8  ;;  %v4803_v51 = vpop.permute.xlu2 %2151 }
 0x187   : > { %v962_v16 = vadd.f32 %v944_v59, %v888_v9  ;;  %4077 = vmatmul.msk.bf16.vlgmr.msrb.gmra.mxu0 %vm193_vm1, %v4076_v57  ;;  %4078 = vmatmul.msk.bf16.vlgmr.msrb.gmra.mxu1 %vm193_vm1, %v4076_v57  ;;  %v946_v17 = vpop.f32.mrf.mxu3  ;;  %v2157_v46 = vsel %vm2155_vm2, %v2150_v30, %v4803_v51  ;;  %v2156_v57 = vsel %vm2155_vm2, %v2148_v52, %v2150_v30 }
 0x188   : > { %1888 = vmatpush.bf16.msrb.mxu0 %v1853_v4  ;;  %1941 = vmatpush.bf16.msrb.mxu1 %v1926_v11  ;;  %v2166_v54 = vsel %vm197_vm0, %v2157_v46, 0  ;;  %v2163_v60 = vsel %vm197_vm0, %v2156_v57, 0 }
 0x189   : > { %2862 = vrot.lane.b32.xlu0 %v2854_v48, %s4300_s8  ;;  %2785 = vrot.lane.b32.xlu2 %v4769_v15, %s4299_s5 }
 0x18b   : > { %v2073_v53 = vpop.permute.xlu0 %2072 }
 0x18c   : > { %v933_v22 = vpop.f32.mrf.mxu2  ;;  %v872_v23 = vpop.f32.mrf.mxu0  ;;  %4086 = vmatmul.msk.bf16.vlgmr.msra.gmra.mxu3 %vm193_vm1, %v4779_v18  ;;  %v2078_v63 = vsel %vm2076_vm15, %v2071_v32, %v2073_v53 }
 0x18d   : > { %v885_v25 = vpop.f32.mrf.mxu1  ;;  %2099 = vmatpush.bf16.msra.mxu3 %v2084_v1  ;;  %v2933_v62 = vld.sshfl [vmem:[#allocation1 + $0x10] sm:$0xff pattern:$0x73625140]  ;;  %v2935_v2 = vld.sshfl [vmem:[#allocation1 + $0x18] sm:$0xff pattern:$0x73625140] }
 0x18e   : > { %v2075_v61 = vpop.permute.xlu1 %2074  ;;  %2941 = vrot.lane.b32.xlu1 %v2933_v62, %s4301_s11  ;;  %v2929_v9 = vld.sshfl [vmem:[#allocation1] sm:$0xff pattern:$0x73625140]  ;;  %v2087_v7 = vsel %vm197_vm0, %v2078_v63, 0  ;;  %v2227_v20 = vpop.permute.xlu2 %2226 }
 0x18f   : > { %v1031_v27 = vpop.f32.mrf.mxu3  ;;  %v2079_v0 = vsel %vm2076_vm15, %v2073_v53, %v2075_v61  ;;  %vm2945_vm15 = vcmask 138240  }
 0x191   : > { %4085 = vmatmul.msk.bf16.vlgmr.msra.gmra.mxu2 %vm193_vm1, %v4779_v18  ;;  %2864 = vrot.lane.b32.xlu0 %v2856_v49, %s4300_s8 }
 0x192   : > { %2046 = vmatpush.bf16.msra.mxu2 %v2011_v28  ;;  %2943 = vrot.lane.b32.xlu2 %v2935_v2, %s4301_s11 }
 0x193   : > { %v2229_v3 = vpop.permute.xlu0 %2228 }
 0x194   : > { %v1018_v34 = vpop.f32.mrf.mxu2  ;;  %v957_v35 = vpop.f32.mrf.mxu0 }
 0x195   : > { %v1036_v38 = vadd.f32 %v1018_v34, %v962_v16  ;;  %v963_v39 = vadd.f32 %v957_v35, %v889_v6  ;;  %v1005_v40 = vpop.f32.mrf.mxu1  ;;  %v2090_v6 = vsel %vm197_vm0, %v2079_v0, 0  ;;  %v2235_v35 = vsel %vm2234_vm3, %v2227_v20, %v2229_v3 }
 0x196   : > { %v1035_v42 = vadd.f32 %v1005_v40, %v961_v8  ;;  %v2931_v8 = vld.sshfl [vmem:[#allocation1 + $0x8] sm:$0xff pattern:$0x73625140]  ;;  %v2231_v17 = vpop.permute.xlu1 %2230  ;;  %2937 = vrot.lane.b32.xlu1 %v2929_v9, %s4301_s11  ;;  %v2310_v33 = vpop.permute.xlu2 %2309 }
 0x197   : > { %v1037_v44 = vadd.f32 %v1031_v27, %v963_v39  ;;  %4082 = vmatmul.msk.bf16.vlgmr.msra.gmra.mxu0 %vm193_vm1, %v4748_v45  ;;  %4083 = vmatmul.msk.bf16.vlgmr.msra.gmra.mxu1 %vm193_vm1, %v4748_v45  ;;  %v1033_v47 = vpop.f32.mrf.mxu3  ;;  %v4088_v45 = vld [vmem:[%s5194_s1 + $0x2e] sm:$0x3]  ;;  %3007 = vst [vmem:[#allocation1] ss:$4 sm:$0xff] %v4689_v50  ;;  %v4092_v27 = vld [vmem:[%s5194_s1 + $0x30] sm:$0x3] }
 0x198   : > { %2033 = vmatpush.bf16.msra.mxu1 %v2008_v36  ;;  %2020 = vmatpush.bf16.msra.mxu0 %v2005_v41 }
 0x199   : > { %2939 = vrot.lane.b32.xlu0 %v2931_v8, %s4301_s11 }
 0x19b   : > { %v2154_v25 = vpop.permute.xlu0 %2153 }
 0x19c   : > { %v1020_v55 = vpop.f32.mrf.mxu2  ;;  %v959_v56 = vpop.f32.mrf.mxu0  ;;  %4091 = vmatmul.msk.bf16.vlgmr.msrb.gmra.mxu3 %vm193_vm1, %v4088_v45  ;;  %v2158_v34 = vsel %vm2155_vm2, %v4803_v51, %v2154_v25  ;;  %vm3024_vm2 = vcmask 130048  }
 0x19d   : > { %v1007_v58 = vpop.f32.mrf.mxu1  ;;  %2191 = vmatpush.bf16.msrb.mxu3 %v2166_v54  ;;  %v2169_v1 = vsel %vm197_vm0, %v2158_v34, 0  ;;  %v4859_v54 = vld [vmem:[%s5194_s1 + $0x34] sm:$0x3] }
 0x19e   : > { %v3010_v22 = vld.sshfl [vmem:[#allocation1 + $0x8] sm:$0xff pattern:$0x73625140]  ;;  %v3012_v23 = vld.sshfl [vmem:[#allocation1 + $0x10] sm:$0xff pattern:$0x73625140]  ;;  %v2233_v31 = vpop.permute.xlu1 %2232  ;;  %v2306_v53 = vpop.permute.xlu2 %2305 }
 0x19f   : > { %v1153_v59 = vpop.f32.mrf.mxu3  ;;  %v3014_v26 = vld.sshfl [vmem:[#allocation1 + $0x18] sm:$0xff pattern:$0x73625140]  ;;  %v3008_v28 = vld.sshfl [vmem:[#allocation1] sm:$0xff pattern:$0x73625140]  ;;  %v2237_v32 = vsel %vm2234_vm3, %v2231_v17, %v2233_v31 }
 0x1a0   : > { %3086 = vst [vmem:[#allocation1] ss:$4 sm:$0xff] %v4689_v50  ;;  %3016 = vrot.lane.b32.xlu2 %v3008_v28, %s4302_s19  ;;  %v2248_v36 = vsel %vm197_vm0, %v2237_v32, 0 }
 0x1a1   : > { %4090 = vmatmul.msk.bf16.vlgmr.msrb.gmra.mxu2 %vm193_vm1, %v4088_v45  ;;  %3018 = vrot.lane.b32.xlu0 %v3010_v22, %s4302_s19 }
 0x1a2   : > { %2178 = vmatpush.bf16.msrb.mxu2 %v2163_v60 }
 0x1a4   : > { %v1105_v4 = vpop.f32.mrf.mxu2  ;;  %v1079_v5 = vpop.f32.mrf.mxu0 }
 0x1a5   : > { %v1111_v10 = vadd.f32 %v1105_v4, %v1037_v44  ;;  %v1109_v11 = vadd.f32 %v1079_v5, %v1035_v42  ;;  %v1092_v12 = vpop.f32.mrf.mxu1  ;;  %v2242_v42 = vsel %vm197_vm0, %v2235_v35, 0  ;;  %v2312_v43 = vpop.permute.xlu0 %2311 }
 0x1a6   : > { %v1110_v13 = vadd.f32 %v1092_v12, %v1036_v38  ;;  %v2316_v57 = vsel %vm2313_vm4, %v2310_v33, %v2312_v43  ;;  %v2464_v0 = vpop.permute.xlu2 %2463 }
 0x1a7   : > { %v1183_v15 = vadd.f32 %v1153_v59, %v1109_v11  ;;  %4087 = vmatmul.msk.bf16.vlgmr.msrb.gmra.mxu0 %vm193_vm1, %v4779_v18  ;;  %4089 = vmatmul.msk.bf16.vlgmr.msrb.gmra.mxu1 %vm193_vm1, %v4088_v45  ;;  %v1155_v16 = vpop.f32.mrf.mxu3  ;;  %v2236_v18 = vsel %vm2234_vm3, %v2229_v3, %v2231_v17  ;;  %v3087_v47 = vld.sshfl [vmem:[#allocation1] sm:$0xff pattern:$0x73625140]  ;;  %v3089_v48 = vld.sshfl [vmem:[#allocation1 + $0x8] sm:$0xff pattern:$0x73625140]  ;;  %v2308_v45 = vpop.permute.xlu1 %2307 }
 0x1a8   : > { %2112 = vmatpush.bf16.msrb.mxu0 %v2087_v7  ;;  %2125 = vmatpush.bf16.msrb.mxu1 %v2090_v6  ;;  %v2245_v30 = vsel %vm197_vm0, %v2236_v18, 0  ;;  %v3091_v51 = vld.sshfl [vmem:[#allocation1 + $0x10] sm:$0xff pattern:$0x73625140]  ;;  %v2327_v60 = vsel %vm197_vm0, %v2316_v57, 0  ;;  %v2315_v2 = vsel %vm2313_vm4, %v2308_v45, %v2310_v33  ;;  %v2314_v3 = vsel %vm2313_vm4, %v2306_v53, %v2308_v45 }
 0x1a9   : > { %v3093_v46 = vld.sshfl [vmem:[#allocation1 + $0x18] sm:$0xff pattern:$0x73625140]  ;;  %3095 = vrot.lane.b32.xlu1 %v3087_v47, %s4303_s20  ;;  %3097 = vrot.lane.b32.xlu2 %v3089_v48, %s4303_s20  ;;  %v2324_v6 = vsel %vm197_vm0, %v2315_v2, 0  ;;  %v4104_v18 = vld [vmem:[%s5194_s1 + $0x36] sm:$0x3] }
 0x1aa   : > { %3165 = vst [vmem:[#allocation1] ss:$4 sm:$0xff] %v4689_v50  ;;  %3020 = vrot.lane.b32.xlu0 %v3012_v23, %s4302_s19  ;;  %vm3103_vm3 = vcmask 121856   ;;  %vm3182_vm4 = vcmask 113664  }
 0x1ac   : > { %v1107_v14 = vpop.f32.mrf.mxu2  ;;  %v1081_v21 = vpop.f32.mrf.mxu0  ;;  %4097 = vmatmul.msk.bf16.vlgmr.msra.gmra.mxu3 %vm193_vm1, %v4830_v19 }
 0x1ad   : > { %v1094_v24 = vpop.f32.mrf.mxu1  ;;  %2283 = vmatpush.bf16.msra.mxu3 %v2248_v36  ;;  %v2385_v61 = vpop.permute.xlu0 %2384 }
 0x1ae   : > { %v2391_v21 = vpop.permute.xlu2 %2390 }
 0x1af   : > { %v1245_v29 = vpop.f32.mrf.mxu3  ;;  %v2387_v63 = vpop.permute.xlu1 %2386 }
 0x1b0   : > { %v2393_v4 = vsel %vm2392_vm8, %v2385_v61, %v2387_v63  ;;  %v3398_v61 = vld [vmem:[%s4346_s17 + $0x2] sm:$0x3f] }
 0x1b1   : > { %4095 = vmatmul.msk.bf16.vlgmr.msra.gmra.mxu2 %vm193_vm1, %v4092_v27  ;;  %v3168_v62 = vld.sshfl [vmem:[#allocation1 + $0x8] sm:$0xff pattern:$0x73625140]  ;;  %3022 = vrot.lane.b32.xlu1 %v3014_v26, %s4302_s19  ;;  %v2400_v5 = vsel %vm197_vm0, %v2393_v4, 0 }
 0x1b2   : > { %2270 = vmatpush.bf16.msra.mxu2 %v2245_v30  ;;  %3176 = vrot.lane.b32.xlu0 %v3168_v62, %s4304_s26  ;;  %v3166_v7 = vld.sshfl [vmem:[#allocation1] sm:$0xff pattern:$0x73625140]  ;;  %v3170_v16 = vld.sshfl [vmem:[#allocation1 + $0x10] sm:$0xff pattern:$0x73625140] }
 0x1b3   : > { %3099 = vrot.lane.b32.xlu2 %v3091_v51, %s4303_s20  ;;  %v3172_v14 = vld.sshfl [vmem:[#allocation1 + $0x18] sm:$0xff pattern:$0x73625140] }
 0x1b4   : > { %v1232_v37 = vpop.f32.mrf.mxu2  ;;  %v1166_v38 = vpop.f32.mrf.mxu0  ;;  %3244 = vst [vmem:[#allocation1] ss:$4 sm:$0xff] %v4689_v50  ;;  %v4905_v51 = vld [vmem:[%s5194_s1 + $0x3a] sm:$0x3]  ;;  %v4108_v62 = vld [vmem:[%s5194_s1 + $0x38] sm:$0x3] }
 0x1b5   : > { %v1262_v39 = vadd.f32 %v1232_v37, %v1183_v15  ;;  %v1184_v40 = vadd.f32 %v1166_v38, %v1110_v13  ;;  %v1179_v41 = vpop.f32.mrf.mxu1  ;;  %v2321_v13 = vsel %vm197_vm0, %v2314_v3, 0 }
 0x1b6   : > { %v1185_v44 = vadd.f32 %v1179_v41, %v1111_v10  ;;  %v2466_v22 = vpop.permute.xlu0 %2465  ;;  %v2547_v31 = vpop.permute.xlu2 %2546 }
 0x1b7   : > { %v1263_v49 = vadd.f32 %v1245_v29, %v1184_v40  ;;  %4093 = vmatmul.msk.bf16.vlgmr.msra.gmra.mxu0 %vm193_vm1, %v4092_v27  ;;  %4094 = vmatmul.msk.bf16.vlgmr.msra.gmra.mxu1 %vm193_vm1, %v4092_v27  ;;  %v1247_v52 = vpop.f32.mrf.mxu3  ;;  %v2389_v23 = vpop.permute.xlu1 %2388  ;;  %v2472_v25 = vsel %vm2471_vm9, %v2464_v0, %v2466_v22 }
 0x1b8   : > { %2204 = vmatpush.bf16.msra.mxu0 %v2169_v1  ;;  %2257 = vmatpush.bf16.msra.mxu1 %v2242_v42  ;;  %v2479_v28 = vsel %vm197_vm0, %v2472_v25, 0  ;;  %v2394_v29 = vsel %vm2392_vm8, %v2387_v63, %v2389_v23  ;;  %v2395_v34 = vsel %vm2392_vm8, %v2389_v23, %v2391_v21  ;;  %vm3261_vm8 = vcmask 105472  }
 0x1b9   : > { %3178 = vrot.lane.b32.xlu1 %v3170_v16, %s4304_s26  ;;  %v2403_v38 = vsel %vm197_vm0, %v2394_v29, 0 }
 0x1ba   : > { %3101 = vrot.lane.b32.xlu0 %v3093_v46, %s4303_s20  ;;  %s4309_s20 = smov 119  }
 0x1bb   : > { %3174 = vrot.lane.b32.xlu2 %v3166_v7, %s4304_s26  ;;  %v3251_v30 = vld.sshfl [vmem:[#allocation1 + $0x18] sm:$0xff pattern:$0x73625140]  ;;  %v3245_v32 = vld.sshfl [vmem:[#allocation1] sm:$0xff pattern:$0x73625140] }
 0x1bc   : > { %v1234_v55 = vpop.f32.mrf.mxu2  ;;  %v1168_v56 = vpop.f32.mrf.mxu0  ;;  %4102 = vmatmul.msk.bf16.vlgmr.msrb.gmra.mxu3 %vm193_vm1, %v4859_v54  ;;  %v3249_v33 = vld.sshfl [vmem:[#allocation1 + $0x10] sm:$0xff pattern:$0x73625140]  ;;  %v3247_v40 = vld.sshfl [vmem:[#allocation1 + $0x8] sm:$0xff pattern:$0x73625140] }
 0x1bd   : > { %v1181_v58 = vpop.f32.mrf.mxu1  ;;  %2415 = vmatpush.bf16.msrb.mxu3 %v2400_v5  ;;  %3323 = vst [vmem:[#allocation1] ss:$4 sm:$0xff] %v4689_v50 }
 0x1be   : > { %v2468_v35 = vpop.permute.xlu0 %2467  ;;  %v2549_v50 = vpop.permute.xlu2 %2548 }
 0x1bf   : > { %v1337_v59 = vpop.f32.mrf.mxu3  ;;  %v2553_v46 = vsel %vm2550_vm10, %v2547_v31, %v2549_v50 }
 0x1c0   : > { %v2564_v45 = vsel %vm197_vm0, %v2553_v46, 0  ;;  %v4120_v46 = vld [vmem:[%s5194_s1 + $0x3e] sm:$0x3] }
 0x1c1   : > { %4101 = vmatmul.msk.bf16.vlgmr.msrb.gmra.mxu2 %vm193_vm1, %v4859_v54  ;;  %3180 = vrot.lane.b32.xlu1 %v3172_v14, %s4304_s26 }
 0x1c2   : > { %2362 = vmatpush.bf16.msrb.mxu2 %v2327_v60  ;;  %3259 = vrot.lane.b32.xlu0 %v3251_v30, %s4305_s29  ;;  %v2545_v47 = vpop.permute.xlu1 %2544 }
 0x1c3   : > { %3257 = vrot.lane.b32.xlu2 %v3249_v33, %s4305_s29  ;;  %v2552_v55 = vsel %vm2550_vm10, %v2545_v47, %v2547_v31 }
 0x1c4   : > { %v1324_v8 = vpop.f32.mrf.mxu2  ;;  %v1258_v9 = vpop.f32.mrf.mxu0  ;;  %v3328_v56 = vld.sshfl [vmem:[#allocation1 + $0x10] sm:$0xff pattern:$0x73625140]  ;;  %v4912_v57 = vld.sshfl [vmem:[#allocation1 + $0x18] sm:$0xff pattern:$0x73625140] }
 0x1c5   : > { %v1342_v10 = vadd.f32 %v1324_v8, %v1263_v49  ;;  %v1264_v11 = vadd.f32 %v1258_v9, %v1185_v44  ;;  %v1311_v12 = vpop.f32.mrf.mxu1  ;;  %v2406_v44 = vsel %vm197_vm0, %v2395_v34, 0  ;;  %v3324_v60 = vld.sshfl [vmem:[#allocation1] sm:$0xff pattern:$0x73625140]  ;;  %v2561_v2 = vsel %vm197_vm0, %v2552_v55, 0 }
 0x1c6   : > { %v1341_v15 = vadd.f32 %v1311_v12, %v1262_v39  ;;  %v2473_v39 = vsel %vm2471_vm9, %v2466_v22, %v2468_v35  ;;  %v3326_v63 = vld.sshfl [vmem:[#allocation1 + $0x8] sm:$0xff pattern:$0x73625140]  ;;  %v2543_v3 = vpop.permute.xlu0 %2542  ;;  %v4934_v22 = vld [vmem:[%s5194_s1 + $0x3c] sm:$0x3] }
 0x1c7   : > { %v1343_v17 = vadd.f32 %v1337_v59, %v1264_v11  ;;  %4098 = vmatmul.msk.bf16.vlgmr.msrb.gmra.mxu0 %vm193_vm1, %v4830_v19  ;;  %4099 = vmatmul.msk.bf16.vlgmr.msrb.gmra.mxu1 %vm193_vm1, %v4830_v19  ;;  %v1339_v20 = vpop.f32.mrf.mxu3  ;;  %v2482_v43 = vsel %vm197_vm0, %v2473_v39, 0  ;;  %3402 = vst [vmem:[#allocation1] ss:$4 sm:$0xff] %v3398_v61  ;;  %v2551_v5 = vsel %vm2550_vm10, %v2543_v3, %v2545_v47  ;;  %vm3856_vm10 = vcmask 965632  }
 0x1c8   : > { %2349 = vmatpush.bf16.msrb.mxu1 %v2324_v6  ;;  %2336 = vmatpush.bf16.msrb.mxu0 %v2321_v13  ;;  %v2558_v6 = vsel %vm197_vm0, %v2551_v5, 0 }
 0x1c9   : > { %3255 = vrot.lane.b32.xlu1 %v3247_v40, %s4305_s29 }
 0x1ca   : > { %3332 = vrot.lane.b32.xlu0 %v3324_v60, %s4306_s7 }
 0x1cb   : > { %3253 = vrot.lane.b32.xlu2 %v3245_v32, %s4305_s29  ;;  %v2470_v59 = vpop.permute.xlu1 %2469  ;;  %v3471_v32 = vld [vmem:[%s4346_s17 + $0x2] sm:$0x3f]  ;;  %s4195_s29 = smul.u32 12, %s5198_s13 }
 0x1cc   : > { %v1326_v19 = vpop.f32.mrf.mxu2  ;;  %v1260_v24 = vpop.f32.mrf.mxu0  ;;  %4107 = vmatmul.msk.bf16.vlgmr.msra.gmra.mxu3 %vm193_vm1, %v4104_v18  ;;  %v2474_v4 = vsel %vm2471_vm9, %v2468_v35, %v2470_v59  ;;  %vm3340_vm9 = vcmask 97280  }
 0x1cd   : > { %v1313_v26 = vpop.f32.mrf.mxu1  ;;  %2507 = vmatpush.bf16.msra.mxu3 %v2482_v43  ;;  %v2485_v7 = vsel %vm197_vm0, %v2474_v4, 0  ;;  %s170_s5 = scalar_lea.vmem %s5196_s3, %s4195_s29 }
 0x1ce   : > { %v3405_v16 = vld.sshfl [vmem:[#allocation1 + $0x8] sm:$0xff pattern:$0x73625140]  ;;  %v2626_v21 = vpop.permute.xlu0 %2625  ;;  %v3407_v26 = vld.sshfl [vmem:[#allocation1 + $0x10] sm:$0xff pattern:$0x73625140] }
 0x1cf   : > { %v1469_v27 = vpop.f32.mrf.mxu3 }
 0x1d1   : > { %4106 = vmatmul.msk.bf16.vlgmr.msra.gmra.mxu2 %vm193_vm1, %v4104_v18  ;;  %3334 = vrot.lane.b32.xlu1 %v3326_v63, %s4306_s7 }
 0x1d2   : > { %2494 = vmatpush.bf16.msra.mxu2 %v2479_v28  ;;  %3411 = vrot.lane.b32.xlu0 %v3405_v16, %s4269_s21 }
 0x1d3   : > { %v2628_v13 = vpop.permute.xlu1 %2627 }
 0x1d4   : > { %v1416_v36 = vpop.f32.mrf.mxu2  ;;  %v1390_v37 = vpop.f32.mrf.mxu0  ;;  %v2632_v24 = vsel %vm2629_vm11, %v2626_v21, %v2628_v13 }
 0x1d5   : > { %v1422_v41 = vadd.f32 %v1416_v36, %v1343_v17  ;;  %v1420_v1 = vadd.f32 %v1390_v37, %v1341_v15  ;;  %v1403_v42 = vpop.f32.mrf.mxu1  ;;  %v2624_v17 = vpop.permute.xlu2 %2623  ;;  %v2643_v29 = vsel %vm197_vm0, %v2632_v24, 0  ;;  %v4124_v24 = vld [vmem:[%s5194_s1 + $0x40] sm:$0x3] }
 0x1d6   : > { %v1421_v48 = vadd.f32 %v1403_v42, %v1342_v10  ;;  %v2622_v33 = vpop.permute.xlu0 %2621  ;;  %v2631_v35 = vsel %vm2629_vm11, %v2624_v17, %v2626_v21 }
 0x1d7   : > { %v1499_v49 = vadd.f32 %v1469_v27, %v1420_v1  ;;  %4103 = vmatmul.msk.bf16.vlgmr.msra.gmra.mxu0 %vm193_vm1, %v4859_v54  ;;  %4105 = vmatmul.msk.bf16.vlgmr.msra.gmra.mxu1 %vm193_vm1, %v4104_v18  ;;  %v1471_v52 = vpop.f32.mrf.mxu3  ;;  %v3403_v18 = vld.sshfl [vmem:[#allocation1] sm:$0xff pattern:$0x73625140]  ;;  %v2630_v36 = vsel %vm2629_vm11, %v2622_v33, %v2624_v17  ;;  %v2640_v1 = vsel %vm197_vm0, %v2631_v35, 0 }
 0x1d8   : > { %2428 = vmatpush.bf16.msra.mxu0 %v2403_v38  ;;  %2441 = vmatpush.bf16.msra.mxu1 %v2406_v44  ;;  %3475 = vst [vmem:[#allocation1] ss:$4 sm:$0xff] %v3471_v32  ;;  %v2637_v42 = vsel %vm197_vm0, %v2630_v36, 0 }
 0x1d9   : > { %3336 = vrot.lane.b32.xlu1 %v3328_v56, %s4306_s7  ;;  %3409 = vrot.lane.b32.xlu2 %v3403_v18, %s4269_s21  ;;  %v3544_v56 = vld [vmem:[%s4346_s17 + $0x2] sm:$0x3f] }
 0x1da   : > { %3413 = vrot.lane.b32.xlu0 %v3407_v26, %s4269_s21 }
 0x1db   : > { %v2701_v30 = vpop.permute.xlu1 %2700 }
 0x1dc   : > { %v1418_v53 = vpop.f32.mrf.mxu2  ;;  %v1392_v54 = vpop.f32.mrf.mxu0  ;;  %4113 = vmatmul.msk.bf16.vlgmr.msrb.gmra.mxu3 %vm193_vm1, %v4905_v51 }
 0x1dd   : > { %v1405_v58 = vpop.f32.mrf.mxu1  ;;  %2599 = vmatpush.bf16.msrb.mxu3 %v2564_v45  ;;  %v2703_v27 = vpop.permute.xlu2 %2702 }
 0x1de   : > { %v2709_v31 = vsel %vm2708_vm12, %v2701_v30, %v2703_v27 }
 0x1df   : > { %v1561_v0 = vpop.f32.mrf.mxu3  ;;  %v2716_v34 = vsel %vm197_vm0, %v2709_v31, 0  ;;  %v3476_v52 = vld.sshfl [vmem:[#allocation1] sm:$0xff pattern:$0x73625140] }
 0x1e0   : > { %v3480_v50 = vld.sshfl [vmem:[#allocation1 + $0x10] sm:$0xff pattern:$0x73625140] }
 0x1e1   : > { %4111 = vmatmul.msk.bf16.vlgmr.msrb.gmra.mxu2 %vm193_vm1, %v4108_v62  ;;  %3338 = vrot.lane.b32.xlu2 %v4912_v57, %s4306_s7 }
 0x1e2   : > { %2586 = vmatpush.bf16.msrb.mxu2 %v2561_v2  ;;  %3482 = vrot.lane.b32.xlu0 %v3476_v52, %s4270_s22 }
 0x1e3   : > { %v2782_v45 = vpop.permute.xlu1 %2781 }
 0x1e4   : > { %v1548_v8 = vpop.f32.mrf.mxu2  ;;  %v1482_v9 = vpop.f32.mrf.mxu0 }
 0x1e5   : > { %v1578_v10 = vadd.f32 %v1548_v8, %v1499_v49  ;;  %v1500_v11 = vadd.f32 %v1482_v9, %v1421_v48  ;;  %v1495_v12 = vpop.f32.mrf.mxu1  ;;  %v2705_v44 = vpop.permute.xlu2 %2704  ;;  %v3478_v49 = vld.sshfl [vmem:[#allocation1 + $0x8] sm:$0xff pattern:$0x73625140] }
 0x1e6   : > { %v1501_v15 = vadd.f32 %v1495_v12, %v1422_v41  ;;  %3484 = vrot.lane.b32.xlu1 %v3478_v49, %s4270_s22  ;;  %3548 = vst [vmem:[#allocation1] ss:$4 sm:$0xff] %v3544_v56  ;;  %v2710_v61 = vsel %vm2708_vm12, %v2703_v27, %v2705_v44 }
 0x1e7   : > { %v1579_v20 = vadd.f32 %v1561_v0, %v1500_v11  ;;  %4109 = vmatmul.msk.bf16.vlgmr.msrb.gmra.mxu0 %vm193_vm1, %v4108_v62  ;;  %4110 = vmatmul.msk.bf16.vlgmr.msrb.gmra.mxu1 %vm193_vm1, %v4108_v62  ;;  %v1563_v14 = vpop.f32.mrf.mxu3  ;;  %v2719_v62 = vsel %vm197_vm0, %v2710_v61, 0 }
 0x1e8   : > { %2520 = vmatpush.bf16.msrb.mxu0 %v2485_v7  ;;  %2573 = vmatpush.bf16.msrb.mxu1 %v2558_v6  ;;  %v3617_v6 = vld [vmem:[%s4346_s17 + $0x2] sm:$0x3f] }
 0x1e9   : > { %3486 = vrot.lane.b32.xlu2 %v3480_v50, %s4270_s22  ;;  %v4983_v14 = vld [vmem:[%s5194_s1 + $0x42] sm:$0x3] }
 0x1eb   : > { %v2780_v53 = vpop.permute.xlu0 %2779  ;;  %v2784_v63 = vpop.permute.xlu1 %2783 }
 0x1ec   : > { %v1550_v23 = vpop.f32.mrf.mxu2  ;;  %v1484_v19 = vpop.f32.mrf.mxu0  ;;  %4118 = vmatmul.msk.bf16.vlgmr.msra.gmra.mxu3 %vm193_vm1, %v4934_v22  ;;  %v2788_v55 = vsel %vm2787_vm13, %v2780_v53, %v2782_v45  ;;  %v2789_v3 = vsel %vm2787_vm13, %v2782_v45, %v2784_v63  ;;  %v3765_v45 = vld [vmem:[%s4346_s17 + $0x2] sm:$0x3f] }
 0x1ed   : > { %v1497_v25 = vpop.f32.mrf.mxu1  ;;  %2731 = vmatpush.bf16.msra.mxu3 %v2716_v34  ;;  %v2795_v59 = vsel %vm197_vm0, %v2788_v55, 0  ;;  %v2861_v60 = vpop.permute.xlu2 %2860  ;;  %v3553_v4 = vld.sshfl [vmem:[#allocation1 + $0x10] sm:$0xff pattern:$0x73625140]  ;;  %v2798_v11 = vsel %vm197_vm0, %v2789_v3, 0 }
 0x1ee   : > { %v3551_v5 = vld.sshfl [vmem:[#allocation1 + $0x8] sm:$0xff pattern:$0x73625140]  ;;  %3559 = vrot.lane.b32.xlu1 %v3553_v4, %s4271_s23  ;;  %v3549_v7 = vld.sshfl [vmem:[#allocation1] sm:$0xff pattern:$0x73625140] }
 0x1ef   : > { %v1653_v28 = vpop.f32.mrf.mxu3  ;;  %3555 = vrot.lane.b32.xlu0 %v3549_v7, %s4271_s23  ;;  %3621 = vst [vmem:[#allocation1] ss:$4 sm:$0xff] %v3617_v6 }
 0x1f1   : > { %4117 = vmatmul.msk.bf16.vlgmr.msra.gmra.mxu2 %vm193_vm1, %v4934_v22  ;;  %3557 = vrot.lane.b32.xlu2 %v3551_v5, %s4271_s23 }
 0x1f2   : > { %2678 = vmatpush.bf16.msra.mxu2 %v2643_v29 }
 0x1f3   : > { %v2707_v12 = vpop.permute.xlu0 %2706 }
 0x1f4   : > { %v1640_v37 = vpop.f32.mrf.mxu2  ;;  %v1574_v38 = vpop.f32.mrf.mxu0 }
 0x1f5   : > { %v1658_v39 = vadd.f32 %v1640_v37, %v1579_v20  ;;  %v1580_v40 = vadd.f32 %v1574_v38, %v1501_v15  ;;  %v1627_v41 = vpop.f32.mrf.mxu1  ;;  %v2711_v15 = vsel %vm2708_vm12, %v2705_v44, %v2707_v12  ;;  %v2786_v21 = vpop.permute.xlu2 %2785 }
 0x1f6   : > { %v1657_v43 = vadd.f32 %v1627_v41, %v1578_v10  ;;  %v2722_v20 = vsel %vm197_vm0, %v2711_v15, 0  ;;  %v3624_v26 = vld.sshfl [vmem:[#allocation1 + $0x8] sm:$0xff pattern:$0x73625140]  ;;  %v2790_v34 = vsel %vm2787_vm13, %v2784_v63, %v2786_v21 }
 0x1f7   : > { %v1659_v47 = vadd.f32 %v1653_v28, %v1580_v40  ;;  %4114 = vmatmul.msk.bf16.vlgmr.msra.gmra.mxu0 %vm193_vm1, %v4905_v51  ;;  %4115 = vmatmul.msk.bf16.vlgmr.msra.gmra.mxu1 %vm193_vm1, %v4905_v51  ;;  %v1655_v48 = vpop.f32.mrf.mxu3  ;;  %v3626_v28 = vld.sshfl [vmem:[#allocation1 + $0x10] sm:$0xff pattern:$0x73625140]  ;;  %v3622_v29 = vld.sshfl [vmem:[#allocation1] sm:$0xff pattern:$0x73625140] }
 0x1f8   : > { %2665 = vmatpush.bf16.msra.mxu1 %v2640_v1  ;;  %2652 = vmatpush.bf16.msra.mxu0 %v2637_v42  ;;  %v2859_v32 = vpop.permute.xlu1 %2858  ;;  %v2801_v41 = vsel %vm197_vm0, %v2790_v34, 0 }
 0x1f9   : > { %3630 = vrot.lane.b32.xlu2 %v3624_v26, %s4307_s15  ;;  %3628 = vrot.lane.b32.xlu1 %v3622_v29, %s4307_s15  ;;  %v2867_v35 = vsel %vm2866_vm14, %v2859_v32, %v2861_v60 }
 0x1fa   : > { %v2874_v1 = vsel %vm197_vm0, %v2867_v35, 0 }
 0x1fb   : > { %v2863_v25 = vpop.permute.xlu0 %2862 }
 0x1fc   : > { %v1642_v51 = vpop.f32.mrf.mxu2  ;;  %v1576_v54 = vpop.f32.mrf.mxu0  ;;  %4123 = vmatmul.msk.bf16.vlgmr.msrb.gmra.mxu3 %vm193_vm1, %v4120_v46  ;;  %v2868_v27 = vsel %vm2866_vm14, %v2861_v60, %v2863_v25 }
 0x1fd   : > { %v1629_v57 = vpop.f32.mrf.mxu1  ;;  %2823 = vmatpush.bf16.msrb.mxu3 %v2798_v11  ;;  %v2877_v31 = vsel %vm197_vm0, %v2868_v27, 0  ;;  %v2944_v33 = vpop.permute.xlu2 %2943  ;;  %v5006_v54 = vld [vmem:[%s5194_s1 + $0x44] sm:$0x3] }
 0x1ff   : > { %v1785_v58 = vpop.f32.mrf.mxu3 }
 0x200   : > { %v2942_v50 = vpop.permute.xlu1 %2941 }
 0x201   : > { %4122 = vmatmul.msk.bf16.vlgmr.msrb.gmra.mxu2 %vm193_vm1, %v4120_v46  ;;  %3632 = vrot.lane.b32.xlu2 %v3626_v28, %s4307_s15  ;;  %v2948_v57 = vsel %vm2945_vm15, %v2942_v50, %v2944_v33 }
 0x202   : > { %2810 = vmatpush.bf16.msrb.mxu2 %v2795_v59  ;;  %v2959_v61 = vsel %vm197_vm0, %v2948_v57, 0 }
 0x203   : > { %v2865_v42 = vpop.permute.xlu0 %2864 }
 0x204   : > { %v1732_v0 = vpop.f32.mrf.mxu2  ;;  %v1706_v2 = vpop.f32.mrf.mxu0  ;;  %v2869_v44 = vsel %vm2866_vm14, %v2863_v25, %v2865_v42 }
 0x205   : > { %v1738_v8 = vadd.f32 %v1732_v0, %v1659_v47  ;;  %v1736_v9 = vadd.f32 %v1706_v2, %v1657_v43  ;;  %v1719_v10 = vpop.f32.mrf.mxu1  ;;  %v2880_v52 = vsel %vm197_vm0, %v2869_v44, 0  ;;  %v3017_v51 = vpop.permute.xlu2 %3016 }
 0x206   : > { %v1737_v13 = vadd.f32 %v1719_v10, %v1658_v39 }
 0x207   : > { %v1815_v16 = vadd.f32 %v1785_v58, %v1736_v9  ;;  %4119 = vmatmul.msk.bf16.vlgmr.msrb.gmra.mxu0 %vm193_vm1, %v4934_v22  ;;  %4121 = vmatmul.msk.bf16.vlgmr.msrb.gmra.mxu1 %vm193_vm1, %v4120_v46  ;;  %v1787_v17 = vpop.f32.mrf.mxu3  ;;  %v3691_v22 = vld [vmem:[%s4346_s17 + $0x2] sm:$0x3f] }
 0x208   : > { %2744 = vmatpush.bf16.msrb.mxu0 %v2719_v62  ;;  %2757 = vmatpush.bf16.msrb.mxu1 %v2722_v20  ;;  %3695 = vst [vmem:[#allocation1] ss:$4 sm:$0xff] %v3691_v22  ;;  %v2938_v63 = vpop.permute.xlu1 %2937  ;;  %v4136_v22 = vld [vmem:[%s5194_s1 + $0x46] sm:$0x3] }
 0x20b   : > { %v2940_v59 = vpop.permute.xlu0 %2939 }
 0x20c   : > { %v1734_v18 = vpop.f32.mrf.mxu2  ;;  %v1708_v23 = vpop.f32.mrf.mxu0  ;;  %4129 = vmatmul.msk.bf16.vlgmr.msra.gmra.mxu3 %vm193_vm1, %v4983_v14  ;;  %v2947_v2 = vsel %vm2945_vm15, %v2940_v59, %v2942_v50  ;;  %v2946_v3 = vsel %vm2945_vm15, %v2938_v63, %v2940_v59 }
 0x20d   : > { %v1721_v19 = vpop.f32.mrf.mxu1  ;;  %2915 = vmatpush.bf16.msra.mxu3 %v2880_v52  ;;  %v3098_v0 = vpop.permute.xlu2 %3097  ;;  %v2956_v11 = vsel %vm197_vm0, %v2947_v2, 0  ;;  %v2953_v12 = vsel %vm197_vm0, %v2946_v3, 0 }
 0x20f   : > { %v1877_v30 = vpop.f32.mrf.mxu3  ;;  %v3696_v47 = vld.sshfl [vmem:[#allocation1] sm:$0xff pattern:$0x73625140]  ;;  %v3698_v46 = vld.sshfl [vmem:[#allocation1 + $0x8] sm:$0xff pattern:$0x73625140] }
 0x210   : > { %v3700_v53 = vld.sshfl [vmem:[#allocation1 + $0x10] sm:$0xff pattern:$0x73625140]  ;;  %3702 = vrot.lane.b32.xlu0 %v3696_v47, %s4308_s16  ;;  %3704 = vrot.lane.b32.xlu1 %v3698_v46, %s4308_s16  ;;  %v5044_v47 = vld [vmem:[%s5194_s1 + $0x4a] sm:$0x3] }
 0x211   : > { %4127 = vmatmul.msk.bf16.vlgmr.msra.gmra.mxu2 %vm193_vm1, %v4124_v24  ;;  %3769 = vst [vmem:[#allocation1] ss:$4 sm:$0xff] %v3765_v45 }
 0x212   : > { %2902 = vmatpush.bf16.msra.mxu2 %v2877_v31  ;;  %v3839_v31 = vld [vmem:[%s4346_s17 + $0x2] sm:$0x3f] }
 0x213   : > { %v3019_v7 = vpop.permute.xlu0 %3018 }
 0x214   : > { %v1864_v36 = vpop.f32.mrf.mxu2  ;;  %v1798_v37 = vpop.f32.mrf.mxu0 }
 0x215   : > { %v1894_v38 = vadd.f32 %v1864_v36, %v1815_v16  ;;  %v1816_v39 = vadd.f32 %v1798_v37, %v1737_v13  ;;  %v1811_v40 = vpop.f32.mrf.mxu1  ;;  %v3025_v13 = vsel %vm3024_vm2, %v3017_v51, %v3019_v7  ;;  %v3100_v18 = vpop.permute.xlu2 %3099  ;;  %v4140_v51 = vld [vmem:[%s5194_s1 + $0x48] sm:$0x3] }
 0x216   : > { %v1817_v43 = vadd.f32 %v1811_v40, %v1738_v8  ;;  %v3032_v17 = vsel %vm197_vm0, %v3025_v13, 0  ;;  %v3105_v23 = vsel %vm3103_vm3, %v3098_v0, %v3100_v18 }
 0x217   : > { %v1895_v48 = vadd.f32 %v1877_v30, %v1816_v39  ;;  %4125 = vmatmul.msk.bf16.vlgmr.msra.gmra.mxu0 %vm193_vm1, %v4124_v24  ;;  %4126 = vmatmul.msk.bf16.vlgmr.msra.gmra.mxu1 %vm193_vm1, %v4124_v24  ;;  %v1879_v49 = vpop.f32.mrf.mxu3  ;;  %v3114_v19 = vsel %vm197_vm0, %v3105_v23, 0 }
 0x218   : > { %2836 = vmatpush.bf16.msra.mxu0 %v2801_v41  ;;  %2889 = vmatpush.bf16.msra.mxu1 %v2874_v1  ;;  %v3774_v62 = vld.sshfl [vmem:[#allocation1 + $0x10] sm:$0xff pattern:$0x73625140]  ;;  %v3772_v20 = vld.sshfl [vmem:[#allocation1 + $0x8] sm:$0xff pattern:$0x73625140] }
 0x219   : > { %3706 = vrot.lane.b32.xlu0 %v3700_v53, %s4308_s16  ;;  %3780 = vrot.lane.b32.xlu2 %v3774_v62, %s4309_s20  ;;  %v3770_v21 = vld.sshfl [vmem:[#allocation1] sm:$0xff pattern:$0x73625140] }
 0x21a   : > { %3778 = vrot.lane.b32.xlu1 %v3772_v20, %s4309_s20  ;;  %3843 = vst [vmem:[#allocation1] ss:$4 sm:$0xff] %v3839_v31 }
 0x21c   : > { %v1866_v55 = vpop.f32.mrf.mxu2  ;;  %v1800_v56 = vpop.f32.mrf.mxu0  ;;  %4134 = vmatmul.msk.bf16.vlgmr.msrb.gmra.mxu3 %vm193_vm1, %v5006_v54 }
 0x21d   : > { %v1813_v58 = vpop.f32.mrf.mxu1  ;;  %3047 = vmatpush.bf16.msrb.mxu3 %v3032_v17  ;;  %v3021_v28 = vpop.permute.xlu0 %3020 }
 0x21e   : > { %v3026_v32 = vsel %vm3024_vm2, %v3019_v7, %v3021_v28 }
 0x21f   : > { %v1969_v60 = vpop.f32.mrf.mxu3  ;;  %v3035_v40 = vsel %vm197_vm0, %v3026_v32, 0 }
 0x221   : > { %4133 = vmatmul.msk.bf16.vlgmr.msrb.gmra.mxu2 %vm193_vm1, %v5006_v54  ;;  %3776 = vrot.lane.b32.xlu0 %v3770_v21, %s4309_s20  ;;  %v3844_v45 = vld.sshfl [vmem:[#allocation1] sm:$0xff pattern:$0x73625140] }
 0x222   : > { %2994 = vmatpush.bf16.msrb.mxu2 %v2959_v61 }
 0x224   : > { %v1956_v4 = vpop.f32.mrf.mxu2  ;;  %v1890_v5 = vpop.f32.mrf.mxu0 }
 0x225   : > { %v1974_v8 = vadd.f32 %v1956_v4, %v1895_v48  ;;  %v1896_v9 = vadd.f32 %v1890_v5, %v1817_v43  ;;  %v1943_v10 = vpop.f32.mrf.mxu1  ;;  %v3177_v1 = vpop.permute.xlu0 %3176  ;;  %v3848_v48 = vld.sshfl [vmem:[#allocation1 + $0x10] sm:$0xff pattern:$0x73625140] }
 0x226   : > { %v1973_v6 = vadd.f32 %v1943_v10, %v1894_v38  ;;  %3854 = vrot.lane.b32.xlu1 %v3848_v48, %s4310_s27 }
 0x227   : > { %v1975_v15 = vadd.f32 %v1969_v60, %v1896_v9  ;;  %4130 = vmatmul.msk.bf16.vlgmr.msrb.gmra.mxu0 %vm193_vm1, %v4983_v14  ;;  %4131 = vmatmul.msk.bf16.vlgmr.msrb.gmra.mxu1 %vm193_vm1, %v4983_v14  ;;  %v1971_v16 = vpop.f32.mrf.mxu3  ;;  %v3096_v14 = vpop.permute.xlu1 %3095 }
 0x228   : > { %2981 = vmatpush.bf16.msrb.mxu1 %v2956_v11  ;;  %2968 = vmatpush.bf16.msrb.mxu0 %v2953_v12  ;;  %v3104_v26 = vsel %vm3103_vm3, %v3096_v14, %v3098_v0 }
 0x229   : > { %v3111_v30 = vsel %vm197_vm0, %v3104_v26, 0  ;;  %3850 = vrot.lane.b32.xlu0 %v3844_v45, %s4310_s27 }
 0x22c   : > { %v1958_v24 = vpop.f32.mrf.mxu2  ;;  %v1892_v25 = vpop.f32.mrf.mxu0  ;;  %4139 = vmatmul.msk.bf16.vlgmr.msra.gmra.mxu3 %vm193_vm1, %v4136_v22 }
 0x22d   : > { %v1945_v27 = vpop.f32.mrf.mxu1  ;;  %3139 = vmatpush.bf16.msra.mxu3 %v3114_v19  ;;  %v3102_v57 = vpop.permute.xlu0 %3101  ;;  %v3846_v19 = vld.sshfl [vmem:[#allocation1 + $0x8] sm:$0xff pattern:$0x73625140] }
 0x22e   : > { %v3106_v59 = vsel %vm3103_vm3, %v3100_v18, %v3102_v57  ;;  %3852 = vrot.lane.b32.xlu2 %v3846_v19, %s4310_s27 }
 0x22f   : > { %v2101_v29 = vpop.f32.mrf.mxu3  ;;  %v3023_v33 = vpop.permute.xlu1 %3022  ;;  %v3117_v5 = vsel %vm197_vm0, %v3106_v59, 0 }
 0x230   : > { %v3027_v36 = vsel %vm3024_vm2, %v3021_v28, %v3023_v33 }
 0x231   : > { %4138 = vmatmul.msk.bf16.vlgmr.msra.gmra.mxu2 %vm193_vm1, %v4136_v22  ;;  %v3038_v41 = vsel %vm197_vm0, %v3027_v36, 0 }
 0x232   : > { %3126 = vmatpush.bf16.msra.mxu2 %v3111_v30 }
 0x234   : > { %v2048_v34 = vpop.f32.mrf.mxu2  ;;  %v2022_v35 = vpop.f32.mrf.mxu0 }
 0x235   : > { %v2054_v37 = vadd.f32 %v2048_v34, %v1975_v15  ;;  %v2052_v38 = vadd.f32 %v2022_v35, %v1973_v6  ;;  %v2035_v39 = vpop.f32.mrf.mxu1  ;;  %v3260_v7 = vpop.permute.xlu0 %3259  ;;  %v5067_v6 = vld [vmem:[%s5194_s1 + $0x4c] sm:$0x3] }
 0x236   : > { %v2053_v42 = vadd.f32 %v2035_v39, %v1974_v8  ;;  %v4152_v39 = vld [vmem:[%s5194_s1 + $0x4e] sm:$0x3] }
 0x237   : > { %v2131_v43 = vadd.f32 %v2101_v29, %v2052_v38  ;;  %4135 = vmatmul.msk.bf16.vlgmr.msra.gmra.mxu0 %vm193_vm1, %v5006_v54  ;;  %4137 = vmatmul.msk.bf16.vlgmr.msra.gmra.mxu1 %vm193_vm1, %v4136_v22  ;;  %v2103_v44 = vpop.f32.mrf.mxu3  ;;  %v3179_v49 = vpop.permute.xlu1 %3178 }
 0x238   : > { %3060 = vmatpush.bf16.msra.mxu0 %v3035_v40  ;;  %3073 = vmatpush.bf16.msra.mxu1 %v3038_v41  ;;  %v3184_v46 = vsel %vm3182_vm4, %v3177_v1, %v3179_v49  ;;  %v3175_v54 = vpop.permute.xlu2 %3174 }
 0x239   : > { %v3193_v56 = vsel %vm197_vm0, %v3184_v46, 0  ;;  %v3183_v58 = vsel %vm3182_vm4, %v3175_v54, %v3177_v1 }
 0x23a   : > { %v3190_v63 = vsel %vm197_vm0, %v3183_v58, 0 }
 0x23c   : > { %v2050_v52 = vpop.f32.mrf.mxu2  ;;  %v2024_v50 = vpop.f32.mrf.mxu0  ;;  %4145 = vmatmul.msk.bf16.vlgmr.msrb.gmra.mxu3 %vm193_vm1, %v5044_v47 }
 0x23d   : > { %v2037_v53 = vpop.f32.mrf.mxu1  ;;  %v3333_v14 = vpop.permute.xlu0 %3332 }
 0x23f   : > { %v2193_v55 = vpop.f32.mrf.mxu3  ;;  %v3181_v60 = vpop.permute.xlu1 %3180 }
 0x240   : > { %v3185_v0 = vsel %vm3182_vm4, %v3179_v49, %v3181_v60  ;;  %v3258_v10 = vpop.permute.xlu2 %3257 }
 0x241   : > { %4143 = vmatmul.msk.bf16.vlgmr.msrb.gmra.mxu2 %vm193_vm1, %v4140_v51  ;;  %v3196_v8 = vsel %vm197_vm0, %v3185_v0, 0  ;;  %v3264_v17 = vsel %vm3261_vm8, %v3258_v10, %v3260_v7 }
 0x242   : > { %3218 = vmatpush.bf16.msrb.mxu2 %v3193_v56  ;;  %3231 = vmatpush.bf16.msrb.mxu3 %v3196_v8  ;;  %v3275_v23 = vsel %vm197_vm0, %v3264_v17, 0 }
 0x244   : > { %v2180_v61 = vpop.f32.mrf.mxu2  ;;  %v2114_v62 = vpop.f32.mrf.mxu0 }
 0x245   : > { %v2210_v2 = vadd.f32 %v2180_v61, %v2131_v43  ;;  %v2132_v3 = vadd.f32 %v2114_v62, %v2053_v42  ;;  %v2127_v4 = vpop.f32.mrf.mxu1  ;;  %v3412_v40 = vpop.permute.xlu0 %3411 }
 0x246   : > { %v2133_v9 = vadd.f32 %v2127_v4, %v2054_v37 }
 0x247   : > { %v2211_v11 = vadd.f32 %v2193_v55, %v2132_v3  ;;  %4141 = vmatmul.msk.bf16.vlgmr.msrb.gmra.mxu0 %vm193_vm1, %v4140_v51  ;;  %4142 = vmatmul.msk.bf16.vlgmr.msrb.gmra.mxu1 %vm193_vm1, %v4140_v51  ;;  %v2195_v12 = vpop.f32.mrf.mxu3  ;;  %v3256_v13 = vpop.permute.xlu1 %3255 }
 0x248   : > { %3152 = vmatpush.bf16.msrb.mxu0 %v3117_v5  ;;  %3205 = vmatpush.bf16.msrb.mxu1 %v3190_v63  ;;  %v3254_v21 = vpop.permute.xlu2 %3253  ;;  %v3263_v22 = vsel %vm3261_vm8, %v3256_v13, %v3258_v10  ;;  %v4160_v63 = vld [vmem:[%s5194_s1 + $0x52] sm:$0x3]  ;;  %v4156_v10 = vld [vmem:[%s5194_s1 + $0x50] sm:$0x3] }
 0x249   : > { %v3262_v24 = vsel %vm3261_vm8, %v3254_v21, %v3256_v13  ;;  %v3272_v28 = vsel %vm197_vm0, %v3263_v22, 0 }
 0x24a   : > { %v3269_v33 = vsel %vm197_vm0, %v3262_v24, 0 }
 0x24c   : > { %v2182_v15 = vpop.f32.mrf.mxu2  ;;  %v2116_v16 = vpop.f32.mrf.mxu0  ;;  %4150 = vmatmul.msk.bf16.vlgmr.msra.gmra.mxu3 %vm193_vm1, %v5067_v6 }
 0x24d   : > { %v2129_v20 = vpop.f32.mrf.mxu1  ;;  %v3414_v46 = vpop.permute.xlu0 %3413 }
 0x24e   : > { %v3416_v54 = vsel %vm463_vm5, %v3412_v40, %v3414_v46  ;;  %v3427_v21 = vsel %vm197_vm0, %v3414_v46, 0 }
 0x24f   : > { %v2285_v18 = vpop.f32.mrf.mxu3  ;;  %v3335_v25 = vpop.permute.xlu1 %3334  ;;  %v3424_v58 = vsel %vm197_vm0, %v3416_v54, 0 }
 0x250   : > { %v3341_v29 = vsel %vm3340_vm9, %v3333_v14, %v3335_v25  ;;  %v3410_v36 = vpop.permute.xlu2 %3409 }
 0x251   : > { %4149 = vmatmul.msk.bf16.vlgmr.msra.gmra.mxu2 %vm193_vm1, %v5067_v6  ;;  %v3348_v34 = vsel %vm197_vm0, %v3341_v29, 0  ;;  %v3415_v42 = vsel %vm463_vm5, %v3410_v36, %v3412_v40  ;;  %vm3634_vm5 = vcmask 990208  }
 0x252   : > { %3310 = vmatpush.bf16.msra.mxu2 %v3275_v23  ;;  %3363 = vmatpush.bf16.msra.mxu3 %v3348_v34  ;;  %v3421_v49 = vsel %vm197_vm0, %v3415_v42, 0 }
 0x254   : > { %v2272_v26 = vpop.f32.mrf.mxu2  ;;  %v2206_v27 = vpop.f32.mrf.mxu0 }
 0x255   : > { %v2290_v30 = vadd.f32 %v2272_v26, %v2211_v11  ;;  %v2212_v31 = vadd.f32 %v2206_v27, %v2133_v9  ;;  %v2259_v32 = vpop.f32.mrf.mxu1  ;;  %v3483_v7 = vpop.permute.xlu0 %3482 }
 0x256   : > { %v2289_v35 = vadd.f32 %v2259_v32, %v2210_v2 }
 0x257   : > { %v2291_v37 = vadd.f32 %v2285_v18, %v2212_v31  ;;  %4146 = vmatmul.msk.bf16.vlgmr.msra.gmra.mxu0 %vm193_vm1, %v5044_v47  ;;  %4147 = vmatmul.msk.bf16.vlgmr.msra.gmra.mxu1 %vm193_vm1, %v5044_v47  ;;  %v2287_v38 = vpop.f32.mrf.mxu3  ;;  %v3337_v44 = vpop.permute.xlu1 %3336 }
 0x258   : > { %3297 = vmatpush.bf16.msra.mxu1 %v3272_v28  ;;  %3284 = vmatpush.bf16.msra.mxu0 %v3269_v33  ;;  %v3339_v47 = vpop.permute.xlu2 %3338  ;;  %v3342_v52 = vsel %vm3340_vm9, %v3335_v25, %v3337_v44  ;;  %v4164_v25 = vld [vmem:[%s5194_s1 + $0x54] sm:$0x3] }
 0x259   : > { %v3343_v50 = vsel %vm3340_vm9, %v3337_v44, %v3339_v47  ;;  %v3351_v51 = vsel %vm197_vm0, %v3342_v52, 0  ;;  %v4168_v47 = vld [vmem:[%s5194_s1 + $0x56] sm:$0x3] }
 0x25a   : > { %v3354_v59 = vsel %vm197_vm0, %v3343_v50, 0 }
 0x25c   : > { %v2274_v41 = vpop.f32.mrf.mxu2  ;;  %v2208_v1 = vpop.f32.mrf.mxu0  ;;  %4155 = vmatmul.msk.bf16.vlgmr.msrb.gmra.mxu3 %vm193_vm1, %v4152_v39 }
 0x25d   : > { %v2261_v43 = vpop.f32.mrf.mxu1  ;;  %3449 = vmatpush.bf16.msrb.mxu3 %v3424_v58 }
 0x25f   : > { %v2417_v48 = vpop.f32.mrf.mxu3  ;;  %v3485_v3 = vpop.permute.xlu1 %3484 }
 0x260   : > { %v3487_v0 = vpop.permute.xlu2 %3486 }
 0x261   : > { %4154 = vmatmul.msk.bf16.vlgmr.msrb.gmra.mxu2 %vm193_vm1, %v4152_v39  ;;  %v3500_v2 = vsel %vm197_vm0, %v3487_v0, 0  ;;  %v3489_v8 = vsel %vm537_vm6, %v3485_v3, %v3487_v0  ;;  %v3556_v32 = vpop.permute.xlu0 %3555 }
 0x262   : > { %3436 = vmatpush.bf16.msrb.mxu2 %v3421_v49  ;;  %v3497_v12 = vsel %vm197_vm0, %v3489_v8, 0 }
 0x264   : > { %v2364_v45 = vpop.f32.mrf.mxu2  ;;  %v2338_v53 = vpop.f32.mrf.mxu0 }
 0x265   : > { %v2370_v55 = vadd.f32 %v2364_v45, %v2291_v37  ;;  %v2368_v56 = vadd.f32 %v2338_v53, %v2289_v35  ;;  %v2351_v57 = vpop.f32.mrf.mxu1 }
 0x266   : > { %v2369_v60 = vadd.f32 %v2351_v57, %v2290_v30 }
 0x267   : > { %v2447_v61 = vadd.f32 %v2417_v48, %v2368_v56  ;;  %4151 = vmatmul.msk.bf16.vlgmr.msrb.gmra.mxu0 %vm193_vm1, %v5067_v6  ;;  %4153 = vmatmul.msk.bf16.vlgmr.msrb.gmra.mxu1 %vm193_vm1, %v4152_v39  ;;  %v2419_v62 = vpop.f32.mrf.mxu3  ;;  %v3488_v6 = vsel %vm537_vm6, %v3483_v7, %v3485_v3  ;;  %v3560_v24 = vpop.permute.xlu1 %3559  ;;  %vm3708_vm6 = vcmask 982016  }
 0x268   : > { %3376 = vmatpush.bf16.msrb.mxu0 %v3351_v51  ;;  %3389 = vmatpush.bf16.msrb.mxu1 %v3354_v59  ;;  %v3494_v18 = vsel %vm197_vm0, %v3488_v6, 0  ;;  %v3558_v22 = vpop.permute.xlu2 %3557  ;;  %v3573_v30 = vsel %vm197_vm0, %v3560_v24, 0 }
 0x269   : > { %v3562_v34 = vsel %vm611_vm7, %v3558_v22, %v3560_v24  ;;  %v3561_v35 = vsel %vm611_vm7, %v3556_v32, %v3558_v22  ;;  %vm3782_vm7 = vcmask 973824  }
 0x26a   : > { %v3570_v42 = vsel %vm197_vm0, %v3562_v34, 0  ;;  %v3567_v43 = vsel %vm197_vm0, %v3561_v35, 0 }
 0x26c   : > { %v2366_v4 = vpop.f32.mrf.mxu2  ;;  %v2340_v5 = vpop.f32.mrf.mxu0  ;;  %4161 = vmatmul.msk.bf16.vlgmr.msra.gmra.mxu3 %vm193_vm1, %v4160_v63 }
 0x26d   : > { %v2353_v9 = vpop.f32.mrf.mxu1  ;;  %3535 = vmatpush.bf16.msra.mxu3 %v3500_v2 }
 0x26f   : > { %v2509_v11 = vpop.f32.mrf.mxu3  ;;  %v3629_v33 = vpop.permute.xlu1 %3628 }
 0x270   : > { %v3631_v31 = vpop.permute.xlu2 %3630 }
 0x271   : > { %4159 = vmatmul.msk.bf16.vlgmr.msra.gmra.mxu2 %vm193_vm1, %v4156_v10  ;;  %v3635_v36 = vsel %vm3634_vm5, %v3629_v33, %v3631_v31 }
 0x272   : > { %3522 = vmatpush.bf16.msra.mxu2 %v3497_v12  ;;  %v3641_v37 = vsel %vm197_vm0, %v3635_v36, 0 }
 0x274   : > { %v2496_v13 = vpop.f32.mrf.mxu2  ;;  %v2430_v15 = vpop.f32.mrf.mxu0 }
 0x275   : > { %v2526_v16 = vadd.f32 %v2496_v13, %v2447_v61  ;;  %v2448_v17 = vadd.f32 %v2430_v15, %v2369_v60  ;;  %v2443_v20 = vpop.f32.mrf.mxu1 }
 0x276   : > { %v2449_v23 = vadd.f32 %v2443_v20, %v2370_v55 }
 0x277   : > { %v2527_v14 = vadd.f32 %v2509_v11, %v2448_v17  ;;  %4157 = vmatmul.msk.bf16.vlgmr.msra.gmra.mxu0 %vm193_vm1, %v4156_v10  ;;  %4158 = vmatmul.msk.bf16.vlgmr.msra.gmra.mxu1 %vm193_vm1, %v4156_v10  ;;  %v2511_v19 = vpop.f32.mrf.mxu3  ;;  %v4176_v10 = vld [vmem:[%s5194_s1 + $0x5a] sm:$0x3]  ;;  %v4172_v17 = vld [vmem:[%s5194_s1 + $0x58] sm:$0x3] }
 0x278   : > { %3462 = vmatpush.bf16.msra.mxu0 %v3427_v21  ;;  %3509 = vmatpush.bf16.msra.mxu1 %v3494_v18  ;;  %v3633_v55 = vpop.permute.xlu2 %3632 }
 0x279   : > { %v3636_v57 = vsel %vm3634_vm5, %v3631_v31, %v3633_v55  ;;  %v3647_v61 = vsel %vm197_vm0, %v3633_v55, 0  ;;  %v4180_v31 = vld [vmem:[%s5194_s1 + $0x5c] sm:$0x3]  ;;  %v4311_v55 = vmov 0  }
 0x27a   : > { %v3644_v3 = vsel %vm197_vm0, %v3636_v57, 0  ;;  %4250 = vset.pattern.permute.xlu1 %v4311_v55  ;;  %4251 = vset.pattern.permute.xlu0 %v4311_v55  ;;  %v3913_v57 = vld [vmem:[%s5195_s2] sm:$0x7] }
 0x27b   : > { %3916 = vperm.xlu1 %4250, %v3913_v57  }
 0x27c   : > { %v2498_v26 = vpop.f32.mrf.mxu2  ;;  %v2432_v27 = vpop.f32.mrf.mxu0  ;;  %4166 = vmatmul.msk.bf16.vlgmr.msrb.gmra.mxu3 %vm193_vm1, %v4164_v25 }
 0x27d   : > { %v2445_v28 = vpop.f32.mrf.mxu1  ;;  %3656 = vmatpush.bf16.msrb.mxu3 %v3641_v37 }
 0x27f   : > { %v2601_v29 = vpop.f32.mrf.mxu3 }
 0x280   : > { %v3781_v11 = vpop.permute.xlu2 %3780 }
 0x281   : > { %4165 = vmatmul.msk.bf16.vlgmr.msrb.gmra.mxu2 %vm193_vm1, %v4164_v25  ;;  %v3795_v12 = vsel %vm197_vm0, %v3781_v11, 0 }
 0x282   : > { %3608 = vmatpush.bf16.msrb.mxu2 %v3573_v30  ;;  %v3703_v52 = vpop.permute.xlu0 %3702  ;;  %v3705_v53 = vpop.permute.xlu1 %3704 }
 0x283   : > { %v3709_v51 = vsel %vm3708_vm6, %v3703_v52, %v3705_v53 }
 0x284   : > { %v2588_v38 = vpop.f32.mrf.mxu2  ;;  %v2522_v39 = vpop.f32.mrf.mxu0  ;;  %v3715_v56 = vsel %vm197_vm0, %v3709_v51, 0 }
 0x285   : > { %v2606_v40 = vadd.f32 %v2588_v38, %v2527_v14  ;;  %v2528_v41 = vadd.f32 %v2522_v39, %v2449_v23  ;;  %v2575_v1 = vpop.f32.mrf.mxu1 }
 0x286   : > { %v2605_v44 = vadd.f32 %v2575_v1, %v2526_v16 }
 0x287   : > { %v2607_v48 = vadd.f32 %v2601_v29, %v2528_v41  ;;  %4162 = vmatmul.msk.bf16.vlgmr.msrb.gmra.mxu0 %vm193_vm1, %v4160_v63  ;;  %4163 = vmatmul.msk.bf16.vlgmr.msrb.gmra.mxu1 %vm193_vm1, %v4160_v63  ;;  %v2603_v49 = vpop.f32.mrf.mxu3 }
 0x288   : > { %3595 = vmatpush.bf16.msrb.mxu1 %v3570_v42  ;;  %3582 = vmatpush.bf16.msrb.mxu0 %v3567_v43  ;;  %v3853_v36 = vpop.permute.xlu2 %3852 }
 0x28b   : > { %v3707_v58 = vpop.permute.xlu0 %3706 }
 0x28c   : > { %v2590_v50 = vpop.f32.mrf.mxu2  ;;  %v2524_v46 = vpop.f32.mrf.mxu0  ;;  %4171 = vmatmul.msk.bf16.vlgmr.msra.gmra.mxu3 %vm193_vm1, %v4168_v47  ;;  %v3710_v62 = vsel %vm3708_vm6, %v3705_v53, %v3707_v58  ;;  %v3721_v26 = vsel %vm197_vm0, %v3707_v58, 0 }
 0x28d   : > { %v2577_v45 = vpop.f32.mrf.mxu1  ;;  %v3718_v4 = vsel %vm197_vm0, %v3710_v62, 0  ;;  %v3779_v7 = vpop.permute.xlu1 %3778 }
 0x28e   : > { %3743 = vmatpush.bf16.msra.mxu3 %v3718_v4  ;;  %v3784_v15 = vsel %vm3782_vm7, %v3779_v7, %v3781_v11  ;;  %v4184_v45 = vld [vmem:[%s5194_s1 + $0x5e] sm:$0x3] }
 0x28f   : > { %v2733_v54 = vpop.f32.mrf.mxu3  ;;  %v3792_v21 = vsel %vm197_vm0, %v3784_v15, 0 }
 0x291   : > { %4170 = vmatmul.msk.bf16.vlgmr.msra.gmra.mxu2 %vm193_vm1, %v4168_v47 }
 0x292   : > { %3730 = vmatpush.bf16.msra.mxu2 %v3715_v56 }
 0x293   : > { %v3777_v18 = vpop.permute.xlu0 %3776 }
 0x294   : > { %v2680_v59 = vpop.f32.mrf.mxu2  ;;  %v2654_v60 = vpop.f32.mrf.mxu0  ;;  %v3783_v23 = vsel %vm3782_vm7, %v3777_v18, %v3779_v7 }
 0x295   : > { %v2686_v63 = vadd.f32 %v2680_v59, %v2607_v48  ;;  %v2684_v0 = vadd.f32 %v2654_v60, %v2605_v44  ;;  %v2667_v2 = vpop.f32.mrf.mxu1  ;;  %v3789_v27 = vsel %vm197_vm0, %v3783_v23, 0 }
 0x296   : > { %v2685_v5 = vadd.f32 %v2667_v2, %v2606_v40 }
 0x297   : > { %v2763_v8 = vadd.f32 %v2733_v54, %v2684_v0  ;;  %4167 = vmatmul.msk.bf16.vlgmr.msra.gmra.mxu0 %vm193_vm1, %v4164_v25  ;;  %4169 = vmatmul.msk.bf16.vlgmr.msra.gmra.mxu1 %vm193_vm1, %v4168_v47  ;;  %v2735_v9 = vpop.f32.mrf.mxu3 }
 0x298   : > { %3669 = vmatpush.bf16.msra.mxu0 %v3644_v3  ;;  %3682 = vmatpush.bf16.msra.mxu1 %v3647_v61  ;;  %v3855_v35 = vpop.permute.xlu1 %3854 }
 0x299   : > { %v3869_v38 = vsel %vm197_vm0, %v3855_v35, 0  ;;  %v3858_v40 = vsel %vm3856_vm10, %v3853_v36, %v3855_v35 }
 0x29a   : > { %v3866_v49 = vsel %vm197_vm0, %v3858_v40, 0 }
 0x29b   : > { %v3851_v39 = vpop.permute.xlu0 %3850 }
 0x29c   : > { %v2682_v6 = vpop.f32.mrf.mxu2  ;;  %v2656_v13 = vpop.f32.mrf.mxu0  ;;  %4177 = vmatmul.msk.bf16.vlgmr.msrb.gmra.mxu3 %vm193_vm1, %v4176_v10  ;;  %v3857_v41 = vsel %vm3856_vm10, %v3851_v39, %v3853_v36 }
 0x29d   : > { %v2669_v16 = vpop.f32.mrf.mxu1  ;;  %3830 = vmatpush.bf16.msrb.mxu3 %v3795_v12  ;;  %v3863_v47 = vsel %vm197_vm0, %v3857_v41, 0  ;;  %vm3932_vm0 = vcmask 780288  }
 0x29f   : > { %v2825_v20 = vpop.f32.mrf.mxu3 }
 0x2a1   : > { %4175 = vmatmul.msk.bf16.vlgmr.msrb.gmra.mxu2 %vm193_vm1, %v4172_v17 }
 0x2a2   : > { %3817 = vmatpush.bf16.msrb.mxu2 %v3792_v21 }
 0x2a4   : > { %v2812_v22 = vpop.f32.mrf.mxu2  ;;  %v2746_v14 = vpop.f32.mrf.mxu0 }
 0x2a5   : > { %v2842_v19 = vadd.f32 %v2812_v22, %v2763_v8  ;;  %v2764_v24 = vadd.f32 %v2746_v14, %v2685_v5  ;;  %v2759_v25 = vpop.f32.mrf.mxu1  ;;  %v4188_v8 = vld [vmem:[%s5194_s1 + $0x60] sm:$0x3] }
 0x2a6   : > { %v2765_v28 = vadd.f32 %v2759_v25, %v2686_v63 }
 0x2a7   : > { %v2843_v29 = vadd.f32 %v2825_v20, %v2764_v24  ;;  %4173 = vmatmul.msk.bf16.vlgmr.msrb.gmra.mxu0 %vm193_vm1, %v4172_v17  ;;  %4174 = vmatmul.msk.bf16.vlgmr.msrb.gmra.mxu1 %vm193_vm1, %v4172_v17  ;;  %v2827_v30 = vpop.f32.mrf.mxu3 }
 0x2a8   : > { %3756 = vmatpush.bf16.msrb.mxu0 %v3721_v26  ;;  %3804 = vmatpush.bf16.msrb.mxu1 %v3789_v27 }
 0x2ac   : > { %v2814_v32 = vpop.f32.mrf.mxu2  ;;  %v2748_v33 = vpop.f32.mrf.mxu0  ;;  %4182 = vmatmul.msk.bf16.vlgmr.msra.gmra.mxu3 %vm193_vm1, %v4180_v31 }
 0x2ad   : > { %v2761_v34 = vpop.f32.mrf.mxu1 }
 0x2af   : > { %v2917_v37 = vpop.f32.mrf.mxu3 }
 0x2b1   : > { %4181 = vmatmul.msk.bf16.vlgmr.msra.gmra.mxu2 %vm193_vm1, %v4180_v31 }
 0x2b2   : > { %3904 = vmatpush.bf16.msra.mxu2 %v3869_v38 }
 0x2b4   : > { %v2904_v1 = vpop.f32.mrf.mxu2  ;;  %v2838_v42 = vpop.f32.mrf.mxu0 }
 0x2b5   : > { %v2922_v43 = vadd.f32 %v2904_v1, %v2843_v29  ;;  %v2844_v44 = vadd.f32 %v2838_v42, %v2765_v28  ;;  %v2891_v48 = vpop.f32.mrf.mxu1 }
 0x2b6   : > { %v2921_v52 = vadd.f32 %v2891_v48, %v2842_v19 }
 0x2b7   : > { %v2923_v50 = vadd.f32 %v2917_v37, %v2844_v44  ;;  %4178 = vmatmul.msk.bf16.vlgmr.msra.gmra.mxu0 %vm193_vm1, %v4176_v10  ;;  %4179 = vmatmul.msk.bf16.vlgmr.msra.gmra.mxu1 %vm193_vm1, %v4176_v10  ;;  %v2919_v46 = vpop.f32.mrf.mxu3 }
 0x2b8   : > { %3891 = vmatpush.bf16.msra.mxu1 %v3866_v49  ;;  %3878 = vmatpush.bf16.msra.mxu0 %v3863_v47 }
 0x2bc   : > { %v2906_v53 = vpop.f32.mrf.mxu2  ;;  %v2840_v51 = vpop.f32.mrf.mxu0  ;;  %4187 = vmatmul.msk.bf16.vlgmr.msrb.gmra.mxu3 %vm193_vm1, %v4184_v45 }
 0x2bd   : > { %v2893_v54 = vpop.f32.mrf.mxu1 }
 0x2bf   : > { %v3049_v56 = vpop.f32.mrf.mxu3 }
 0x2c1   : > { %4186 = vmatmul.msk.bf16.vlgmr.msrb.gmra.mxu2 %vm193_vm1, %v4184_v45 }
 0x2c4   : > { %v2996_v58 = vpop.f32.mrf.mxu2  ;;  %v2970_v59 = vpop.f32.mrf.mxu0 }
 0x2c5   : > { %v3002_v60 = vadd.f32 %v2996_v58, %v2923_v50  ;;  %v3000_v61 = vadd.f32 %v2970_v59, %v2921_v52  ;;  %v2983_v62 = vpop.f32.mrf.mxu1 }
 0x2c6   : > { %v3001_v63 = vadd.f32 %v2983_v62, %v2922_v43 }
 0x2c7   : > { %v3079_v0 = vadd.f32 %v3049_v56, %v3000_v61  ;;  %4183 = vmatmul.msk.bf16.vlgmr.msrb.gmra.mxu0 %vm193_vm1, %v4180_v31  ;;  %4185 = vmatmul.msk.bf16.vlgmr.msrb.gmra.mxu1 %vm193_vm1, %v4184_v45  ;;  %v3051_v2 = vpop.f32.mrf.mxu3 }
 0x2cc   : > { %v2998_v3 = vpop.f32.mrf.mxu2  ;;  %v2972_v4 = vpop.f32.mrf.mxu0 }
 0x2cd   : > { %v2985_v5 = vpop.f32.mrf.mxu1 }
 0x2cf   : > { %v3141_v9 = vpop.f32.mrf.mxu3 }
 0x2d1   : > { %4191 = vmatmul.msk.bf16.vlgmr.msra.gmra.mxu2 %vm193_vm1, %v4188_v8 }
 0x2d4   : > { %v3128_v10 = vpop.f32.mrf.mxu2  ;;  %v3062_v11 = vpop.f32.mrf.mxu0 }
 0x2d5   : > { %v3158_v12 = vadd.f32 %v3128_v10, %v3079_v0  ;;  %v3080_v7 = vadd.f32 %v3062_v11, %v3001_v63  ;;  %v3075_v6 = vpop.f32.mrf.mxu1 }
 0x2d6   : > { %v3081_v13 = vadd.f32 %v3075_v6, %v3002_v60 }
 0x2d7   : > { %v3159_v15 = vadd.f32 %v3141_v9, %v3080_v7  ;;  %4189 = vmatmul.msk.bf16.vlgmr.msra.gmra.mxu0 %vm193_vm1, %v4188_v8  ;;  %4190 = vmatmul.msk.bf16.vlgmr.msra.gmra.mxu1 %vm193_vm1, %v4188_v8  ;;  %v3143_v16 = vpop.f32.mrf.mxu3  ;;  %vm3928_vm1 = vcmask 1043456  }
 0x2dc   : > { %v3130_v17 = vpop.f32.mrf.mxu2  ;;  %v3064_v20 = vpop.f32.mrf.mxu0 }
 0x2dd   : > { %v3077_v21 = vpop.f32.mrf.mxu1 }
 0x2df   : > { %v3233_v18 = vpop.f32.mrf.mxu3 }
 0x2e4   : > { %v3220_v23 = vpop.f32.mrf.mxu2  ;;  %v3154_v22 = vpop.f32.mrf.mxu0 }
 0x2e5   : > { %v3238_v14 = vadd.f32 %v3220_v23, %v3159_v15  ;;  %v3160_v19 = vadd.f32 %v3154_v22, %v3081_v13  ;;  %v3207_v24 = vpop.f32.mrf.mxu1 }
 0x2e6   : > { %v3237_v25 = vadd.f32 %v3207_v24, %v3158_v12 }
 0x2e7   : > { %v3239_v26 = vadd.f32 %v3233_v18, %v3160_v19  ;;  %v3235_v27 = vpop.f32.mrf.mxu3 }
 0x2ec   : > { %v3222_v28 = vpop.f32.mrf.mxu2  ;;  %v3156_v29 = vpop.f32.mrf.mxu0 }
 0x2ed   : > { %v3209_v30 = vpop.f32.mrf.mxu1 }
 0x2ef   : > { %v3365_v31 = vpop.f32.mrf.mxu3 }
 0x2f4   : > { %v3312_v32 = vpop.f32.mrf.mxu2  ;;  %v3286_v33 = vpop.f32.mrf.mxu0 }
 0x2f5   : > { %v3318_v34 = vadd.f32 %v3312_v32, %v3239_v26  ;;  %v3316_v35 = vadd.f32 %v3286_v33, %v3237_v25  ;;  %v3299_v36 = vpop.f32.mrf.mxu1 }
 0x2f6   : > { %v3317_v37 = vadd.f32 %v3299_v36, %v3238_v14 }
 0x2f7   : > { %v3395_v38 = vadd.f32 %v3365_v31, %v3316_v35  ;;  %v3367_v39 = vpop.f32.mrf.mxu3 }
 0x2fc   : > { %v3314_v40 = vpop.f32.mrf.mxu2  ;;  %v3288_v41 = vpop.f32.mrf.mxu0 }
 0x2fd   : > { %v3301_v1 = vpop.f32.mrf.mxu1 }
 0x2ff   : > { %v3451_v42 = vpop.f32.mrf.mxu3 }
 0x304   : > { %v3438_v43 = vpop.f32.mrf.mxu2  ;;  %v3378_v44 = vpop.f32.mrf.mxu0 }
 0x305   : > { %v3468_v48 = vadd.f32 %v3438_v43, %v3395_v38  ;;  %v3396_v49 = vadd.f32 %v3378_v44, %v3317_v37  ;;  %v3391_v47 = vpop.f32.mrf.mxu1  ;;  %v3917_v38 = vpop.permute.xlu1 %3916 }
 0x306   : > { %v3397_v52 = vadd.f32 %v3391_v47, %v3318_v34 }
 0x307   : > { %v3469_v50 = vadd.f32 %v3451_v42, %v3396_v49  ;;  %v3453_v46 = vpop.f32.mrf.mxu3 }
 0x30c   : > { %v3440_v45 = vpop.f32.mrf.mxu2  ;;  %v3380_v53 = vpop.f32.mrf.mxu0 }
 0x30d   : > { %v3393_v51 = vpop.f32.mrf.mxu1 }
 0x30f   : > { %v3537_v54 = vpop.f32.mrf.mxu3 }
 0x314   : > { %v3524_v55 = vpop.f32.mrf.mxu2  ;;  %v3464_v56 = vpop.f32.mrf.mxu0 }
 0x315   : > { %v3511_v57 = vpop.f32.mrf.mxu1  ;;  %v3470_v21 = vadd.f32 %v3464_v56, %v3397_v52  ;;  %v3542_v19 = vadd.f32 %v3524_v55, %v3469_v50 }
 0x316   : > { %v3541_v22 = vadd.f32 %v3511_v57, %v3468_v48 }
 0x317   : > { %v3539_v58 = vpop.f32.mrf.mxu3  ;;  %v3543_v14 = vadd.f32 %v3537_v54, %v3470_v21 }
 0x31c   : > { %v3526_v59 = vpop.f32.mrf.mxu2  ;;  %v3466_v60 = vpop.f32.mrf.mxu0 }
 0x31d   : > { %v3513_v61 = vpop.f32.mrf.mxu1 }
 0x31f   : > { %v3658_v62 = vpop.f32.mrf.mxu3 }
 0x324   : > { %v3610_v63 = vpop.f32.mrf.mxu2  ;;  %v3584_v0 = vpop.f32.mrf.mxu0 }
 0x325   : > { %v3597_v2 = vpop.f32.mrf.mxu1  ;;  %v3616_v24 = vadd.f32 %v3610_v63, %v3543_v14  ;;  %v3614_v25 = vadd.f32 %v3584_v0, %v3541_v22 }
 0x326   : > { %v3615_v26 = vadd.f32 %v3597_v2, %v3542_v19 }
 0x327   : > { %v3660_v3 = vpop.f32.mrf.mxu3  ;;  %v3688_v32 = vadd.f32 %v3658_v62, %v3614_v25 }
 0x32c   : > { %v3612_v4 = vpop.f32.mrf.mxu2  ;;  %v3586_v5 = vpop.f32.mrf.mxu0 }
 0x32d   : > { %v3599_v8 = vpop.f32.mrf.mxu1 }
 0x32f   : > { %v3745_v9 = vpop.f32.mrf.mxu3 }
 0x334   : > { %v3732_v10 = vpop.f32.mrf.mxu2  ;;  %v3671_v11 = vpop.f32.mrf.mxu0 }
 0x335   : > { %v3684_v12 = vpop.f32.mrf.mxu1  ;;  %v3689_v31 = vadd.f32 %v3671_v11, %v3615_v26  ;;  %v3762_v34 = vadd.f32 %v3732_v10, %v3688_v32 }
 0x336   : > { %v3690_v29 = vadd.f32 %v3684_v12, %v3616_v24 }
 0x337   : > { %v3747_v7 = vpop.f32.mrf.mxu3  ;;  %v3763_v35 = vadd.f32 %v3745_v9, %v3689_v31 }
 0x33c   : > { %v3734_v6 = vpop.f32.mrf.mxu2  ;;  %v3673_v13 = vpop.f32.mrf.mxu0 }
 0x33d   : > { %v3686_v15 = vpop.f32.mrf.mxu1 }
 0x33f   : > { %v3832_v16 = vpop.f32.mrf.mxu3 }
 0x344   : > { %v3819_v17 = vpop.f32.mrf.mxu2  ;;  %v3758_v20 = vpop.f32.mrf.mxu0 }
 0x345   : > { %v3806_v18 = vpop.f32.mrf.mxu1  ;;  %v3764_v33 = vadd.f32 %v3758_v20, %v3690_v29  ;;  %v3837_v39 = vadd.f32 %v3819_v17, %v3763_v35 }
 0x346   : > { %v3836_v36 = vadd.f32 %v3806_v18, %v3762_v34 }
 0x347   : > { %v3834_v23 = vpop.f32.mrf.mxu3  ;;  %v3838_v37 = vadd.f32 %v3832_v16, %v3764_v33 }
 0x34c   : > { %v3821_v27 = vpop.f32.mrf.mxu2  ;;  %v3760_v28 = vpop.f32.mrf.mxu0 }
 0x34d   : > { %v3808_v30 = vpop.f32.mrf.mxu1 }
 0x354   : > { %v3906_v40 = vpop.f32.mrf.mxu2  ;;  %v3880_v41 = vpop.f32.mrf.mxu0 }
 0x355   : > { %v3912_v1 = vadd.f32 %v3906_v40, %v3838_v37  ;;  %v3910_v42 = vadd.f32 %v3880_v41, %v3836_v36  ;;  %v3893_v43 = vpop.f32.mrf.mxu1 }
 0x356   : > { %v3911_v44 = vadd.f32 %v3893_v43, %v3837_v39 }
 0x357   : > { %v3921_v48 = vadd.f32 %v3917_v38, %v3912_v1  ;;  %v3919_v47 = vadd.f32 %v3917_v38, %v3910_v42 }
 0x358   : > { %v3920_v49 = vadd.f32 %v3917_v38, %v3911_v44 }
 0x359   : > { %4252 = vtanh.f32 %v3921_v48 }
 0x35a   : > { %4254 = vtanh.f32 %v3920_v49 }
 0x35b   : > { %4256 = vtanh.f32 %v3919_v47 }
 0x35c   : > { %v3882_v52 = vpop.f32.mrf.mxu0  ;;  %v3908_v50 = vpop.f32.mrf.mxu2 }
 0x35d   : > { %v3895_v46 = vpop.f32.mrf.mxu1 }
 0x35f   : > { %v4253_v45 = vpop.eup %4252 }
 0x360   : > { %3933 = vst.msk [vmem:[%s170_s5 + $0x8] sm:$0x7] %vm3932_vm0, %v4253_v45  ;;  %v4255_v53 = vpop.eup %4254 }
 0x361   : > { %v3927_v51 = vrot.slane %v4255_v53, 4  ;;  %v4257_v54 = vpop.eup %4256 }
 0x363   : > { %v3929_v55 = vsel %vm3928_vm1, %v4257_v54, %v3927_v51 }
 0x364   : > { %3931 = vst [vmem:[%s170_s5] sm:$0x77] %v3929_v55 }
 0x365 PF: > { %s13_s12 = sadd.s32 1, %s4264_s12  }
 0x366   : > { %p10_p4 = scmp.ge.s32.totalorder %s13_s12, 4  }
 0x368   :  { %12 = sbr.rel (!%p10_p4) target bundleno = 1 (0x1), region = 110 }

</bundles_post_ra>
